<compile_context>
chip_gen: v7x
topology: tpu7x:2x2x1
jax: 0.10.0
libtpu: 0.0.40
codegen_flags: <defaults>
</compile_context>

<pallas_src>
import functools

import jax
import jax.numpy as jnp
from jax.experimental import pallas as pl
from jax.experimental.pallas import tpu as pltpu


# ---------------------------------------------------------------------------
# Honest VMEM accounting and tile selection (per-generation budget).
# ---------------------------------------------------------------------------
def _round_up(v, m):
    return -(-v // m) * m


def _vmem_bytes(shape, itemsize):
    """VMEM footprint of an array: last two dims padded to the native vreg
    tile ((8,128) for 32-bit, (16,128) for 16-bit)."""
    shape = tuple(int(d) for d in shape)
    if len(shape) < 2:
        shape = (1,) + shape
    lead = 1
    for d in shape[:-2]:
        lead *= d
    sub_mult = 8 * max(1, 4 // itemsize)
    return lead * _round_up(shape[-2], sub_mult) * _round_up(shape[-1], 128) * itemsize


def _vmem_budget():
    """75% of this generation's physical VMEM (v5e/v6e: 128 MiB, v7x: 64 MiB)."""
    try:
        cap = int(pltpu.get_tpu_info().vmem_capacity_bytes)
    except Exception:
        cap = 64 * 1024 * 1024          # conservative default (v7x)
    return (cap * 3) // 4


def _tile_bytes(t, W, cin, cmid, cout):
    """Per-step VMEM requirement for an H-tile of `t` rows: double-buffered
    pipeline blocks, both persistent scratches, and the in-kernel value
    temporaries (3 shifted views per stage + f32 accumulators)."""
    r1 = t + 2
    b = 0
    b += 2 * _vmem_bytes((t, W, cin), 4)                      # current input tile
    b += 2 * 2 * _vmem_bytes((2, W, cin), 4)                  # 2-row top/bottom halos
    b += 2 * _vmem_bytes((t, W, cout), 4)                     # output tile
    b += 2 * (_vmem_bytes((9, cin, cmid), 2) + _vmem_bytes((9, cmid, cout), 2)
              + 2 * _vmem_bytes((1, cmid), 4) + 2 * _vmem_bytes((1, cout), 4))
    b += _vmem_bytes((t + 4, W + 2, cin), 2)                  # xpad scratch (bf16)
    b += _vmem_bytes((r1, W + 2, cmid), 2)                    # mpad scratch (bf16)
    b += 3 * _vmem_bytes(((t + 4) * W, cin), 2)               # stage-1 shifted views
    b += 3 * _vmem_bytes((r1 * W, cmid), 2)                   # stage-2 shifted views
    b += 2 * _vmem_bytes((r1 * W, cmid), 4)                   # stage-1 f32 acc + mid
    b += 2 * _vmem_bytes((t * W, cout), 4)                    # stage-2 f32 acc + out
    return (b * 5) // 4                                       # compiler-internal headroom


def _pick_tile_h(N, H, W, cin, cmid, cout, budget):
    if H % 8 == 0:
        cands = [t for t in range(8, H + 1, 8) if H % t == 0]
    else:
        # TODO(synk): ragged-H tiling; fall back to a single H tile.
        cands = [H]
    fitting = [t for t in cands if _tile_bytes(t, W, cin, cmid, cout) <= budget]
    if not fitting:
        fitting = [cands[0]]
    # Prefer tiles that leave an even parallel grid extent (>= 2) so both of
    # v7x's TensorCores get work; among those take the largest that fits.
    even = [t for t in fitting if N * (H // t) >= 2 and (N * (H // t)) % 2 == 0]
    return max(even or fitting)


# ---------------------------------------------------------------------------
# Fused (conv3x3 + BN + ReLU) x 2 kernel, channels-last.
# ---------------------------------------------------------------------------
def double_conv_nhwc(x, w1, s1, b1, w2, s2, b2, *, tile_h):
    N, H, W, Cin = x.shape
    Cmid = w1.shape[-1]
    Cout = w2.shape[-1]
    assert H % tile_h == 0, "H must be divisible by tile_h"
    tH = tile_h
    nh = H // tH
    assert tH % 2 == 0 or nh == 1, "2-row halo blocks need an even tile_h"
    hb = 2 if H % 2 == 0 else 1             # halo block rows (unused when nh == 1)
    rows1 = tH + 2                          # stage-1 output rows (stage-2 input + halo)
    cdt = jnp.bfloat16                      # MXU operand dtype (f32 accumulation)
    vmem_limit = _vmem_budget()

    def kernel(xc_ref, xt_ref, xb_ref, w1_ref, s1_ref, b1_ref,
               w2_ref, s2_ref, b2_ref, o_ref, xpad_ref, mpad_ref):
        h = pl.program_id(1)

        # ---- assemble the zero-padded input tile in VMEM -------------------
        # Only the never-written W borders (cols 0, W+1) are cleared each step;
        # the interior is always fully overwritten, and the 2-row halos are
        # copied from the neighbouring tiles or zeroed on the border tiles only
        # (conditional: the scratch persists across grid iterations).
        xpad_ref[:, 0:1, :] = jnp.zeros((tH + 4, 1, Cin), cdt)
        xpad_ref[:, W + 1:W + 2, :] = jnp.zeros((tH + 4, 1, Cin), cdt)
        xpad_ref[2:2 + tH, 1:1 + W, :] = xc_ref[0].astype(cdt)

        if nh > 1:
            @pl.when(h > 0)
            def _():
                xpad_ref[0:2, 1:1 + W, :] = xt_ref[0].astype(cdt)

            @pl.when(h == 0)
            def _():
                xpad_ref[0:2, 1:1 + W, :] = jnp.zeros((2, W, Cin), cdt)

            @pl.when(h < nh - 1)
            def _():
                xpad_ref[tH + 2:tH + 4, 1:1 + W, :] = xb_ref[0].astype(cdt)

            @pl.when(h == nh - 1)
            def _():
                xpad_ref[tH + 2:tH + 4, 1:1 + W, :] = jnp.zeros((2, W, Cin), cdt)
        else:
            xpad_ref[0:2, 1:1 + W, :] = jnp.zeros((2, W, Cin), cdt)
            xpad_ref[tH + 2:tH + 4, 1:1 + W, :] = jnp.zeros((2, W, Cin), cdt)

        # ---- stage 1: conv3x3 + BN + ReLU over tH+2 rows (halo for stage 2) --
        # 3 column-shifted, row-flattened copies hoisted out of the dy loop
        # (dx=0 tile-aligned; dx=1/2 pay one sublane relayout each).  Then 9
        # accumulating MXU dots (K=Cin) -- no lane-concat, no 9x im2col temp;
        # every patch slice below starts at an 8-aligned sublane offset (dy*W).
        x_sh = [xpad_ref[:, dx:dx + W, :].reshape((tH + 4) * W, Cin)
                for dx in range(3)]
        acc1 = jnp.zeros((rows1 * W, Cmid), jnp.float32)
        for dy in range(3):
            for dx in range(3):
                patch = x_sh[dx][dy * W:(dy + rows1) * W, :]
                acc1 = acc1 + jnp.dot(patch, w1_ref[dy * 3 + dx],
                                      preferred_element_type=jnp.float32)
        mid = jnp.maximum(acc1 * s1_ref[0] + b1_ref[0], 0.0)

        # Mid activation stays in VMEM (never written to HBM), W-padded by 1.
        mpad_ref[:, 0:1, :] = jnp.zeros((rows1, 1, Cmid), cdt)
        mpad_ref[:, W + 1:W + 2, :] = jnp.zeros((rows1, 1, Cmid), cdt)
        mpad_ref[:, 1:1 + W, :] = mid.reshape(rows1, W, Cmid).astype(cdt)

        # Rows outside the image are conv2's zero padding: single-row stores on
        # the border tiles only (replaces the full-tile iota/where mask).
        @pl.when(h == 0)
        def _():
            mpad_ref[0:1, 1:1 + W, :] = jnp.zeros((1, W, Cmid), cdt)

        @pl.when(h == nh - 1)
        def _():
            mpad_ref[rows1 - 1:rows1, 1:1 + W, :] = jnp.zeros((1, W, Cmid), cdt)

        # ---- stage 2: conv3x3 + BN + ReLU -> output tile --------------------
        m_sh = [mpad_ref[:, dx:dx + W, :].reshape(rows1 * W, Cmid)
                for dx in range(3)]
        acc2 = jnp.zeros((tH * W, Cout), jnp.float32)
        for dy in range(3):
            for dx in range(3):
                patch = m_sh[dx][dy * W:(dy + tH) * W, :]
                acc2 = acc2 + jnp.dot(patch, w2_ref[dy * 3 + dx],
                                      preferred_element_type=jnp.float32)
        out = jnp.maximum(acc2 * s2_ref[0] + b2_ref[0], 0.0)
        # TODO(synk): with toy Cout (< 128 lanes) this store is masked; a lane-
        # dense (tH, W*Cout) out block needs a minor-dims value relayout whose
        # Mosaic shape-cast support is version-dependent.  At production
        # channel counts (Cout >= 128) this store is already lane-dense.
        o_ref[0] = out.reshape(tH, W, Cout).astype(o_ref.dtype)

    rtop = tH // hb
    in_specs = [
        # current H-tile of the input
        pl.BlockSpec((1, tH, W, Cin), lambda n, h: (n, h, 0, 0)),
        # 2-row halo just above (input rows h*tH-2 .. h*tH-1); clamped & unused at h==0
        pl.BlockSpec((1, hb, W, Cin),
                     lambda n, h: (n, jnp.maximum(h * rtop - 1, 0), 0, 0)),
        # 2-row halo just below (rows (h+1)*tH .. +1); clamped & unused at the last tile
        pl.BlockSpec((1, hb, W, Cin),
                     lambda n, h: (n, jnp.minimum((h + 1) * rtop, H // hb - 1), 0, 0)),
        # weights / folded BN params (tiny, resident)
        pl.BlockSpec((9, Cin, Cmid), lambda n, h: (0, 0, 0)),
        pl.BlockSpec((1, Cmid), lambda n, h: (0, 0)),
        pl.BlockSpec((1, Cmid), lambda n, h: (0, 0)),
        pl.BlockSpec((9, Cmid, Cout), lambda n, h: (0, 0, 0)),
        pl.BlockSpec((1, Cout), lambda n, h: (0, 0)),
        pl.BlockSpec((1, Cout), lambda n, h: (0, 0)),
    ]
    out_specs = pl.BlockSpec((1, tH, W, Cout), lambda n, h: (n, h, 0, 0))

    return pl.pallas_call(
        kernel,
        out_shape=jax.ShapeDtypeStruct((N, H, W, Cout), x.dtype),
        grid=(N, nh),
        in_specs=in_specs,
        out_specs=out_specs,
        scratch_shapes=[
            pltpu.VMEM((tH + 4, W + 2, Cin), cdt),    # zero-padded input tile
            pltpu.VMEM((rows1, W + 2, Cmid), cdt),    # padded mid activation
        ],
        compiler_params=pltpu.CompilerParams(
            dimension_semantics=("parallel", "parallel"),
            vmem_limit_bytes=int(vmem_limit)),
    )(x, x, x, w1, s1, b1, w2, s2, b2)


# ---------------------------------------------------------------------------
# Parameters (eval-mode BN folded with real running statistics).
# ---------------------------------------------------------------------------
def make_double_conv_params(key, in_channels, out_channels, mid_channels=None):
    if mid_channels is None:
        mid_channels = out_channels
    ks = jax.random.split(key, 10)
    eps = 1e-5
    w1 = 0.1 * jax.random.normal(ks[0], (3, 3, in_channels, mid_channels), jnp.float32)
    w2 = 0.1 * jax.random.normal(ks[1], (3, 3, mid_channels, out_channels), jnp.float32)

    gamma1 = 1.0 + 0.05 * jax.random.normal(ks[2], (mid_channels,), jnp.float32)
    beta1 = 0.05 * jax.random.normal(ks[3], (mid_channels,), jnp.float32)
    mean1 = 0.1 * jax.random.normal(ks[4], (mid_channels,), jnp.float32)
    var1 = 1.0 + 0.2 * jax.random.uniform(ks[5], (mid_channels,), jnp.float32)

    gamma2 = 1.0 + 0.05 * jax.random.normal(ks[6], (out_channels,), jnp.float32)
    beta2 = 0.05 * jax.random.normal(ks[7], (out_channels,), jnp.float32)
    mean2 = 0.1 * jax.random.normal(ks[8], (out_channels,), jnp.float32)
    var2 = 1.0 + 0.2 * jax.random.uniform(ks[9], (out_channels,), jnp.float32)

    scale1 = gamma1 / jnp.sqrt(var1 + eps)
    bias1 = beta1 - mean1 * scale1
    scale2 = gamma2 / jnp.sqrt(var2 + eps)
    bias2 = beta2 - mean2 * scale2
    return dict(w1=w1, scale1=scale1, bias1=bias1,
                w2=w2, scale2=scale2, bias2=bias2)


# ---------------------------------------------------------------------------
# Public forward passes.
# ---------------------------------------------------------------------------
def double_conv_forward_nhwc(x_nhwc, params, tile_h=None):
    """Channels-last entry point: lets an NHWC caller skip both boundary
    transposes (they otherwise cost a full extra HBM round trip each)."""
    N, H, W, Cin = x_nhwc.shape
    Cmid = params["w1"].shape[-1]
    Cout = params["w2"].shape[-1]
    if tile_h is None:
        tile_h = _pick_tile_h(N, H, W, Cin, Cmid, Cout, _vmem_budget())
    # im2col weight layout: (dy, dx) major -> (9, Cin, Cout_stage), bf16 MXU operands
    w1 = params["w1"].reshape(9, Cin, Cmid).astype(jnp.bfloat16)
    w2 = params["w2"].reshape(9, Cmid, Cout).astype(jnp.bfloat16)
    return double_conv_nhwc(
        x_nhwc, w1, params["scale1"].reshape(1, -1), params["bias1"].reshape(1, -1),
        w2, params["scale2"].reshape(1, -1), params["bias2"].reshape(1, -1),
        tile_h=tile_h)


@functools.partial(jax.jit, static_argnames=("tile_h",))
def double_conv_forward(x_nchw, params, tile_h=None):
    # NCHW only at the PyTorch-shaped module boundary.
    # TODO(synk): callers that are already NHWC should use
    # double_conv_forward_nhwc directly and drop both transposes.
    x = jnp.transpose(x_nchw, (0, 2, 3, 1))
    y = double_conv_forward_nhwc(x, params, tile_h)
    return jnp.transpose(y, (0, 3, 1, 2))


# ---------------------------------------------------------------------------
# Pure-JAX reference (eval-mode BN folded the same way).
# ---------------------------------------------------------------------------
def _reference_forward(x_nchw, params):
    x = jnp.transpose(x_nchw, (0, 2, 3, 1))

    def block(y, w, s, b):
        y = jax.lax.conv_general_dilated(
            y, w, window_strides=(1, 1), padding=((1, 1), (1, 1)),
            dimension_numbers=("NHWC", "HWIO", "NHWC"))
        return jnp.maximum(y * s + b, 0.0)

    y = block(x, params["w1"], params["scale1"], params["bias1"])
    y = block(y, params["w2"], params["scale2"], params["bias2"])
    return jnp.transpose(y, (0, 3, 1, 2))


if __name__ == "__main__":
    key = jax.random.PRNGKey(0)
    kx, kp = jax.random.split(key)

    N, Cin, H, W = 2, 4, 16, 16
    Cout = 8
    x = jax.random.normal(kx, (N, Cin, H, W), jnp.float32)
    params = make_double_conv_params(kp, Cin, Cout)

    ref = _reference_forward(x, params)

    # Explicit tile_h=8 -> grid (2, 2): exercises the 2-row halo path.
    out_tiled = jax.block_until_ready(double_conv_forward(x, params, tile_h=8))
    # Auto tile selection: honest VMEM accounting + even parallel grid extent.
    out_auto = jax.block_until_ready(double_conv_forward(x, params))

    for out in (out_tiled, out_auto):
        assert out.shape == (N, Cout, H, W), out.shape
        assert bool(jnp.all(out >= 0.0))              # ReLU output is non-negative
        max_err = float(jnp.max(jnp.abs(out - ref)))
        assert max_err < 5e-2, f"max abs err vs reference: {max_err}"

    print("KERNEL_OK")
</pallas_src>

<mosaic_0001>
module attributes {stable_mosaic.version = 11 : i64} {
  func.func @kernel(%arg0: i32, %arg1: i32, %arg2: memref<1x8x16x4xf32, #tpu.memory_space<vmem>>, %arg3: memref<1x2x16x4xf32, #tpu.memory_space<vmem>>, %arg4: memref<1x2x16x4xf32, #tpu.memory_space<vmem>>, %arg5: memref<9x4x8xbf16, #tpu.memory_space<vmem>>, %arg6: memref<1x8xf32, #tpu.memory_space<vmem>>, %arg7: memref<1x8xf32, #tpu.memory_space<vmem>>, %arg8: memref<9x8x8xbf16, #tpu.memory_space<vmem>>, %arg9: memref<1x8xf32, #tpu.memory_space<vmem>>, %arg10: memref<1x8xf32, #tpu.memory_space<vmem>>, %arg11: memref<1x8x16x8xf32, #tpu.memory_space<vmem>>, %arg12: memref<12x18x4xbf16, #tpu.memory_space<vmem>>, %arg13: memref<10x18x8xbf16, #tpu.memory_space<vmem>>) attributes {dimension_semantics = [#tpu.dimension_semantics<parallel>, #tpu.dimension_semantics<parallel>], iteration_bounds = array<i64: 2, 2>, scalar_prefetch = 0 : i64, scratch_operands = 2 : i64, tpu.core_type = #tpu.core_type<tc>, window_params = [{transform_indices = @transform_0, window_bounds = array<i64: 1, 8, 16, 4>}, {transform_indices = @transform_1, window_bounds = array<i64: 1, 2, 16, 4>}, {transform_indices = @transform_2, window_bounds = array<i64: 1, 2, 16, 4>}, {pipeline_mode = #tpu.pipeline_mode<synchronous>, transform_indices = @transform_3, window_bounds = array<i64: 9, 4, 8>}, {pipeline_mode = #tpu.pipeline_mode<synchronous>, transform_indices = @transform_4, window_bounds = array<i64: 1, 8>}, {pipeline_mode = #tpu.pipeline_mode<synchronous>, transform_indices = @transform_5, window_bounds = array<i64: 1, 8>}, {pipeline_mode = #tpu.pipeline_mode<synchronous>, transform_indices = @transform_6, window_bounds = array<i64: 9, 8, 8>}, {pipeline_mode = #tpu.pipeline_mode<synchronous>, transform_indices = @transform_7, window_bounds = array<i64: 1, 8>}, {pipeline_mode = #tpu.pipeline_mode<synchronous>, transform_indices = @transform_8, window_bounds = array<i64: 1, 8>}, {transform_indices = @transform_9, window_bounds = array<i64: 1, 8, 16, 8>}]} {
    %cst = arith.constant 0.000000e+00 : bf16
    %0 = vector.broadcast %cst : bf16 to vector<12x1x4xbf16>
    %c0 = arith.constant 0 : index
    %c0_0 = arith.constant 0 : index
    %c0_1 = arith.constant 0 : index
    %1 = vector.load %arg12[%c0, %c0_0, %c0_1] : memref<12x18x4xbf16, #tpu.memory_space<vmem>>, vector<12x1x4xbf16>
    tpu.vector_store %arg12[%c0, %c0_0, %c0_1], %0 {strides = array<i32>} : memref<12x18x4xbf16, #tpu.memory_space<vmem>>, vector<12x1x4xbf16>,
    %cst_2 = arith.constant 0.000000e+00 : bf16
    %2 = vector.broadcast %cst_2 : bf16 to vector<12x1x4xbf16>
    %c0_3 = arith.constant 0 : index
    %c17 = arith.constant 17 : index
    %c0_4 = arith.constant 0 : index
    %3 = vector.load %arg12[%c0_3, %c17, %c0_4] : memref<12x18x4xbf16, #tpu.memory_space<vmem>>, vector<12x1x4xbf16>
    tpu.vector_store %arg12[%c0_3, %c17, %c0_4], %2 {strides = array<i32>} : memref<12x18x4xbf16, #tpu.memory_space<vmem>>, vector<12x1x4xbf16>,
    %c0_5 = arith.constant 0 : index
    %c0_6 = arith.constant 0 : index
    %c0_7 = arith.constant 0 : index
    %c0_8 = arith.constant 0 : index
    %4 = vector.load %arg2[%c0_5, %c0_6, %c0_7, %c0_8] : memref<1x8x16x4xf32, #tpu.memory_space<vmem>>, vector<1x8x16x4xf32>
    %5 = vector.shape_cast %4 : vector<1x8x16x4xf32> to vector<8x16x4xf32>
    %6 = arith.truncf %5 : vector<8x16x4xf32> to vector<8x16x4xbf16>
    %c2 = arith.constant 2 : index
    %c1 = arith.constant 1 : index
    %c0_9 = arith.constant 0 : index
    %7 = vector.load %arg12[%c2, %c1, %c0_9] : memref<12x18x4xbf16, #tpu.memory_space<vmem>>, vector<8x16x4xbf16>
    tpu.vector_store %arg12[%c2, %c1, %c0_9], %6 {strides = array<i32>} : memref<12x18x4xbf16, #tpu.memory_space<vmem>>, vector<8x16x4xbf16>,
    %c0_i32 = arith.constant 0 : i32
    %8 = arith.cmpi sgt, %arg1, %c0_i32 : i32
    %9 = arith.extui %8 : i1 to i32
    %c0_i32_10 = arith.constant 0 : i32
    %10 = arith.cmpi ne, %9, %c0_i32_10 : i32
    scf.if %10 {
      %c0_131 = arith.constant 0 : index
      %c0_132 = arith.constant 0 : index
      %c0_133 = arith.constant 0 : index
      %c0_134 = arith.constant 0 : index
      %165 = vector.load %arg3[%c0_131, %c0_132, %c0_133, %c0_134] : memref<1x2x16x4xf32, #tpu.memory_space<vmem>>, vector<1x2x16x4xf32>
      %166 = vector.shape_cast %165 : vector<1x2x16x4xf32> to vector<2x16x4xf32>
      %167 = arith.truncf %166 : vector<2x16x4xf32> to vector<2x16x4xbf16>
      %c0_135 = arith.constant 0 : index
      %c1_136 = arith.constant 1 : index
      %c0_137 = arith.constant 0 : index
      %168 = vector.load %arg12[%c0_135, %c1_136, %c0_137] : memref<12x18x4xbf16, #tpu.memory_space<vmem>>, vector<2x16x4xbf16>
      tpu.vector_store %arg12[%c0_135, %c1_136, %c0_137], %167 {strides = array<i32>} : memref<12x18x4xbf16, #tpu.memory_space<vmem>>, vector<2x16x4xbf16>,
    } else {
    }
    %c0_i32_11 = arith.constant 0 : i32
    %11 = arith.cmpi eq, %arg1, %c0_i32_11 : i32
    %12 = arith.extui %11 : i1 to i32
    %c0_i32_12 = arith.constant 0 : i32
    %13 = arith.cmpi ne, %12, %c0_i32_12 : i32
    scf.if %13 {
      %cst_131 = arith.constant 0.000000e+00 : bf16
      %165 = vector.broadcast %cst_131 : bf16 to vector<2x16x4xbf16>
      %c0_132 = arith.constant 0 : index
      %c1_133 = arith.constant 1 : index
      %c0_134 = arith.constant 0 : index
      %166 = vector.load %arg12[%c0_132, %c1_133, %c0_134] : memref<12x18x4xbf16, #tpu.memory_space<vmem>>, vector<2x16x4xbf16>
      tpu.vector_store %arg12[%c0_132, %c1_133, %c0_134], %165 {strides = array<i32>} : memref<12x18x4xbf16, #tpu.memory_space<vmem>>, vector<2x16x4xbf16>,
    } else {
    }
    %c1_i32 = arith.constant 1 : i32
    %14 = arith.cmpi slt, %arg1, %c1_i32 : i32
    %15 = arith.extui %14 : i1 to i32
    %c0_i32_13 = arith.constant 0 : i32
    %16 = arith.cmpi ne, %15, %c0_i32_13 : i32
    scf.if %16 {
      %c0_131 = arith.constant 0 : index
      %c0_132 = arith.constant 0 : index
      %c0_133 = arith.constant 0 : index
      %c0_134 = arith.constant 0 : index
      %165 = vector.load %arg4[%c0_131, %c0_132, %c0_133, %c0_134] : memref<1x2x16x4xf32, #tpu.memory_space<vmem>>, vector<1x2x16x4xf32>
      %166 = vector.shape_cast %165 : vector<1x2x16x4xf32> to vector<2x16x4xf32>
      %167 = arith.truncf %166 : vector<2x16x4xf32> to vector<2x16x4xbf16>
      %c10 = arith.constant 10 : index
      %c1_135 = arith.constant 1 : index
      %c0_136 = arith.constant 0 : index
      %168 = vector.load %arg12[%c10, %c1_135, %c0_136] : memref<12x18x4xbf16, #tpu.memory_space<vmem>>, vector<2x16x4xbf16>
      tpu.vector_store %arg12[%c10, %c1_135, %c0_136], %167 {strides = array<i32>} : memref<12x18x4xbf16, #tpu.memory_space<vmem>>, vector<2x16x4xbf16>,
    } else {
    }
    %c1_i32_14 = arith.constant 1 : i32
    %17 = arith.cmpi eq, %arg1, %c1_i32_14 : i32
    %18 = arith.extui %17 : i1 to i32
    %c0_i32_15 = arith.constant 0 : i32
    %19 = arith.cmpi ne, %18, %c0_i32_15 : i32
    scf.if %19 {
      %cst_131 = arith.constant 0.000000e+00 : bf16
      %165 = vector.broadcast %cst_131 : bf16 to vector<2x16x4xbf16>
      %c10 = arith.constant 10 : index
      %c1_132 = arith.constant 1 : index
      %c0_133 = arith.constant 0 : index
      %166 = vector.load %arg12[%c10, %c1_132, %c0_133] : memref<12x18x4xbf16, #tpu.memory_space<vmem>>, vector<2x16x4xbf16>
      tpu.vector_store %arg12[%c10, %c1_132, %c0_133], %165 {strides = array<i32>} : memref<12x18x4xbf16, #tpu.memory_space<vmem>>, vector<2x16x4xbf16>,
    } else {
    }
    %c0_16 = arith.constant 0 : index
    %c0_17 = arith.constant 0 : index
    %c0_18 = arith.constant 0 : index
    %20 = vector.load %arg12[%c0_16, %c0_17, %c0_18] : memref<12x18x4xbf16, #tpu.memory_space<vmem>>, vector<12x16x4xbf16>
    %21 = vector.shape_cast %20 : vector<12x16x4xbf16> to vector<192x4xbf16>
    %c0_19 = arith.constant 0 : index
    %c1_20 = arith.constant 1 : index
    %c0_21 = arith.constant 0 : index
    %22 = vector.load %arg12[%c0_19, %c1_20, %c0_21] : memref<12x18x4xbf16, #tpu.memory_space<vmem>>, vector<12x16x4xbf16>
    %23 = vector.shape_cast %22 : vector<12x16x4xbf16> to vector<192x4xbf16>
    %c0_22 = arith.constant 0 : index
    %c2_23 = arith.constant 2 : index
    %c0_24 = arith.constant 0 : index
    %24 = vector.load %arg12[%c0_22, %c2_23, %c0_24] : memref<12x18x4xbf16, #tpu.memory_space<vmem>>, vector<12x16x4xbf16>
    %25 = vector.shape_cast %24 : vector<12x16x4xbf16> to vector<192x4xbf16>
    %cst_25 = arith.constant 0.000000e+00 : f32
    %26 = vector.broadcast %cst_25 : f32 to vector<160x8xf32>
    %27 = vector.extract_strided_slice %21 {offsets = [0, 0], sizes = [160, 4], strides = [1, 1]} : vector<192x4xbf16> to vector<160x4xbf16>
    %c0_26 = arith.constant 0 : index
    %c0_27 = arith.constant 0 : index
    %c0_28 = arith.constant 0 : index
    %28 = vector.load %arg5[%c0_26, %c0_27, %c0_28] : memref<9x4x8xbf16, #tpu.memory_space<vmem>>, vector<1x4x8xbf16>
    %29 = vector.shape_cast %28 : vector<1x4x8xbf16> to vector<4x8xbf16>
    %cst_29 = arith.constant dense<0.000000e+00> : vector<160x8xf32>
    %30 = tpu.matmul %27, %29, %cst_29 {dimension_numbers = #tpu.dot_dimension_numbers<[1], [0], [0], [1], [0, 0, 1, 1], [], []>} : vector<160x4xbf16>, vector<4x8xbf16>, vector<160x8xf32> -> vector<160x8xf32>
    %31 = arith.addf %26, %30 : vector<160x8xf32>
    %32 = vector.extract_strided_slice %23 {offsets = [0, 0], sizes = [160, 4], strides = [1, 1]} : vector<192x4xbf16> to vector<160x4xbf16>
    %c1_30 = arith.constant 1 : index
    %c0_31 = arith.constant 0 : index
    %c0_32 = arith.constant 0 : index
    %33 = vector.load %arg5[%c1_30, %c0_31, %c0_32] : memref<9x4x8xbf16, #tpu.memory_space<vmem>>, vector<1x4x8xbf16>
    %34 = vector.shape_cast %33 : vector<1x4x8xbf16> to vector<4x8xbf16>
    %cst_33 = arith.constant dense<0.000000e+00> : vector<160x8xf32>
    %35 = tpu.matmul %32, %34, %cst_33 {dimension_numbers = #tpu.dot_dimension_numbers<[1], [0], [0], [1], [0, 0, 1, 1], [], []>} : vector<160x4xbf16>, vector<4x8xbf16>, vector<160x8xf32> -> vector<160x8xf32>
    %36 = arith.addf %31, %35 : vector<160x8xf32>
    %37 = vector.extract_strided_slice %25 {offsets = [0, 0], sizes = [160, 4], strides = [1, 1]} : vector<192x4xbf16> to vector<160x4xbf16>
    %c2_34 = arith.constant 2 : index
    %c0_35 = arith.constant 0 : index
    %c0_36 = arith.constant 0 : index
    %38 = vector.load %arg5[%c2_34, %c0_35, %c0_36] : memref<9x4x8xbf16, #tpu.memory_space<vmem>>, vector<1x4x8xbf16>
    %39 = vector.shape_cast %38 : vector<1x4x8xbf16> to vector<4x8xbf16>
    %cst_37 = arith.constant dense<0.000000e+00> : vector<160x8xf32>
    %40 = tpu.matmul %37, %39, %cst_37 {dimension_numbers = #tpu.dot_dimension_numbers<[1], [0], [0], [1], [0, 0, 1, 1], [], []>} : vector<160x4xbf16>, vector<4x8xbf16>, vector<160x8xf32> -> vector<160x8xf32>
    %41 = arith.addf %36, %40 : vector<160x8xf32>
    %42 = vector.extract_strided_slice %21 {offsets = [16, 0], sizes = [160, 4], strides = [1, 1]} : vector<192x4xbf16> to vector<160x4xbf16>
    %c3 = arith.constant 3 : index
    %c0_38 = arith.constant 0 : index
    %c0_39 = arith.constant 0 : index
    %43 = vector.load %arg5[%c3, %c0_38, %c0_39] : memref<9x4x8xbf16, #tpu.memory_space<vmem>>, vector<1x4x8xbf16>
    %44 = vector.shape_cast %43 : vector<1x4x8xbf16> to vector<4x8xbf16>
    %cst_40 = arith.constant dense<0.000000e+00> : vector<160x8xf32>
    %45 = tpu.matmul %42, %44, %cst_40 {dimension_numbers = #tpu.dot_dimension_numbers<[1], [0], [0], [1], [0, 0, 1, 1], [], []>} : vector<160x4xbf16>, vector<4x8xbf16>, vector<160x8xf32> -> vector<160x8xf32>
    %46 = arith.addf %41, %45 : vector<160x8xf32>
    %47 = vector.extract_strided_slice %23 {offsets = [16, 0], sizes = [160, 4], strides = [1, 1]} : vector<192x4xbf16> to vector<160x4xbf16>
    %c4 = arith.constant 4 : index
    %c0_41 = arith.constant 0 : index
    %c0_42 = arith.constant 0 : index
    %48 = vector.load %arg5[%c4, %c0_41, %c0_42] : memref<9x4x8xbf16, #tpu.memory_space<vmem>>, vector<1x4x8xbf16>
    %49 = vector.shape_cast %48 : vector<1x4x8xbf16> to vector<4x8xbf16>
    %cst_43 = arith.constant dense<0.000000e+00> : vector<160x8xf32>
    %50 = tpu.matmul %47, %49, %cst_43 {dimension_numbers = #tpu.dot_dimension_numbers<[1], [0], [0], [1], [0, 0, 1, 1], [], []>} : vector<160x4xbf16>, vector<4x8xbf16>, vector<160x8xf32> -> vector<160x8xf32>
    %51 = arith.addf %46, %50 : vector<160x8xf32>
    %52 = vector.extract_strided_slice %25 {offsets = [16, 0], sizes = [160, 4], strides = [1, 1]} : vector<192x4xbf16> to vector<160x4xbf16>
    %c5 = arith.constant 5 : index
    %c0_44 = arith.constant 0 : index
    %c0_45 = arith.constant 0 : index
    %53 = vector.load %arg5[%c5, %c0_44, %c0_45] : memref<9x4x8xbf16, #tpu.memory_space<vmem>>, vector<1x4x8xbf16>
    %54 = vector.shape_cast %53 : vector<1x4x8xbf16> to vector<4x8xbf16>
    %cst_46 = arith.constant dense<0.000000e+00> : vector<160x8xf32>
    %55 = tpu.matmul %52, %54, %cst_46 {dimension_numbers = #tpu.dot_dimension_numbers<[1], [0], [0], [1], [0, 0, 1, 1], [], []>} : vector<160x4xbf16>, vector<4x8xbf16>, vector<160x8xf32> -> vector<160x8xf32>
    %56 = arith.addf %51, %55 : vector<160x8xf32>
    %57 = vector.extract_strided_slice %21 {offsets = [32, 0], sizes = [160, 4], strides = [1, 1]} : vector<192x4xbf16> to vector<160x4xbf16>
    %c6 = arith.constant 6 : index
    %c0_47 = arith.constant 0 : index
    %c0_48 = arith.constant 0 : index
    %58 = vector.load %arg5[%c6, %c0_47, %c0_48] : memref<9x4x8xbf16, #tpu.memory_space<vmem>>, vector<1x4x8xbf16>
    %59 = vector.shape_cast %58 : vector<1x4x8xbf16> to vector<4x8xbf16>
    %cst_49 = arith.constant dense<0.000000e+00> : vector<160x8xf32>
    %60 = tpu.matmul %57, %59, %cst_49 {dimension_numbers = #tpu.dot_dimension_numbers<[1], [0], [0], [1], [0, 0, 1, 1], [], []>} : vector<160x4xbf16>, vector<4x8xbf16>, vector<160x8xf32> -> vector<160x8xf32>
    %61 = arith.addf %56, %60 : vector<160x8xf32>
    %62 = vector.extract_strided_slice %23 {offsets = [32, 0], sizes = [160, 4], strides = [1, 1]} : vector<192x4xbf16> to vector<160x4xbf16>
    %c7 = arith.constant 7 : index
    %c0_50 = arith.constant 0 : index
    %c0_51 = arith.constant 0 : index
    %63 = vector.load %arg5[%c7, %c0_50, %c0_51] : memref<9x4x8xbf16, #tpu.memory_space<vmem>>, vector<1x4x8xbf16>
    %64 = vector.shape_cast %63 : vector<1x4x8xbf16> to vector<4x8xbf16>
    %cst_52 = arith.constant dense<0.000000e+00> : vector<160x8xf32>
    %65 = tpu.matmul %62, %64, %cst_52 {dimension_numbers = #tpu.dot_dimension_numbers<[1], [0], [0], [1], [0, 0, 1, 1], [], []>} : vector<160x4xbf16>, vector<4x8xbf16>, vector<160x8xf32> -> vector<160x8xf32>
    %66 = arith.addf %61, %65 : vector<160x8xf32>
    %67 = vector.extract_strided_slice %25 {offsets = [32, 0], sizes = [160, 4], strides = [1, 1]} : vector<192x4xbf16> to vector<160x4xbf16>
    %c8 = arith.constant 8 : index
    %c0_53 = arith.constant 0 : index
    %c0_54 = arith.constant 0 : index
    %68 = vector.load %arg5[%c8, %c0_53, %c0_54] : memref<9x4x8xbf16, #tpu.memory_space<vmem>>, vector<1x4x8xbf16>
    %69 = vector.shape_cast %68 : vector<1x4x8xbf16> to vector<4x8xbf16>
    %cst_55 = arith.constant dense<0.000000e+00> : vector<160x8xf32>
    %70 = tpu.matmul %67, %69, %cst_55 {dimension_numbers = #tpu.dot_dimension_numbers<[1], [0], [0], [1], [0, 0, 1, 1], [], []>} : vector<160x4xbf16>, vector<4x8xbf16>, vector<160x8xf32> -> vector<160x8xf32>
    %71 = arith.addf %66, %70 : vector<160x8xf32>
    %c0_56 = arith.constant 0 : index
    %c0_57 = arith.constant 0 : index
    %72 = vector.load %arg6[%c0_56, %c0_57] : memref<1x8xf32, #tpu.memory_space<vmem>>, vector<1x8xf32>
    %73 = vector.shape_cast %72 : vector<1x8xf32> to vector<8xf32>
    %74 = vector.shape_cast %73 : vector<8xf32> to vector<1x8xf32>
    %75 = vector.broadcast %74 : vector<1x8xf32> to vector<160x8xf32>
    %76 = arith.mulf %71, %75 : vector<160x8xf32>
    %c0_58 = arith.constant 0 : index
    %c0_59 = arith.constant 0 : index
    %77 = vector.load %arg7[%c0_58, %c0_59] : memref<1x8xf32, #tpu.memory_space<vmem>>, vector<1x8xf32>
    %78 = vector.shape_cast %77 : vector<1x8xf32> to vector<8xf32>
    %79 = vector.shape_cast %78 : vector<8xf32> to vector<1x8xf32>
    %80 = vector.broadcast %79 : vector<1x8xf32> to vector<160x8xf32>
    %81 = arith.addf %76, %80 : vector<160x8xf32>
    %cst_60 = arith.constant 0.000000e+00 : f32
    %82 = vector.broadcast %cst_60 : f32 to vector<160x8xf32>
    %83 = arith.maximumf %81, %82 : vector<160x8xf32>
    %cst_61 = arith.constant 0.000000e+00 : bf16
    %84 = vector.broadcast %cst_61 : bf16 to vector<10x1x8xbf16>
    %c0_62 = arith.constant 0 : index
    %c0_63 = arith.constant 0 : index
    %c0_64 = arith.constant 0 : index
    %85 = vector.load %arg13[%c0_62, %c0_63, %c0_64] : memref<10x18x8xbf16, #tpu.memory_space<vmem>>, vector<10x1x8xbf16>
    tpu.vector_store %arg13[%c0_62, %c0_63, %c0_64], %84 {strides = array<i32>} : memref<10x18x8xbf16, #tpu.memory_space<vmem>>, vector<10x1x8xbf16>,
    %cst_65 = arith.constant 0.000000e+00 : bf16
    %86 = vector.broadcast %cst_65 : bf16 to vector<10x1x8xbf16>
    %c0_66 = arith.constant 0 : index
    %c17_67 = arith.constant 17 : index
    %c0_68 = arith.constant 0 : index
    %87 = vector.load %arg13[%c0_66, %c17_67, %c0_68] : memref<10x18x8xbf16, #tpu.memory_space<vmem>>, vector<10x1x8xbf16>
    tpu.vector_store %arg13[%c0_66, %c17_67, %c0_68], %86 {strides = array<i32>} : memref<10x18x8xbf16, #tpu.memory_space<vmem>>, vector<10x1x8xbf16>,
    %88 = vector.shape_cast %83 : vector<160x8xf32> to vector<10x16x8xf32>
    %89 = arith.truncf %88 : vector<10x16x8xf32> to vector<10x16x8xbf16>
    %c0_69 = arith.constant 0 : index
    %c1_70 = arith.constant 1 : index
    %c0_71 = arith.constant 0 : index
    %90 = vector.load %arg13[%c0_69, %c1_70, %c0_71] : memref<10x18x8xbf16, #tpu.memory_space<vmem>>, vector<10x16x8xbf16>
    tpu.vector_store %arg13[%c0_69, %c1_70, %c0_71], %89 {strides = array<i32>} : memref<10x18x8xbf16, #tpu.memory_space<vmem>>, vector<10x16x8xbf16>,
    %c0_i32_72 = arith.constant 0 : i32
    %91 = arith.cmpi eq, %arg1, %c0_i32_72 : i32
    %92 = arith.extui %91 : i1 to i32
    %c0_i32_73 = arith.constant 0 : i32
    %93 = arith.cmpi ne, %92, %c0_i32_73 : i32
    scf.if %93 {
      %cst_131 = arith.constant 0.000000e+00 : bf16
      %165 = vector.broadcast %cst_131 : bf16 to vector<1x16x8xbf16>
      %c0_132 = arith.constant 0 : index
      %c1_133 = arith.constant 1 : index
      %c0_134 = arith.constant 0 : index
      %166 = vector.load %arg13[%c0_132, %c1_133, %c0_134] : memref<10x18x8xbf16, #tpu.memory_space<vmem>>, vector<1x16x8xbf16>
      tpu.vector_store %arg13[%c0_132, %c1_133, %c0_134], %165 {strides = array<i32>} : memref<10x18x8xbf16, #tpu.memory_space<vmem>>, vector<1x16x8xbf16>,
    } else {
    }
    %c1_i32_74 = arith.constant 1 : i32
    %94 = arith.cmpi eq, %arg1, %c1_i32_74 : i32
    %95 = arith.extui %94 : i1 to i32
    %c0_i32_75 = arith.constant 0 : i32
    %96 = arith.cmpi ne, %95, %c0_i32_75 : i32
    scf.if %96 {
      %cst_131 = arith.constant 0.000000e+00 : bf16
      %165 = vector.broadcast %cst_131 : bf16 to vector<1x16x8xbf16>
      %c9 = arith.constant 9 : index
      %c1_132 = arith.constant 1 : index
      %c0_133 = arith.constant 0 : index
      %166 = vector.load %arg13[%c9, %c1_132, %c0_133] : memref<10x18x8xbf16, #tpu.memory_space<vmem>>, vector<1x16x8xbf16>
      tpu.vector_store %arg13[%c9, %c1_132, %c0_133], %165 {strides = array<i32>} : memref<10x18x8xbf16, #tpu.memory_space<vmem>>, vector<1x16x8xbf16>,
    } else {
    }
    %c0_76 = arith.constant 0 : index
    %c0_77 = arith.constant 0 : index
    %c0_78 = arith.constant 0 : index
    %97 = vector.load %arg13[%c0_76, %c0_77, %c0_78] : memref<10x18x8xbf16, #tpu.memory_space<vmem>>, vector<10x16x8xbf16>
    %98 = vector.shape_cast %97 : vector<10x16x8xbf16> to vector<160x8xbf16>
    %c0_79 = arith.constant 0 : index
    %c1_80 = arith.constant 1 : index
    %c0_81 = arith.constant 0 : index
    %99 = vector.load %arg13[%c0_79, %c1_80, %c0_81] : memref<10x18x8xbf16, #tpu.memory_space<vmem>>, vector<10x16x8xbf16>
    %100 = vector.shape_cast %99 : vector<10x16x8xbf16> to vector<160x8xbf16>
    %c0_82 = arith.constant 0 : index
    %c2_83 = arith.constant 2 : index
    %c0_84 = arith.constant 0 : index
    %101 = vector.load %arg13[%c0_82, %c2_83, %c0_84] : memref<10x18x8xbf16, #tpu.memory_space<vmem>>, vector<10x16x8xbf16>
    %102 = vector.shape_cast %101 : vector<10x16x8xbf16> to vector<160x8xbf16>
    %cst_85 = arith.constant 0.000000e+00 : f32
    %103 = vector.broadcast %cst_85 : f32 to vector<128x8xf32>
    %104 = vector.extract_strided_slice %98 {offsets = [0, 0], sizes = [128, 8], strides = [1, 1]} : vector<160x8xbf16> to vector<128x8xbf16>
    %c0_86 = arith.constant 0 : index
    %c0_87 = arith.constant 0 : index
    %c0_88 = arith.constant 0 : index
    %105 = vector.load %arg8[%c0_86, %c0_87, %c0_88] : memref<9x8x8xbf16, #tpu.memory_space<vmem>>, vector<1x8x8xbf16>
    %106 = vector.shape_cast %105 : vector<1x8x8xbf16> to vector<8x8xbf16>
    %cst_89 = arith.constant dense<0.000000e+00> : vector<128x8xf32>
    %107 = tpu.matmul %104, %106, %cst_89 {dimension_numbers = #tpu.dot_dimension_numbers<[1], [0], [0], [1], [0, 0, 1, 1], [], []>} : vector<128x8xbf16>, vector<8x8xbf16>, vector<128x8xf32> -> vector<128x8xf32>
    %108 = arith.addf %103, %107 : vector<128x8xf32>
    %109 = vector.extract_strided_slice %100 {offsets = [0, 0], sizes = [128, 8], strides = [1, 1]} : vector<160x8xbf16> to vector<128x8xbf16>
    %c1_90 = arith.constant 1 : index
    %c0_91 = arith.constant 0 : index
    %c0_92 = arith.constant 0 : index
    %110 = vector.load %arg8[%c1_90, %c0_91, %c0_92] : memref<9x8x8xbf16, #tpu.memory_space<vmem>>, vector<1x8x8xbf16>
    %111 = vector.shape_cast %110 : vector<1x8x8xbf16> to vector<8x8xbf16>
    %cst_93 = arith.constant dense<0.000000e+00> : vector<128x8xf32>
    %112 = tpu.matmul %109, %111, %cst_93 {dimension_numbers = #tpu.dot_dimension_numbers<[1], [0], [0], [1], [0, 0, 1, 1], [], []>} : vector<128x8xbf16>, vector<8x8xbf16>, vector<128x8xf32> -> vector<128x8xf32>
    %113 = arith.addf %108, %112 : vector<128x8xf32>
    %114 = vector.extract_strided_slice %102 {offsets = [0, 0], sizes = [128, 8], strides = [1, 1]} : vector<160x8xbf16> to vector<128x8xbf16>
    %c2_94 = arith.constant 2 : index
    %c0_95 = arith.constant 0 : index
    %c0_96 = arith.constant 0 : index
    %115 = vector.load %arg8[%c2_94, %c0_95, %c0_96] : memref<9x8x8xbf16, #tpu.memory_space<vmem>>, vector<1x8x8xbf16>
    %116 = vector.shape_cast %115 : vector<1x8x8xbf16> to vector<8x8xbf16>
    %cst_97 = arith.constant dense<0.000000e+00> : vector<128x8xf32>
    %117 = tpu.matmul %114, %116, %cst_97 {dimension_numbers = #tpu.dot_dimension_numbers<[1], [0], [0], [1], [0, 0, 1, 1], [], []>} : vector<128x8xbf16>, vector<8x8xbf16>, vector<128x8xf32> -> vector<128x8xf32>
    %118 = arith.addf %113, %117 : vector<128x8xf32>
    %119 = vector.extract_strided_slice %98 {offsets = [16, 0], sizes = [128, 8], strides = [1, 1]} : vector<160x8xbf16> to vector<128x8xbf16>
    %c3_98 = arith.constant 3 : index
    %c0_99 = arith.constant 0 : index
    %c0_100 = arith.constant 0 : index
    %120 = vector.load %arg8[%c3_98, %c0_99, %c0_100] : memref<9x8x8xbf16, #tpu.memory_space<vmem>>, vector<1x8x8xbf16>
    %121 = vector.shape_cast %120 : vector<1x8x8xbf16> to vector<8x8xbf16>
    %cst_101 = arith.constant dense<0.000000e+00> : vector<128x8xf32>
    %122 = tpu.matmul %119, %121, %cst_101 {dimension_numbers = #tpu.dot_dimension_numbers<[1], [0], [0], [1], [0, 0, 1, 1], [], []>} : vector<128x8xbf16>, vector<8x8xbf16>, vector<128x8xf32> -> vector<128x8xf32>
    %123 = arith.addf %118, %122 : vector<128x8xf32>
    %124 = vector.extract_strided_slice %100 {offsets = [16, 0], sizes = [128, 8], strides = [1, 1]} : vector<160x8xbf16> to vector<128x8xbf16>
    %c4_102 = arith.constant 4 : index
    %c0_103 = arith.constant 0 : index
    %c0_104 = arith.constant 0 : index
    %125 = vector.load %arg8[%c4_102, %c0_103, %c0_104] : memref<9x8x8xbf16, #tpu.memory_space<vmem>>, vector<1x8x8xbf16>
    %126 = vector.shape_cast %125 : vector<1x8x8xbf16> to vector<8x8xbf16>
    %cst_105 = arith.constant dense<0.000000e+00> : vector<128x8xf32>
    %127 = tpu.matmul %124, %126, %cst_105 {dimension_numbers = #tpu.dot_dimension_numbers<[1], [0], [0], [1], [0, 0, 1, 1], [], []>} : vector<128x8xbf16>, vector<8x8xbf16>, vector<128x8xf32> -> vector<128x8xf32>
    %128 = arith.addf %123, %127 : vector<128x8xf32>
    %129 = vector.extract_strided_slice %102 {offsets = [16, 0], sizes = [128, 8], strides = [1, 1]} : vector<160x8xbf16> to vector<128x8xbf16>
    %c5_106 = arith.constant 5 : index
    %c0_107 = arith.constant 0 : index
    %c0_108 = arith.constant 0 : index
    %130 = vector.load %arg8[%c5_106, %c0_107, %c0_108] : memref<9x8x8xbf16, #tpu.memory_space<vmem>>, vector<1x8x8xbf16>
    %131 = vector.shape_cast %130 : vector<1x8x8xbf16> to vector<8x8xbf16>
    %cst_109 = arith.constant dense<0.000000e+00> : vector<128x8xf32>
    %132 = tpu.matmul %129, %131, %cst_109 {dimension_numbers = #tpu.dot_dimension_numbers<[1], [0], [0], [1], [0, 0, 1, 1], [], []>} : vector<128x8xbf16>, vector<8x8xbf16>, vector<128x8xf32> -> vector<128x8xf32>
    %133 = arith.addf %128, %132 : vector<128x8xf32>
    %134 = vector.extract_strided_slice %98 {offsets = [32, 0], sizes = [128, 8], strides = [1, 1]} : vector<160x8xbf16> to vector<128x8xbf16>
    %c6_110 = arith.constant 6 : index
    %c0_111 = arith.constant 0 : index
    %c0_112 = arith.constant 0 : index
    %135 = vector.load %arg8[%c6_110, %c0_111, %c0_112] : memref<9x8x8xbf16, #tpu.memory_space<vmem>>, vector<1x8x8xbf16>
    %136 = vector.shape_cast %135 : vector<1x8x8xbf16> to vector<8x8xbf16>
    %cst_113 = arith.constant dense<0.000000e+00> : vector<128x8xf32>
    %137 = tpu.matmul %134, %136, %cst_113 {dimension_numbers = #tpu.dot_dimension_numbers<[1], [0], [0], [1], [0, 0, 1, 1], [], []>} : vector<128x8xbf16>, vector<8x8xbf16>, vector<128x8xf32> -> vector<128x8xf32>
    %138 = arith.addf %133, %137 : vector<128x8xf32>
    %139 = vector.extract_strided_slice %100 {offsets = [32, 0], sizes = [128, 8], strides = [1, 1]} : vector<160x8xbf16> to vector<128x8xbf16>
    %c7_114 = arith.constant 7 : index
    %c0_115 = arith.constant 0 : index
    %c0_116 = arith.constant 0 : index
    %140 = vector.load %arg8[%c7_114, %c0_115, %c0_116] : memref<9x8x8xbf16, #tpu.memory_space<vmem>>, vector<1x8x8xbf16>
    %141 = vector.shape_cast %140 : vector<1x8x8xbf16> to vector<8x8xbf16>
    %cst_117 = arith.constant dense<0.000000e+00> : vector<128x8xf32>
    %142 = tpu.matmul %139, %141, %cst_117 {dimension_numbers = #tpu.dot_dimension_numbers<[1], [0], [0], [1], [0, 0, 1, 1], [], []>} : vector<128x8xbf16>, vector<8x8xbf16>, vector<128x8xf32> -> vector<128x8xf32>
    %143 = arith.addf %138, %142 : vector<128x8xf32>
    %144 = vector.extract_strided_slice %102 {offsets = [32, 0], sizes = [128, 8], strides = [1, 1]} : vector<160x8xbf16> to vector<128x8xbf16>
    %c8_118 = arith.constant 8 : index
    %c0_119 = arith.constant 0 : index
    %c0_120 = arith.constant 0 : index
    %145 = vector.load %arg8[%c8_118, %c0_119, %c0_120] : memref<9x8x8xbf16, #tpu.memory_space<vmem>>, vector<1x8x8xbf16>
    %146 = vector.shape_cast %145 : vector<1x8x8xbf16> to vector<8x8xbf16>
    %cst_121 = arith.constant dense<0.000000e+00> : vector<128x8xf32>
    %147 = tpu.matmul %144, %146, %cst_121 {dimension_numbers = #tpu.dot_dimension_numbers<[1], [0], [0], [1], [0, 0, 1, 1], [], []>} : vector<128x8xbf16>, vector<8x8xbf16>, vector<128x8xf32> -> vector<128x8xf32>
    %148 = arith.addf %143, %147 : vector<128x8xf32>
    %c0_122 = arith.constant 0 : index
    %c0_123 = arith.constant 0 : index
    %149 = vector.load %arg9[%c0_122, %c0_123] : memref<1x8xf32, #tpu.memory_space<vmem>>, vector<1x8xf32>
    %150 = vector.shape_cast %149 : vector<1x8xf32> to vector<8xf32>
    %151 = vector.shape_cast %150 : vector<8xf32> to vector<1x8xf32>
    %152 = vector.broadcast %151 : vector<1x8xf32> to vector<128x8xf32>
    %153 = arith.mulf %148, %152 : vector<128x8xf32>
    %c0_124 = arith.constant 0 : index
    %c0_125 = arith.constant 0 : index
    %154 = vector.load %arg10[%c0_124, %c0_125] : memref<1x8xf32, #tpu.memory_space<vmem>>, vector<1x8xf32>
    %155 = vector.shape_cast %154 : vector<1x8xf32> to vector<8xf32>
    %156 = vector.shape_cast %155 : vector<8xf32> to vector<1x8xf32>
    %157 = vector.broadcast %156 : vector<1x8xf32> to vector<128x8xf32>
    %158 = arith.addf %153, %157 : vector<128x8xf32>
    %cst_126 = arith.constant 0.000000e+00 : f32
    %159 = vector.broadcast %cst_126 : f32 to vector<128x8xf32>
    %160 = arith.maximumf %158, %159 : vector<128x8xf32>
    %161 = vector.shape_cast %160 : vector<128x8xf32> to vector<8x16x8xf32>
    %c0_127 = arith.constant 0 : index
    %c0_128 = arith.constant 0 : index
    %c0_129 = arith.constant 0 : index
    %c0_130 = arith.constant 0 : index
    %162 = vector.load %arg11[%c0_127, %c0_128, %c0_129, %c0_130] : memref<1x8x16x8xf32, #tpu.memory_space<vmem>>, vector<1x8x16x8xf32>
    %163 = vector.shape_cast %162 : vector<1x8x16x8xf32> to vector<8x16x8xf32>
    %164 = vector.shape_cast %161 : vector<8x16x8xf32> to vector<1x8x16x8xf32>
    tpu.vector_store %arg11[%c0_127, %c0_128, %c0_129, %c0_130], %164 {strides = array<i32>} : memref<1x8x16x8xf32, #tpu.memory_space<vmem>>, vector<1x8x16x8xf32>,
    return
  }
  func.func @transform_0(%arg0: i32, %arg1: i32) -> (i32, i32, i32, i32) {
    %c0_i32 = arith.constant 0 : i32
    %c0_i32_0 = arith.constant 0 : i32
    %c0_i32_1 = arith.constant 0 : i32
    return %arg0, %arg1, %c0_i32, %c0_i32_0 : i32, i32, i32, i32
  }
  func.func @transform_1(%arg0: i32, %arg1: i32) -> (i32, i32, i32, i32) {
    %c4_i32 = arith.constant 4 : i32
    %0 = arith.muli %arg1, %c4_i32 : i32
    %c1_i32 = arith.constant 1 : i32
    %1 = arith.subi %0, %c1_i32 : i32
    %c0_i32 = arith.constant 0 : i32
    %2 = arith.maxsi %1, %c0_i32 : i32
    %c0_i32_0 = arith.constant 0 : i32
    %c0_i32_1 = arith.constant 0 : i32
    %c0_i32_2 = arith.constant 0 : i32
    return %arg0, %2, %c0_i32_0, %c0_i32_1 : i32, i32, i32, i32
  }
  func.func @transform_2(%arg0: i32, %arg1: i32) -> (i32, i32, i32, i32) {
    %c1_i32 = arith.constant 1 : i32
    %0 = arith.addi %arg1, %c1_i32 : i32
    %c4_i32 = arith.constant 4 : i32
    %1 = arith.muli %0, %c4_i32 : i32
    %c7_i32 = arith.constant 7 : i32
    %2 = arith.minsi %1, %c7_i32 : i32
    %c0_i32 = arith.constant 0 : i32
    %c0_i32_0 = arith.constant 0 : i32
    %c0_i32_1 = arith.constant 0 : i32
    return %arg0, %2, %c0_i32, %c0_i32_0 : i32, i32, i32, i32
  }
  func.func @transform_3(%arg0: i32, %arg1: i32) -> (i32, i32, i32) {
    %c0_i32 = arith.constant 0 : i32
    %c0_i32_0 = arith.constant 0 : i32
    %c0_i32_1 = arith.constant 0 : i32
    %c0_i32_2 = arith.constant 0 : i32
    return %c0_i32, %c0_i32_0, %c0_i32_1 : i32, i32, i32
  }
  func.func @transform_4(%arg0: i32, %arg1: i32) -> (i32, i32) {
    %c0_i32 = arith.constant 0 : i32
    %c0_i32_0 = arith.constant 0 : i32
    %c0_i32_1 = arith.constant 0 : i32
    return %c0_i32, %c0_i32_0 : i32, i32
  }
  func.func @transform_5(%arg0: i32, %arg1: i32) -> (i32, i32) {
    %c0_i32 = arith.constant 0 : i32
    %c0_i32_0 = arith.constant 0 : i32
    %c0_i32_1 = arith.constant 0 : i32
    return %c0_i32, %c0_i32_0 : i32, i32
  }
  func.func @transform_6(%arg0: i32, %arg1: i32) -> (i32, i32, i32) {
    %c0_i32 = arith.constant 0 : i32
    %c0_i32_0 = arith.constant 0 : i32
    %c0_i32_1 = arith.constant 0 : i32
    %c0_i32_2 = arith.constant 0 : i32
    return %c0_i32, %c0_i32_0, %c0_i32_1 : i32, i32, i32
  }
  func.func @transform_7(%arg0: i32, %arg1: i32) -> (i32, i32) {
    %c0_i32 = arith.constant 0 : i32
    %c0_i32_0 = arith.constant 0 : i32
    %c0_i32_1 = arith.constant 0 : i32
    return %c0_i32, %c0_i32_0 : i32, i32
  }
  func.func @transform_8(%arg0: i32, %arg1: i32) -> (i32, i32) {
    %c0_i32 = arith.constant 0 : i32
    %c0_i32_0 = arith.constant 0 : i32
    %c0_i32_1 = arith.constant 0 : i32
    return %c0_i32, %c0_i32_0 : i32, i32
  }
  func.func @transform_9(%arg0: i32, %arg1: i32) -> (i32, i32, i32, i32) {
    %c0_i32 = arith.constant 0 : i32
    %c0_i32_0 = arith.constant 0 : i32
    %c0_i32_1 = arith.constant 0 : i32
    return %arg0, %arg1, %c0_i32, %c0_i32_0 : i32, i32, i32, i32
  }
}

</mosaic_0001>

<bundles_post_ra>
// kernel: double_conv_forward.1
= control target key start
LH: loop header
LB: loop body
LE: loop exit
PB: predicated region body
PF: predicated region fallthrough
CT: control target
= control target key end

     0   :  { %s6673_s30 = smov 0   ;;  %s6675_s10 = smov 0   ;;  %s8372_s0 = inlined_call_operand.vmem [shape: f32[2,16,16,4], index: 0, kind: input, shape index: {}, may-alias: {0,1,2}]   ;;  %s8373_s1 = inlined_call_operand.vmem [shape: f32[2,16,16,4], index: 1, kind: input, shape index: {}, may-alias: {0,1,2}]   ;;  %s8374_s2 = inlined_call_operand.vmem [shape: f32[2,16,16,4], index: 2, kind: input, shape index: {}, may-alias: {0,1,2}]   ;;  %s8375_s3 = inlined_call_operand.vmem [shape: bf16[9,4,8], index: 3, kind: input, shape index: {}]   ;;  %s8376_s4 = inlined_call_operand.vmem [shape: f32[1,8], index: 4, kind: input, shape index: {}]   ;;  %s8377_s5 = inlined_call_operand.vmem [shape: f32[1,8], index: 5, kind: input, shape index: {}]   ;;  %s8378_s6 = inlined_call_operand.vmem [shape: bf16[9,8,8], index: 6, kind: input, shape index: {}]   ;;  %s8379_s7 = inlined_call_operand.vmem [shape: f32[1,8], index: 7, kind: input, shape index: {}]   ;;  %s8380_s8 = inlined_call_operand.vmem [shape: f32[1,8], index: 8, kind: input, shape index: {}]   ;;  %s8381_s9 = inlined_call_operand.vmem [shape: f32[2,16,16,8], index: 9, kind: output, shape index: {}]  }
   0x1   :  { %s6677_s11 = smov 0   ;;  %s6679_s12 = smov 0  }
   0x2   :  { %s6681_s13 = smov 0  }
   0x3 LB: > { %s28_s14 = sadd.s32 1, %s6609_s11  ;;  %s31_s15 = sadd.s32 1, %s6613_s12  ;;  %s6617_s13 = sphi %s6681_s13, %s19_s13   ;;  %s6613_s12 = sphi %s6679_s12, %s8471_s12   ;;  %s6609_s11 = sphi %s6677_s11, %s8470_s11   ;;  %s6605_s10 = sphi %s6675_s10, %s8469_s10   ;;  %s6601_s30 = sphi %s6673_s30, %s8468_s30  }
   0x4   : > { %p29_p0 = scmp.ge.s32.totalorder %s28_s14, 2  ;;  %p5275_p1 = scmp.ge.s32.totalorder %s6617_s13, 1 }
   0x5   : > { %p377_p2 = scmp.lt.s32.totalorder %s6617_s13, 5 }
   0x6   : > { %s8473_s14 = smov (%p29_p0, %s28_s14), 0  ;;  %s8475_s15 = smov (!%p29_p0, %s31_s15), %s6613_s12 }
   0x7   : > { %p378_p3 = pnand %p5275_p1, %p377_p2  ;;  %p33_p4 = scmp.ge.s32.totalorder %s8475_s15, 2 }
   0x9   : > { %s8477_s15 = smov (%p33_p4, %s8475_s15), 0  ;;  %381 = sbr.rel (%p378_p3) target bundleno = 1211 (0x4bb), region = 56 }
  0x10   : > { %vm512_vm0 = vcmask 24576   ;;  %vm513_vm1 = vsmask.f32 256  ;;  %v521_v0 = vld [vmem:[#allocation2 + $0x18] sm:$0x1]  ;;  %s5276_s16 = sshll.u32 %s6601_s30, 3 }
  0x11   : > { %vm6710_vm2 = vmand %vm512_vm0, %vm513_vm1  ;;  %v524_v2 = vld [vmem:[#allocation2 + $0x24] sm:$0x1]  ;;  %v527_v3 = vld [vmem:[#allocation2 + $0x30] sm:$0x1]  ;;  %vm551_vm3 = vsmask.f32 7938 }
  0x12   : > { %v522_v4 = vsel %vm6710_vm2, 0, %v521_v0  ;;  %v525_v5 = vsel %vm6710_vm2, 0, %v524_v2  ;;  %v528_v6 = vsel %vm6710_vm2, 0, %v527_v3  ;;  %v530_v7 = vld [vmem:[#allocation2 + $0x3c] sm:$0x1]  ;;  %p452_p5 = scmp.lt.s32.totalorder %s6605_s10, 1  ;;  %vm6725_vm4 = vmand %vm512_vm0, %vm551_vm3 }
  0x13   : > { %523 = vst [vmem:[#allocation2 + $0x18] sm:$0x1] %v522_v4  ;;  %526 = vst [vmem:[#allocation2 + $0x24] sm:$0x1] %v525_v5  ;;  %v531_v8 = vsel %vm6710_vm2, 0, %v530_v7  ;;  %p6731_p6 = scmp.lt.s32.totalorder %s5276_s16, 15 }
  0x14   : > { %529 = vst [vmem:[#allocation2 + $0x30] sm:$0x1] %v528_v6  ;;  %v533_v9 = vld [vmem:[#allocation2 + $0x48] sm:$0x1]  ;;  %v536_v10 = vld [vmem:[#allocation2 + $0x54] sm:$0x1] }
  0x15   : > { %532 = vst [vmem:[#allocation2 + $0x3c] sm:$0x1] %v531_v8  ;;  %v534_v12 = vsel %vm6710_vm2, 0, %v533_v9  ;;  %v537_v13 = vsel %vm6710_vm2, 0, %v536_v10  ;;  %v539_v14 = vld [vmem:[#allocation2 + $0x60] sm:$0x1] }
  0x16   : > { %v542_v15 = vld [vmem:[#allocation2 + $0x6c] sm:$0x1]  ;;  %535 = vst [vmem:[#allocation2 + $0x48] sm:$0x1] %v534_v12  ;;  %538 = vst [vmem:[#allocation2 + $0x54] sm:$0x1] %v537_v13 }
  0x17   : > { %v540_v16 = vsel %vm6710_vm2, 0, %v539_v14  ;;  %v543_v17 = vsel %vm6710_vm2, 0, %v542_v15  ;;  %v559_v18 = vld [vmem:[#allocation2 + $0x20] sm:$0x1]  ;;  %v562_v19 = vld [vmem:[#allocation2 + $0x2c] sm:$0x1] }
  0x18   : > { %541 = vst [vmem:[#allocation2 + $0x60] sm:$0x1] %v540_v16  ;;  %544 = vst [vmem:[#allocation2 + $0x6c] sm:$0x1] %v543_v17  ;;  %v560_v20 = vsel %vm6725_vm4, 0, %v559_v18  ;;  %v563_v21 = vsel %vm6725_vm4, 0, %v562_v19 }
  0x19   : > { %v565_v22 = vld [vmem:[#allocation2 + $0x38] sm:$0x1]  ;;  %v568_v23 = vld [vmem:[#allocation2 + $0x44] sm:$0x1]  ;;  %561 = vst [vmem:[#allocation2 + $0x20] sm:$0x1] %v560_v20 }
  0x1a   : > { %564 = vst [vmem:[#allocation2 + $0x2c] sm:$0x1] %v563_v21  ;;  %v566_v24 = vsel %vm6725_vm4, 0, %v565_v22  ;;  %v569_v25 = vsel %vm6725_vm4, 0, %v568_v23  ;;  %v571_v26 = vld [vmem:[#allocation2 + $0x50] sm:$0x1] }
  0x1b   : > { %v574_v27 = vld [vmem:[#allocation2 + $0x5c] sm:$0x1]  ;;  %567 = vst [vmem:[#allocation2 + $0x38] sm:$0x1] %v566_v24  ;;  %570 = vst [vmem:[#allocation2 + $0x44] sm:$0x1] %v569_v25 }
  0x1c   : > { %v572_v28 = vsel %vm6725_vm4, 0, %v571_v26  ;;  %v575_v29 = vsel %vm6725_vm4, 0, %v574_v27  ;;  %v577_v30 = vld [vmem:[#allocation2 + $0x68] sm:$0x1]  ;;  %v580_v31 = vld [vmem:[#allocation2 + $0x74] sm:$0x1] }
  0x1d   : > { %573 = vst [vmem:[#allocation2 + $0x50] sm:$0x1] %v572_v28  ;;  %576 = vst [vmem:[#allocation2 + $0x5c] sm:$0x1] %v575_v29  ;;  %v578_v32 = vsel %vm6725_vm4, 0, %v577_v30  ;;  %v581_v33 = vsel %vm6725_vm4, 0, %v580_v31 }
  0x1e   : > { %v515_v34 = vld [vmem:[#allocation2] sm:$0x1]  ;;  %v518_v35 = vld [vmem:[#allocation2 + $0xc] sm:$0x1]  ;;  %579 = vst [vmem:[#allocation2 + $0x68] sm:$0x1] %v578_v32 }
  0x1f   : > { %582 = vst [vmem:[#allocation2 + $0x74] sm:$0x1] %v581_v33  ;;  %v516_v36 = vsel %vm6710_vm2, 0, %v515_v34  ;;  %v519_v37 = vsel %vm6710_vm2, 0, %v518_v35  ;;  %v545_v38 = vld [vmem:[#allocation2 + $0x78] sm:$0x1] }
  0x20   : > { %v548_v39 = vld [vmem:[#allocation2 + $0x84] sm:$0x1]  ;;  %517 = vst [vmem:[#allocation2] sm:$0x1] %v516_v36  ;;  %520 = vst [vmem:[#allocation2 + $0xc] sm:$0x1] %v519_v37 }
  0x21   : > { %v546_v40 = vsel %vm6710_vm2, 0, %v545_v38  ;;  %v549_v41 = vsel %vm6710_vm2, 0, %v548_v39  ;;  %v553_v42 = vld [vmem:[#allocation2 + $0x8] sm:$0x1]  ;;  %v556_v43 = vld [vmem:[#allocation2 + $0x14] sm:$0x1] }
  0x22   : > { %547 = vst [vmem:[#allocation2 + $0x78] sm:$0x1] %v546_v40  ;;  %550 = vst [vmem:[#allocation2 + $0x84] sm:$0x1] %v549_v41  ;;  %v554_v44 = vsel %vm6725_vm4, 0, %v553_v42  ;;  %v557_v45 = vsel %vm6725_vm4, 0, %v556_v43 }
  0x23   : > { %v583_v46 = vld [vmem:[#allocation2 + $0x80] sm:$0x1]  ;;  %v586_v47 = vld [vmem:[#allocation2 + $0x8c] sm:$0x1]  ;;  %555 = vst [vmem:[#allocation2 + $0x8] sm:$0x1] %v554_v44 }
  0x24   : > { %558 = vst [vmem:[#allocation2 + $0x14] sm:$0x1] %v557_v45  ;;  %v584_v48 = vsel %vm6725_vm4, 0, %v583_v46  ;;  %v587_v49 = vsel %vm6725_vm4, 0, %v586_v47  ;;  %s8479_s10 = smov (!%p452_p5, %s6605_s10), 1  ;;  %s8481_s16 = smov (!%p6731_p6, %s5276_s16), 15 }
  0x25   : > { %585 = vst [vmem:[#allocation2 + $0x80] sm:$0x1] %v584_v48  ;;  %588 = vst [vmem:[#allocation2 + $0x8c] sm:$0x1] %v587_v49  ;;  %s6782_s18 = sshll.u32 %s8479_s10, 5  ;;  %s5280_s19 = sshll.u32 %s6601_s30, 2 }
  0x26   : > { %s5277_s20 = sshll.u32 %s8481_s16, 1  ;;  %s5281_s21 = sadd.s32 4294967295, %s5280_s19  ;;  %vm816_vm5 = vcmask 27648   ;;  %vm653_vm6 = vsmask.f32 4368  ;;  %v8415_v15 = vmov 0 }
  0x27   : > { %s458_s22 = sadd.s32 %s6782_s18, %s5277_s20  ;;  %p464_p7 = scmp.gt.s32.totalorder %s5281_s21, 0  ;;  %v818_v3 = vld [vmem:[#allocation2 + $0x18] sm:$0xf]  ;;  %v823_v4 = vld [vmem:[#allocation2 + $0x20] sm:$0x1]  ;;  %vm6818_vm7 = vmand %vm816_vm5, %vm551_vm3 }
  0x28   : > { %s5279_s23 = sshll.u32 %s458_s22, 3  ;;  %s5622_s24 = sadd.s32 4, %s5280_s19  ;;  %v826_v12 = vld [vmem:[#allocation2 + $0x24] sm:$0xf]  ;;  %vm6828_vm8 = vmor %vm513_vm1, %vm653_vm6  ;;  %v830_v24 = vld [vmem:[#allocation2 + $0x2c] sm:$0x1] }
  0x29   : > { %s6789_s27 = scalar_lea.vmem %s8372_s0, %s5279_s23  ;;  %p483_p8 = scmp.lt.s32.totalorder %s5622_s24, 7  ;;  %v8416_v15 = vsel %vm6828_vm8, 4294967295, %v8415_v15  ;;  %v833_v40 = vld [vmem:[#allocation2 + $0x30] sm:$0xf]  ;;  %v837_v44 = vld [vmem:[#allocation2 + $0x38] sm:$0x1] }
  0x2a   : > { %s8483_s21 = smov (!%p464_p7, %s5281_s21), 0  ;;  %v589_v50 = vld [vmem:[%s6789_s27] sm:$0xff]  ;;  %v590_v51 = vld [vmem:[%s6789_s27 + $0x8] sm:$0xff]  ;;  %v591_v52 = vld [vmem:[%s6789_s27 + $0x10] sm:$0xff]  ;;  %s6805_s16 = scalar_lea.vmem %s8381_s9, %s5279_s23  ;;  %8417 = vst [vmem:[#allocation4_spill] sm:$0xff] %v8416_v15 }
  0x2b   : > { %s8485_s24 = smov (!%p483_p8, %s5622_s24), 7  ;;  %v5623_v53 = vpack.c.bf16 %v589_v50, %v589_v50  ;;  %v5624_v54 = vpack.c.bf16 %v590_v51, %v590_v51  ;;  %v5625_v55 = vpack.c.bf16 %v591_v52, %v591_v52  ;;  %v592_v56 = vld [vmem:[%s6789_s27 + $0x18] sm:$0xff]  ;;  %v593_v57 = vld [vmem:[%s6789_s27 + $0x20] sm:$0xff]  ;;  %v594_v58 = vld [vmem:[%s6789_s27 + $0x28] sm:$0xff]  ;;  %s5282_s28 = sshll.u32 %s8483_s21, 1 }
  0x2c   : > { %v5626_v59 = vpack.c.bf16 %v592_v56, %v592_v56  ;;  %v6807_v60 = vpack.c.bf16 %v593_v57, %v593_v57  ;;  %v6809_v61 = vpack.c.bf16 %v594_v58, %v594_v58  ;;  %p469_p9 = scmp.lt.s32.totalorder %s5282_s28, 15  ;;  %s5287_s17 = sshll.u32 %s8485_s24, 1  ;;  %v595_v29 = vld [vmem:[%s6789_s27 + $0x30] sm:$0xff]  ;;  %v596_v30 = vld [vmem:[%s6789_s27 + $0x38] sm:$0xff]  ;;  %v597_v35 = vld [vmem:[%s6789_s27 + $0x40] sm:$0xff] }
  0x2d   : > { %v656_v62 = vshrl.u32 %v5623_v53, 16  ;;  %v659_v63 = vshll.u32 %v5623_v53, 16  ;;  %v664_v0 = vshrl.u32 %v5624_v54, 16  ;;  %v667_v2 = vshll.u32 %v5624_v54, 16  ;;  %p6812_p10 = scmp.lt.s32.totalorder %s5287_s17, 15  ;;  %v598_v36 = vld [vmem:[%s6789_s27 + $0x48] sm:$0xff] }
  0x2e   : > { %v673_v5 = vshrl.u32 %v5625_v55, 16  ;;  %v676_v6 = vshll.u32 %v5625_v55, 16  ;;  %v681_v7 = vshrl.u32 %v5626_v59, 16  ;;  %v684_v8 = vshll.u32 %v5626_v59, 16  ;;  %s8487_s28 = smov (!%p469_p9, %s5282_s28), 15  ;;  %v599_v55 = vld [vmem:[%s6789_s27 + $0x50] sm:$0xff] }
  0x2f   : > { %v658_v9 = vrot.slane %v656_v62, 7  ;;  %v666_v11 = vrot.slane %v664_v0, 7  ;;  %v690_v13 = vshrl.u32 %v6807_v60, 16  ;;  %v693_v14 = vshll.u32 %v6807_v60, 16  ;;  %s8489_s17 = smov (!%p6812_p10, %s5287_s17), 15  ;;  %s5283_s20 = sshll.u32 %s8487_s28, 1 }
  0x30   : > { %v675_v16 = vrot.slane %v673_v5, 7  ;;  %v683_v17 = vrot.slane %v681_v7, 7  ;;  %v698_v18 = vshrl.u32 %v6809_v61, 16  ;;  %v701_v19 = vshll.u32 %v6809_v61, 16  ;;  %s473_s21 = sadd.s32 %s5283_s20, %s6782_s18  ;;  %s5288_s22 = sshll.u32 %s8489_s17, 1  ;;  %v600_v56 = vld [vmem:[%s6789_s27 + $0x58] sm:$0xff] }
  0x31   : > { %v661_v20 = vor.u32 %v659_v63, %v658_v9  ;;  %v662_v21 = vrot.slane %v658_v9, 4  ;;  %v669_v22 = vor.u32 %v667_v2, %v666_v11  ;;  %v671_v23 = vrot.slane %v666_v11, 4  ;;  %s5285_s23 = sshll.u32 %s473_s21, 3  ;;  %s492_s24 = sadd.s32 %s5288_s22, %s6782_s18  ;;  %v840_v2 = vld [vmem:[#allocation2 + $0x3c] sm:$0xf] }
  0x32   : > { %v678_v25 = vor.u32 %v676_v6, %v675_v16  ;;  %v679_v26 = vrot.slane %v675_v16, 4  ;;  %v686_v27 = vor.u32 %v684_v8, %v683_v17  ;;  %v688_v28 = vrot.slane %v683_v17, 4  ;;  %s6849_s28 = scalar_lea.vmem %s8373_s1, %s5285_s23  ;;  %s5290_s29 = sshll.u32 %s492_s24, 3 }
  0x33   : > { %v819_v31 = vsel %vm6818_vm7, %v661_v20, %v818_v3  ;;  %v670_v32 = vsel %vm6828_vm8, %v662_v21, %v669_v22  ;;  %v824_v33 = vsel %vm6710_vm2, %v671_v23, %v823_v4  ;;  %v692_v34 = vrot.slane %v690_v13, 7  ;;  %s6861_s17 = scalar_lea.vmem %s8374_s2, %s5290_s29  ;;  %v844_v3 = vld [vmem:[#allocation2 + $0x44] sm:$0x1]  ;;  %v847_v13 = vld [vmem:[#allocation2 + $0x48] sm:$0xf]  ;;  %p5311_p11 = scmp.le.s32.totalorder %s6601_s30, 0 }
  0x34   : > { %820 = vst [vmem:[#allocation2 + $0x18] sm:$0xf] %v819_v31  ;;  %822 = vst.msk [vmem:[#allocation2 + $0x1c] sm:$0xf] %vm816_vm5, %v670_v32  ;;  %v827_v37 = vsel %vm6818_vm7, %v678_v25, %v826_v12  ;;  %v687_v38 = vsel %vm6828_vm8, %v679_v26, %v686_v27  ;;  %v831_v39 = vsel %vm6710_vm2, %v688_v28, %v830_v24  ;;  %v700_v41 = vrot.slane %v698_v18, 7  ;;  %v602_v20 = vld [vmem:[%s6789_s27 + $0x68] sm:$0xff] }
  0x35   : > { %825 = vst [vmem:[#allocation2 + $0x20] sm:$0x1] %v824_v33  ;;  %828 = vst [vmem:[#allocation2 + $0x24] sm:$0xf] %v827_v37  ;;  %v695_v42 = vor.u32 %v693_v14, %v692_v34  ;;  %v696_v43 = vrot.slane %v692_v34, 4  ;;  %v5629_v45 = vpack.c.bf16 %v595_v29, %v595_v29  ;;  %v5630_v46 = vpack.c.bf16 %v596_v30, %v596_v30 }
  0x36   : > { %829 = vst.msk [vmem:[#allocation2 + $0x28] sm:$0xf] %vm816_vm5, %v687_v38  ;;  %832 = vst [vmem:[#allocation2 + $0x2c] sm:$0x1] %v831_v39  ;;  %v703_v47 = vor.u32 %v701_v19, %v700_v41  ;;  %v705_v48 = vrot.slane %v700_v41, 4  ;;  %v5631_v49 = vpack.c.bf16 %v597_v35, %v597_v35  ;;  %v5632_v50 = vpack.c.bf16 %v598_v36, %v598_v36  ;;  %v601_v19 = vld [vmem:[%s6789_s27 + $0x60] sm:$0xff] }
  0x37   : > { %v834_v51 = vsel %vm6818_vm7, %v695_v42, %v833_v40  ;;  %v707_v52 = vshrl.u32 %v5629_v45, 16  ;;  %v710_v53 = vshll.u32 %v5629_v45, 16  ;;  %v715_v54 = vshrl.u32 %v5630_v46, 16  ;;  %v851_v24 = vld [vmem:[#allocation2 + $0x50] sm:$0x1]  ;;  %v604_v36 = vld [vmem:[%s6789_s27 + $0x78] sm:$0xff] }
  0x38   : > { %835 = vst [vmem:[#allocation2 + $0x30] sm:$0xf] %v834_v51  ;;  %v704_v57 = vsel %vm6828_vm8, %v696_v43, %v703_v47  ;;  %v838_v58 = vsel %vm6710_vm2, %v705_v48, %v837_v44  ;;  %v718_v59 = vshll.u32 %v5630_v46, 16  ;;  %v724_v60 = vshrl.u32 %v5631_v49, 16  ;;  %v854_v30 = vld [vmem:[#allocation2 + $0x54] sm:$0xf] }
  0x39   : > { %836 = vst.msk [vmem:[#allocation2 + $0x34] sm:$0xf] %vm816_vm5, %v704_v57  ;;  %839 = vst [vmem:[#allocation2 + $0x38] sm:$0x1] %v838_v58  ;;  %v709_v61 = vrot.slane %v707_v52, 7  ;;  %v717_v62 = vrot.slane %v715_v54, 7  ;;  %v5633_v6 = vpack.c.bf16 %v599_v55, %v599_v55  ;;  %v5634_v7 = vpack.c.bf16 %v600_v56, %v600_v56 }
  0x3a   : > { %v727_v63 = vshll.u32 %v5631_v49, 16  ;;  %v732_v0 = vshrl.u32 %v5632_v50, 16  ;;  %v726_v4 = vrot.slane %v724_v60, 7  ;;  %v735_v5 = vshll.u32 %v5632_v50, 16  ;;  %v603_v35 = vld [vmem:[%s6789_s27 + $0x70] sm:$0xff] }
  0x3b   : > { %v712_v8 = vor.u32 %v710_v53, %v709_v61  ;;  %v713_v9 = vrot.slane %v709_v61, 4  ;;  %v720_v11 = vor.u32 %v718_v59, %v717_v62  ;;  %v722_v12 = vrot.slane %v717_v62, 4  ;;  %v858_v46 = vld [vmem:[#allocation2 + $0x5c] sm:$0x1]  ;;  %v861_v54 = vld [vmem:[#allocation2 + $0x60] sm:$0xf] }
  0x3c   : > { %v729_v14 = vor.u32 %v727_v63, %v726_v4  ;;  %v730_v16 = vrot.slane %v726_v4, 4  ;;  %v734_v17 = vrot.slane %v732_v0, 7  ;;  %v741_v18 = vshrl.u32 %v5633_v6, 16  ;;  %v865_v63 = vld [vmem:[#allocation2 + $0x68] sm:$0x1] }
  0x3d   : > { %v841_v21 = vsel %vm6818_vm7, %v712_v8, %v840_v2  ;;  %v721_v22 = vsel %vm6828_vm8, %v713_v9, %v720_v11  ;;  %v845_v23 = vsel %vm6710_vm2, %v722_v12, %v844_v3  ;;  %v744_v25 = vshll.u32 %v5633_v6, 16  ;;  %v868_v6 = vld [vmem:[#allocation2 + $0x6c] sm:$0xf]  ;;  %v872_v12 = vld [vmem:[#allocation2 + $0x74] sm:$0x1] }
  0x3e   : > { %842 = vst [vmem:[#allocation2 + $0x3c] sm:$0xf] %v841_v21  ;;  %843 = vst.msk [vmem:[#allocation2 + $0x40] sm:$0xf] %vm816_vm5, %v721_v22  ;;  %v848_v26 = vsel %vm6818_vm7, %v729_v14, %v847_v13  ;;  %v737_v27 = vor.u32 %v735_v5, %v734_v17  ;;  %v739_v28 = vrot.slane %v734_v17, 4  ;;  %v743_v29 = vrot.slane %v741_v18, 7 }
  0x3f   : > { %846 = vst [vmem:[#allocation2 + $0x44] sm:$0x1] %v845_v23  ;;  %849 = vst [vmem:[#allocation2 + $0x48] sm:$0xf] %v848_v26  ;;  %v749_v31 = vshrl.u32 %v5634_v7, 16  ;;  %v752_v32 = vshll.u32 %v5634_v7, 16  ;;  %v5635_v33 = vpack.c.bf16 %v601_v19, %v601_v19  ;;  %v5636_v34 = vpack.c.bf16 %v602_v20, %v602_v20 }
  0x40   : > { %v738_v37 = vsel %vm6828_vm8, %v730_v16, %v737_v27  ;;  %v852_v38 = vsel %vm6710_vm2, %v739_v28, %v851_v24  ;;  %v746_v39 = vor.u32 %v744_v25, %v743_v29  ;;  %v747_v40 = vrot.slane %v743_v29, 4  ;;  %v879_v19 = vld [vmem:[%s6849_s28] sm:$0xff] (!%p5311_p11)  ;;  %v880_v20 = vld [vmem:[%s6849_s28 + $0x8] sm:$0xff] (!%p5311_p11)  ;;  %v881_v23 = vld [vmem:[%s6849_s28 + $0x10] sm:$0xff] (!%p5311_p11) }
  0x41   : > { %850 = vst.msk [vmem:[#allocation2 + $0x4c] sm:$0xf] %vm816_vm5, %v738_v37  ;;  %853 = vst [vmem:[#allocation2 + $0x50] sm:$0x1] %v852_v38  ;;  %v751_v41 = vrot.slane %v749_v31, 7  ;;  %v758_v42 = vshrl.u32 %v5635_v33, 16  ;;  %v5637_v48 = vpack.c.bf16 %v603_v35, %v603_v35  ;;  %v5638_v49 = vpack.c.bf16 %v604_v36, %v604_v36 }
  0x42   : > { %v761_v43 = vshll.u32 %v5635_v33, 16  ;;  %v766_v44 = vshrl.u32 %v5636_v34, 16  ;;  %v855_v45 = vsel %vm6818_vm7, %v746_v39, %v854_v30  ;;  %v769_v47 = vshll.u32 %v5636_v34, 16  ;;  %v882_v25 = vld [vmem:[%s6849_s28 + $0x18] sm:$0xff] (!%p5311_p11)  ;;  %v935_v34 = vld [vmem:[#allocation2] sm:$0xf] (!%p5311_p11) }
  0x43   : > { %856 = vst [vmem:[#allocation2 + $0x54] sm:$0xf] %v855_v45  ;;  %v754_v50 = vor.u32 %v752_v32, %v751_v41  ;;  %v756_v51 = vrot.slane %v751_v41, 4  ;;  %v760_v52 = vrot.slane %v758_v42, 7  ;;  %v775_v55 = vshrl.u32 %v5637_v48, 16 }
  0x44   : > { %v768_v53 = vrot.slane %v766_v44, 7  ;;  %v778_v56 = vshll.u32 %v5637_v48, 16  ;;  %v783_v57 = vshrl.u32 %v5638_v49, 16  ;;  %v786_v58 = vshll.u32 %v5638_v49, 16  ;;  %v939_v36 = vld [vmem:[#allocation2 + $0x8] sm:$0x1] (!%p5311_p11) }
  0x45   : > { %v755_v59 = vsel %vm6828_vm8, %v747_v40, %v754_v50  ;;  %v859_v60 = vsel %vm6710_vm2, %v756_v51, %v858_v46  ;;  %v763_v61 = vor.u32 %v761_v43, %v760_v52  ;;  %v764_v62 = vrot.slane %v760_v52, 4  ;;  %v942_v44 = vld [vmem:[#allocation2 + $0xc] sm:$0xf] (!%p5311_p11)  ;;  %v946_v51 = vld [vmem:[#allocation2 + $0x14] sm:$0x1] (!%p5311_p11) }
  0x46   : > { %857 = vst.msk [vmem:[#allocation2 + $0x58] sm:$0xf] %vm816_vm5, %v755_v59  ;;  %860 = vst [vmem:[#allocation2 + $0x5c] sm:$0x1] %v859_v60  ;;  %v771_v0 = vor.u32 %v769_v47, %v768_v53  ;;  %v773_v2 = vrot.slane %v768_v53, 4  ;;  %v777_v3 = vrot.slane %v775_v55, 7  ;;  %v5639_v21 = vpack.c.bf16 (!%p5311_p11), %v879_v19, %v879_v19 }
  0x47   : > { %v785_v4 = vrot.slane %v783_v57, 7  ;;  %v862_v5 = vsel %vm6818_vm7, %v763_v61, %v861_v54  ;;  %878 = sbr.rel (%p5311_p11) target bundleno = 85 (0x55), region = 60  ;;  %v5640_v22 = vpack.c.bf16 (!%p5311_p11), %v880_v20, %v880_v20  ;;  %v5641_v24 = vpack.c.bf16 (!%p5311_p11), %v881_v23, %v881_v23 }
  0x48   : > { %863 = vst [vmem:[#allocation2 + $0x60] sm:$0xf] %v862_v5  ;;  %v772_v7 = vsel %vm6828_vm8, %v764_v62, %v771_v0  ;;  %v866_v8 = vsel %vm6710_vm2, %v773_v2, %v865_v63  ;;  %v780_v9 = vor.u32 %v778_v56, %v777_v3  ;;  %v781_v11 = vrot.slane %v777_v3, 4 }
  0x49   : > { %864 = vst.msk [vmem:[#allocation2 + $0x64] sm:$0xf] %vm816_vm5, %v772_v7  ;;  %867 = vst [vmem:[#allocation2 + $0x68] sm:$0x1] %v866_v8  ;;  %v788_v13 = vor.u32 %v786_v58, %v785_v4  ;;  %v790_v14 = vrot.slane %v785_v4, 4  ;;  %v896_v26 = vshrl.u32 (!%p5311_p11), %v5639_v21, 16  ;;  %v5642_v32 = vpack.c.bf16 (!%p5311_p11), %v882_v25, %v882_v25 }
  0x4a   : > { %v869_v16 = vsel %vm6818_vm7, %v780_v9, %v868_v6  ;;  %v899_v27 = vshll.u32 (!%p5311_p11), %v5639_v21, 16  ;;  %v904_v28 = vshrl.u32 (!%p5311_p11), %v5640_v22, 16  ;;  %v907_v29 = vshll.u32 (!%p5311_p11), %v5640_v22, 16 }
  0x4b   : > { %870 = vst [vmem:[#allocation2 + $0x6c] sm:$0xf] %v869_v16  ;;  %v789_v17 = vsel %vm6828_vm8, %v781_v11, %v788_v13  ;;  %v873_v18 = vsel %vm6710_vm2, %v790_v14, %v872_v12  ;;  %v913_v30 = vshrl.u32 (!%p5311_p11), %v5641_v24, 16  ;;  %v916_v31 = vshll.u32 (!%p5311_p11), %v5641_v24, 16 }
  0x4c   : > { %871 = vst.msk [vmem:[#allocation2 + $0x70] sm:$0xf] %vm816_vm5, %v789_v17  ;;  %874 = vst [vmem:[#allocation2 + $0x74] sm:$0x1] %v873_v18  ;;  %v898_v33 = vrot.slane (!%p5311_p11), %v896_v26, 7  ;;  %v906_v35 = vrot.slane (!%p5311_p11), %v904_v28, 7 }
  0x4d   : > { %v915_v37 = vrot.slane (!%p5311_p11), %v913_v30, 7  ;;  %v921_v38 = vshrl.u32 (!%p5311_p11), %v5642_v32, 16  ;;  %v924_v39 = vshll.u32 (!%p5311_p11), %v5642_v32, 16 }
  0x4e   : > { %v901_v40 = vor.u32 %v899_v27, %v898_v33  ;;  %v902_v41 = vrot.slane %v898_v33, 4  ;;  %v909_v42 = vor.u32 %v907_v29, %v906_v35  ;;  %v911_v43 = vrot.slane %v906_v35, 4 }
  0x4f   : > { %v918_v45 = vor.u32 %v916_v31, %v915_v37  ;;  %v919_v46 = vrot.slane %v915_v37, 4  ;;  %v923_v47 = vrot.slane %v921_v38, 7 }
  0x50   : > { %v936_v48 = vsel %vm6818_vm7, %v901_v40, %v935_v34  ;;  %v910_v49 = vsel %vm6828_vm8, %v902_v41, %v909_v42  ;;  %v940_v50 = vsel %vm6710_vm2, %v911_v43, %v939_v36 }
  0x51   : > { %937 = vst [vmem:[#allocation2] sm:$0xf] %v936_v48  ;;  %938 = vst.msk [vmem:[#allocation2 + $0x4] sm:$0xf] %vm816_vm5, %v910_v49  ;;  %v943_v52 = vsel %vm6818_vm7, %v918_v45, %v942_v44  ;;  %v926_v53 = vor.u32 %v924_v39, %v923_v47  ;;  %v928_v54 = vrot.slane %v923_v47, 4 }
  0x52   : > { %941 = vst [vmem:[#allocation2 + $0x8] sm:$0x1] %v940_v50  ;;  %944 = vst [vmem:[#allocation2 + $0xc] sm:$0xf] %v943_v52 }
  0x53   : > { %v927_v55 = vsel %vm6828_vm8, %v919_v46, %v926_v53  ;;  %v947_v56 = vsel %vm6710_vm2, %v928_v54, %v946_v51 }
  0x54   : > { %945 = vst.msk [vmem:[#allocation2 + $0x10] sm:$0xf] %vm816_vm5, %v927_v55  ;;  %948 = vst [vmem:[#allocation2 + $0x14] sm:$0x1] %v947_v56 }
  0x55 PF: > { %p5316_p12 = scmp.ne.s32.totalorder %s6601_s30, 0 }
  0x56   : > { %v6619_v60 = vmov (!%p5316_p12), 0  }
  0x57   : > { %952 = sbr.rel (%p5316_p12) target bundleno = 94 (0x5e), region = 64  ;;  %956 = vst.msk [vmem:[#allocation2 + $0x4] sm:$0xf] (!%p5316_p12), %vm816_vm5, %v6619_v60  ;;  %963 = vst.msk [vmem:[#allocation2 + $0x10] sm:$0xf] (!%p5316_p12), %vm816_vm5, %v6619_v60 }
  0x58   : > { %v953_v57 = vld [vmem:[#allocation2] sm:$0xf] (!%p5316_p12) }
  0x59   : > { %v957_v58 = vld [vmem:[#allocation2 + $0x8] sm:$0x1] (!%p5316_p12)  ;;  %v954_v59 = vsel (!%p5316_p12), %vm6818_vm7, 0, %v953_v57  ;;  %v960_v62 = vld [vmem:[#allocation2 + $0xc] sm:$0xf] (!%p5316_p12) }
  0x5a   : > { %v958_v61 = vsel (!%p5316_p12), %vm6710_vm2, 0, %v957_v58  ;;  %955 = vst [vmem:[#allocation2] sm:$0xf] (!%p5316_p12), %v954_v59  ;;  %v961_v0 = vsel (!%p5316_p12), %vm6818_vm7, 0, %v960_v62 }
  0x5b   : > { %v964_v63 = vld [vmem:[#allocation2 + $0x14] sm:$0x1] (!%p5316_p12)  ;;  %959 = vst [vmem:[#allocation2 + $0x8] sm:$0x1] (!%p5316_p12), %v958_v61  ;;  %962 = vst [vmem:[#allocation2 + $0xc] sm:$0xf] (!%p5316_p12), %v961_v0 }
  0x5c   : > { %v965_v2 = vsel (!%p5316_p12), %vm6710_vm2, 0, %v964_v63 }
  0x5d   : > { %966 = vst [vmem:[#allocation2 + $0x14] sm:$0x1] (!%p5316_p12), %v965_v2 }
  0x5e PF: > { %p5317_p13 = scmp.ge.s32.totalorder %s6601_s30, 1 }
  0x5f   : > { %v971_v3 = vld [vmem:[%s6861_s17] sm:$0xff] (!%p5317_p13)  ;;  %v972_v4 = vld [vmem:[%s6861_s17 + $0x8] sm:$0xff] (!%p5317_p13)  ;;  %v973_v7 = vld [vmem:[%s6861_s17 + $0x10] sm:$0xff] (!%p5317_p13) }
  0x60   : > { %970 = sbr.rel (%p5317_p13) target bundleno = 108 (0x6c), region = 68  ;;  %v5643_v5 = vpack.c.bf16 (!%p5317_p13), %v971_v3, %v971_v3  ;;  %v5644_v6 = vpack.c.bf16 (!%p5317_p13), %v972_v4, %v972_v4  ;;  %v5645_v8 = vpack.c.bf16 (!%p5317_p13), %v973_v7, %v973_v7  ;;  %v974_v9 = vld [vmem:[%s6861_s17 + $0x18] sm:$0xff] (!%p5317_p13)  ;;  %v1032_v22 = vld [vmem:[#allocation2 + $0x80] sm:$0x1] (!%p5317_p13)  ;;  %v1035_v30 = vld [vmem:[#allocation2 + $0x84] sm:$0xf] (!%p5317_p13) }
  0x61   : > { %v5646_v18 = vpack.c.bf16 (!%p5317_p13), %v974_v9, %v974_v9  ;;  %v1028_v20 = vld [vmem:[#allocation2 + $0x78] sm:$0xf] (!%p5317_p13)  ;;  %v1039_v37 = vld [vmem:[#allocation2 + $0x8c] sm:$0x1] (!%p5317_p13) }
  0x62   : > { %v988_v11 = vshrl.u32 (!%p5317_p13), %v5643_v5, 16  ;;  %v991_v12 = vshll.u32 (!%p5317_p13), %v5643_v5, 16  ;;  %v996_v13 = vshrl.u32 (!%p5317_p13), %v5644_v6, 16  ;;  %v999_v14 = vshll.u32 (!%p5317_p13), %v5644_v6, 16 }
  0x63   : > { %v1005_v16 = vshrl.u32 (!%p5317_p13), %v5645_v8, 16  ;;  %v1008_v17 = vshll.u32 (!%p5317_p13), %v5645_v8, 16  ;;  %v1013_v24 = vshrl.u32 (!%p5317_p13), %v5646_v18, 16  ;;  %v1016_v25 = vshll.u32 (!%p5317_p13), %v5646_v18, 16 }
  0x64   : > { %v990_v19 = vrot.slane (!%p5317_p13), %v988_v11, 7  ;;  %v998_v21 = vrot.slane (!%p5317_p13), %v996_v13, 7 }
  0x65   : > { %v1007_v23 = vrot.slane (!%p5317_p13), %v1005_v16, 7  ;;  %v1015_v33 = vrot.slane (!%p5317_p13), %v1013_v24, 7 }
  0x66   : > { %v993_v26 = vor.u32 (!%p5317_p13), %v991_v12, %v990_v19  ;;  %v994_v27 = vrot.slane (!%p5317_p13), %v990_v19, 4  ;;  %v1001_v28 = vor.u32 (!%p5317_p13), %v999_v14, %v998_v21  ;;  %v1003_v29 = vrot.slane (!%p5317_p13), %v998_v21, 4 }
  0x67   : > { %v1010_v31 = vor.u32 %v1008_v17, %v1007_v23  ;;  %v1011_v32 = vrot.slane %v1007_v23, 4  ;;  %v1018_v39 = vor.u32 %v1016_v25, %v1015_v33  ;;  %v1020_v40 = vrot.slane %v1015_v33, 4 }
  0x68   : > { %v1029_v34 = vsel %vm6818_vm7, %v993_v26, %v1028_v20  ;;  %v1002_v35 = vsel %vm6828_vm8, %v994_v27, %v1001_v28  ;;  %v1033_v36 = vsel %vm6710_vm2, %v1003_v29, %v1032_v22 }
  0x69   : > { %1030 = vst [vmem:[#allocation2 + $0x78] sm:$0xf] %v1029_v34  ;;  %1031 = vst.msk [vmem:[#allocation2 + $0x7c] sm:$0xf] %vm816_vm5, %v1002_v35  ;;  %v1036_v38 = vsel %vm6818_vm7, %v1010_v31, %v1035_v30  ;;  %v1019_v41 = vsel %vm6828_vm8, %v1011_v32, %v1018_v39  ;;  %v1040_v42 = vsel %vm6710_vm2, %v1020_v40, %v1039_v37 }
  0x6a   : > { %1034 = vst [vmem:[#allocation2 + $0x80] sm:$0x1] %v1033_v36  ;;  %1037 = vst [vmem:[#allocation2 + $0x84] sm:$0xf] %v1036_v38 }
  0x6b   : > { %1038 = vst.msk [vmem:[#allocation2 + $0x88] sm:$0xf] %vm816_vm5, %v1019_v41  ;;  %1041 = vst [vmem:[#allocation2 + $0x8c] sm:$0x1] %v1040_v42 }
  0x6c PF: > { %p5322_p0 = scmp.ne.s32.totalorder %s6601_s30, 1 }
  0x6d   : > { %v6620_v46 = vmov (!%p5322_p0), 0  }
  0x6e   : > { %1045 = sbr.rel (%p5322_p0) target bundleno = 117 (0x75), region = 72  ;;  %1050 = vst.msk [vmem:[#allocation2 + $0x7c] sm:$0xf] (!%p5322_p0), %vm816_vm5, %v6620_v46  ;;  %1057 = vst.msk [vmem:[#allocation2 + $0x88] sm:$0xf] (!%p5322_p0), %vm816_vm5, %v6620_v46 }
  0x70   : > { %v1047_v43 = vld [vmem:[#allocation2 + $0x78] sm:$0xf] (!%p5322_p0) }
  0x71   : > { %v1051_v44 = vld [vmem:[#allocation2 + $0x80] sm:$0x1] (!%p5322_p0)  ;;  %v1048_v45 = vsel (!%p5322_p0), %vm6818_vm7, 0, %v1047_v43  ;;  %v1054_v48 = vld [vmem:[#allocation2 + $0x84] sm:$0xf] (!%p5322_p0) }
  0x72   : > { %v1052_v47 = vsel (!%p5322_p0), %vm6710_vm2, 0, %v1051_v44  ;;  %v1058_v49 = vld [vmem:[#allocation2 + $0x8c] sm:$0x1] (!%p5322_p0)  ;;  %1049 = vst [vmem:[#allocation2 + $0x78] sm:$0xf] (!%p5322_p0), %v1048_v45  ;;  %v1055_v50 = vsel (!%p5322_p0), %vm6818_vm7, 0, %v1054_v48 }
  0x73   : > { %1053 = vst [vmem:[#allocation2 + $0x80] sm:$0x1] (!%p5322_p0), %v1052_v47  ;;  %v1059_v51 = vsel (!%p5322_p0), %vm6710_vm2, 0, %v1058_v49  ;;  %1056 = vst [vmem:[#allocation2 + $0x84] sm:$0xf] (!%p5322_p0), %v1055_v50 }
  0x74   : > { %1060 = vst [vmem:[#allocation2 + $0x8c] sm:$0x1] (!%p5322_p0), %v1059_v51 }
  0x75 PF: > { %v1523_v52 = vld [vmem:[%s8375_s3] sm:$0x3]  ;;  %vm1587_vm9 = vcmask 1041408   ;;  %v6983_v55 = vld [vmem:[#allocation2 + $0x4] sm:$0xf]  ;;  %vm1556_vm10 = vcmask 31744  }
  0x76   : > { %v6979_v53 = vld [vmem:[#allocation2] sm:$0xf]  ;;  %6496 = vmatprep.subr.msk.bf16.mxu0 %vm1587_vm9, %v1523_v52  ;;  %v1775_v54 = vsel %vm1587_vm9, %v1523_v52, 0  ;;  %8419 = vst [vmem:[#allocation6_spill] sm:$0xff] %v6983_v55  ;;  %v1063_v10 = vld [vmem:[#allocation2 + $0xc] sm:$0xf] }
  0x77   : > { %8418 = vst [vmem:[#allocation5_spill] sm:$0xff] %v6979_v53  ;;  %5870 = vmatpush3.bf16.msra.mxu0 %v1775_v54  ;;  %v5356_v1 = vcombine.low %v6979_v53, %v6983_v55  ;;  %v6987_v56 = vld [vmem:[#allocation2 + $0x10] sm:$0xf]  ;;  %v5376_v57 = vld [vmem:[%s8375_s3 + $0x4] sm:$0x3]  ;;  %v1441_v63 = vrot.slane %v6983_v55, 5 }
  0x78   : > { %v6994_v58 = vcombine.low %v1063_v10, %v6987_v56  ;;  %6497 = vmatprep.subr.msk.bf16.mxu0 %vm1587_vm9, %v5376_v57  ;;  %v1065_v59 = vld [vmem:[#allocation2 + $0x18] sm:$0xf]  ;;  %v1953_v60 = vsel %vm1587_vm9, %v5376_v57, 0  ;;  %v6998_v61 = vld [vmem:[#allocation2 + $0x1c] sm:$0xf]  ;;  %v1125_v4 = vshrl.u32 %v1063_v10, 16 }
  0x79   : > { %5871 = vmatprep.mubr.msk.bf16.mxu0 %vm1556_vm10, %v5356_v1  ;;  %v1149_v62 = vshrl.u32 %v1065_v59, 16  ;;  %v1152_v0 = vshll.u32 %v1065_v59, 16  ;;  %v1158_v2 = vshll.u32 %v6998_v61, 16  ;;  %v1162_v3 = vshrl.u32 %v6998_v61, 16  ;;  %v1067_v7 = vld [vmem:[#allocation2 + $0x24] sm:$0xf] }
  0x7a   : > { %8420 = vst [vmem:[#allocation7_spill] sm:$0xff] %v6994_v58  ;;  %5872 = vmatmul.mubr.msk.bf16.vlgmr.msra.gmra.mrb[0].mxu0 %vm1556_vm10, %v6994_v58  ;;  %v1128_v5 = vshll.u32 %v1063_v10, 16  ;;  %v7006_v6 = vcombine.low %v1065_v59, %v6998_v61  ;;  %v7008_v8 = vld [vmem:[#allocation2 + $0x28] sm:$0xf]  ;;  %v8382_v9 = vrot.slane %v6987_v56, 5  ;;  %v1173_v17 = vshrl.u32 %v1067_v7, 16 }
  0x7b   : > { %5892 = vmatpush3.bf16.msra.mxu0 %v1953_v60  ;;  %v1151_v11 = vrot.slane %v1149_v62, 4  ;;  %v1154_v12 = vrot.slane %v1152_v0, 5  ;;  %v1069_v13 = vld [vmem:[#allocation2 + $0x30] sm:$0xf]  ;;  %v7011_v14 = vrot.slane %v1158_v2, 5  ;;  %v1164_v16 = vrot.slane %v1162_v3, 4 }
  0x7c   : > { %8421 = vst [vmem:[#allocation8_spill] sm:$0xff] %v7006_v6  ;;  %5875 = vmatprep.mubr.msk.bf16.mxu0 %vm1556_vm10, %v7006_v6  ;;  %v7015_v18 = vld [vmem:[#allocation2 + $0x34] sm:$0xf]  ;;  %v7019_v19 = vrot.slane %v1441_v63, 4  ;;  %v1176_v20 = vshll.u32 %v1067_v7, 16  ;;  %v7022_v21 = vcombine.low %v1067_v7, %v7008_v8  ;;  %v7024_v22 = vrot.slane %v1125_v4, 4 }
  0x7d   : > { %v7026_v23 = vrot.slane %v1128_v5, 5  ;;  %v7030_v25 = vcombine.low %v1069_v13, %v7015_v18  ;;  %v7034_v26 = vrot.slane %v8382_v9, 4  ;;  %v1155_v27 = vor.u32 %v1154_v12, %v1151_v11  ;;  %v1071_v30 = vld [vmem:[#allocation2 + $0x3c] sm:$0xf]  ;;  %v7044_v36 = vld [vmem:[#allocation2 + $0x40] sm:$0xf] }
  0x7e   : > { %8422 = vst [vmem:[#allocation9_spill] sm:$0xff] %v7022_v21  ;;  %v1197_v29 = vshrl.u32 %v1069_v13, 16  ;;  %v1165_v31 = vor.u32 %v1164_v16, %v7011_v14  ;;  %v7038_v32 = vrot.slane %v1173_v17, 4  ;;  %v1200_v33 = vshll.u32 %v1069_v13, 16  ;;  %v1073_v38 = vld [vmem:[#allocation2 + $0x48] sm:$0xf] }
  0x7f   : > { %8423 = vst [vmem:[#allocation10_spill] sm:$0xff] %v7030_v25  ;;  %v1221_v34 = vshrl.u32 %v1071_v30, 16  ;;  %vm1436_vm11 = vcmask 1042432   ;;  %v7040_v35 = vrot.slane %v1176_v20, 5  ;;  %v1224_v37 = vshll.u32 %v1071_v30, 16 }
  0x80   : > { %v7049_v40 = vld [vmem:[#allocation2 + $0x4c] sm:$0xf]  ;;  %v1245_v41 = vshrl.u32 %v1073_v38, 16  ;;  %v1075_v42 = vld [vmem:[#allocation2 + $0x54] sm:$0xf]  ;;  %v7051_v43 = vrot.slane %v1155_v27, 4  ;;  %v7065_v52 = vcombine.low %v1071_v30, %v7044_v36 }
  0x81   : > { %v7053_v44 = vrot.slane %v1197_v29, 4  ;;  %v1248_v45 = vshll.u32 %v1073_v38, 16  ;;  %v1269_v46 = vshrl.u32 %v1075_v42, 16  ;;  %v7055_v47 = vrot.slane %v1165_v31, 4  ;;  %v7071_v10 = vld [vmem:[#allocation2 + $0x58] sm:$0xf] }
  0x82   : > { %5876 = vmatmul.mubr.msk.bf16.gmra.mrb[4].mxu0 %vm1556_vm10, %v7022_v21  ;;  %v7057_v48 = vrot.slane %v1200_v33, 5  ;;  %v7059_v49 = vrot.slane %v1221_v34, 4  ;;  %v7062_v51 = vrot.slane %v1224_v37, 5  ;;  %8424 = vst [vmem:[#allocation11_spill] sm:$0xff] %v7065_v52  ;;  %v7069_v1 = vcombine.low %v1073_v38, %v7049_v40  ;;  %v1077_v57 = vld [vmem:[#allocation2 + $0x60] sm:$0xf] }
  0x83   : > { %5879 = vmatprep.mubr.msk.bf16.mxu0 %vm1556_vm10, %v7030_v25  ;;  %v7073_v59 = vrot.slane %v1245_v41, 4  ;;  %v1272_v60 = vshll.u32 %v1075_v42, 16  ;;  %v1293_v0 = vshrl.u32 %v1077_v57, 16  ;;  %v1079_v2 = vld [vmem:[#allocation2 + $0x6c] sm:$0xf]  ;;  %v7076_v3 = vrot.slane %v1248_v45, 5 }
  0x84   : > { %8425 = vst [vmem:[#allocation12_spill] sm:$0xff] %v7069_v1  ;;  %v7078_v4 = vrot.slane %v1269_v46, 4  ;;  %v1296_v5 = vshll.u32 %v1077_v57, 16  ;;  %v1317_v7 = vshrl.u32 %v1079_v2, 16  ;;  %v7080_v11 = vld [vmem:[#allocation2 + $0x8] sm:$0x1]  ;;  %v7090_v17 = vcombine.low %v1075_v42, %v7071_v10 }
  0x85   : > { %8426 = vst [vmem:[#allocation13_spill] sm:$0xff] %v7080_v11  ;;  %v1320_v12 = vshll.u32 %v1079_v2, 16  ;;  %v1388_v13 = vld [vmem:[#allocation2] sm:$0xe]  ;;  %vm1437_vm12 = vcmask 1046532   ;;  %v7100_v30 = vrot.slane %v1272_v60, 5 }
  0x86   : > { %v7085_v16 = vld [vmem:[%s8375_s3 + $0x6] sm:$0x3]  ;;  %8427 = vst [vmem:[#allocation14_spill] sm:$0xff] %v7090_v17  ;;  %v7094_v27 = vld [vmem:[#allocation2 + $0x14] sm:$0x1]  ;;  %v7102_v31 = vrot.slane %v1293_v0, 4  ;;  %vm7113_vm13 = vmor %vm1436_vm11, %vm1437_vm12 }
  0x87   : > { %v7092_v20 = vld [vmem:[#allocation2 + $0x64] sm:$0xf]  ;;  %v1389_v29 = vld [vmem:[#allocation2 + $0xc] sm:$0xe]  ;;  %6498 = vmatprep.subr.msk.bf16.mxu0 %vm1587_vm9, %v7085_v16  ;;  %v7105_v34 = vld [vmem:[#allocation2 + $0x70] sm:$0xf] }
  0x88   : > { %8428 = vst [vmem:[#allocation15_spill] sm:$0xff] %v7105_v34  ;;  %v1444_v37 = vrot.slane %v7080_v11, 5  ;;  %v7108_v38 = vrot.slane %v1296_v5, 5  ;;  %v5323_v45 = vrot.slane %v1388_v13, 9  ;;  %v1390_v46 = vld [vmem:[#allocation2 + $0x18] sm:$0xe]  ;;  %v7124_v41 = vcombine.low %v1077_v57, %v7092_v20 }
  0x89   : > { %v1455_v60 = vrot.slane %v6998_v61, 5  ;;  %v7118_v0 = vrot.slane %v1317_v7, 4  ;;  %v7120_v33 = vrot.slane %v1320_v12, 5  ;;  %v5324_v62 = vrot.slane %v1389_v29, 9  ;;  %v1087_v54 = vld [vmem:[#allocation2 + $0x20] sm:$0x1] }
  0x8a   : > { %5880 = vmatmul.mubr.msk.bf16.gmra.mrb[8].mxu0 %vm1556_vm10, %v7065_v52  ;;  %v1451_v5 = vrot.slane %v7094_v27, 5  ;;  %8433 = vst [vmem:[#allocation18_spill] sm:$0xff] %v7124_v41  ;;  %v1168_v50 = vshll.u32 %v1087_v54, 16  ;;  %v7126_v39 = vld [vmem:[#allocation2 + $0x2c] sm:$0x1]  ;;  %v1462_v13 = vrot.slane %v7008_v8, 5  ;;  %v7132_v7 = vcombine.low %v1079_v2, %v7105_v34 }
  0x8b   : > { %5883 = vmatprep.mubr.msk.bf16.mxu0 %vm1556_vm10, %v7069_v1  ;;  %8431 = vst [vmem:[#allocation16_spill] sm:$0xff] %v7118_v0  ;;  %8432 = vst [vmem:[#allocation17_spill] sm:$0xff] %v7120_v33  ;;  %v1391_v28 = vld [vmem:[#allocation2 + $0x24] sm:$0xe]  ;;  %v1445_v12 = vsel %vm7113_vm13, %v7019_v19, %v1444_v37  ;;  %v5325_v29 = vrot.slane %v1390_v46, 9  ;;  %v1469_v9 = vrot.slane %v7015_v18, 5  ;;  %v1442_v15 = vsel %vm7113_vm13, %v5323_v45, %v1441_v63 }
  0x8c   : > { %v7137_v24 = vld [vmem:[#allocation2 + $0x38] sm:$0x1]  ;;  %v1392_v57 = vld [vmem:[#allocation2 + $0x30] sm:$0xe]  ;;  %v1457_v11 = vrot.slane %v1455_v60, 4  ;;  %v1476_v53 = vrot.slane %v7044_v36, 5  ;;  %v1452_v55 = vsel %vm7113_vm13, %v7034_v26, %v1451_v5 }
  0x8d   : > { %v7144_v61 = vld [vmem:[#allocation2 + $0x44] sm:$0x1]  ;;  %v1393_v2 = vld [vmem:[#allocation2 + $0x3c] sm:$0xe]  ;;  %v8434_v37 = vrot.slane %v6987_v56, 5  ;;  %v1458_v1 = vrot.slane %v1087_v54, 5  ;;  %v1456_v0 = vsel %vm7113_vm13, %v5325_v29, %v1455_v60 }
  0x8e   : > { %v7156_v63 = vld [vmem:[#allocation2 + $0x50] sm:$0x1]  ;;  %v1394_v45 = vld [vmem:[#allocation2 + $0x48] sm:$0xe]  ;;  %v1483_v52 = vrot.slane %v7049_v40, 5  ;;  %v5326_v25 = vrot.slane %v1391_v28, 9 }
  0x8f   : > { %v1449_v46 = vsel %vm7113_vm13, %v5324_v62, %v8434_v37  ;;  %v1464_v19 = vrot.slane %v1462_v13, 4  ;;  %v1465_v21 = vrot.slane %v7126_v39, 5  ;;  %v5327_v6 = vrot.slane %v1392_v57, 9  ;;  %v7205_v29 = vld [vmem:[#allocation2 + $0x68] sm:$0x1] }
  0x90   : > { %v1471_v62 = vrot.slane %v1469_v9, 4  ;;  %v1472_v26 = vrot.slane %v7137_v24, 5  ;;  %v5328_v54 = vrot.slane %v1393_v2, 9  ;;  %v1479_v5 = vrot.slane %v7144_v61, 5 }
  0x91   : > { %v1478_v37 = vrot.slane %v1476_v53, 4  ;;  %v5329_v58 = vrot.slane %v1394_v45, 9  ;;  %v1485_v34 = vrot.slane %v1483_v52, 4  ;;  %v1486_v33 = vrot.slane %v7156_v63, 5 }
  0x92   : > { %5884 = vmatmul.mubr.msk.bf16.gmra.mrb[12].mxu0 %vm1556_vm10, %v7090_v17  ;;  %v5377_v17 = vcombine.low %v1442_v15, %v1445_v12  ;;  %v7167_v28 = vcombine.low %v1449_v46, %v1452_v55  ;;  %v2098_v57 = vsel %vm1587_vm9, %v7085_v16, 0  ;;  %v1459_v2 = vsel %vm7113_vm13, %v1457_v11, %v1458_v1  ;;  %v7181_v55 = vld [vmem:[#allocation2 + $0x54] sm:$0xe]  ;;  %v7190_v1 = vld [vmem:[#allocation2 + $0x60] sm:$0xe] }
  0x93   : > { %5887 = vmatprep.mubr.msk.bf16.mxu0 %vm1556_vm10, %v7124_v41  ;;  %v1203_v41 = vor.u32 %v7057_v48, %v7053_v44  ;;  %v1463_v45 = vsel %vm7113_vm13, %v5326_v25, %v1462_v13  ;;  %v1466_v15 = vsel %vm7113_vm13, %v1464_v19, %v1465_v21  ;;  %v1170_v12 = vrot.slane %v1168_v50, 5  ;;  %v7187_v48 = vld [vmem:[#allocation2 + $0x5c] sm:$0x1] }
  0x94   : > { %v1470_v16 = vsel %vm7113_vm13, %v5327_v6, %v1469_v9  ;;  %v1473_v44 = vsel %vm7113_vm13, %v1471_v62, %v1472_v26  ;;  %v1490_v60 = vrot.slane %v7071_v10, 5  ;;  %v1477_v25 = vsel %vm7113_vm13, %v5328_v54, %v1476_v53 }
  0x95   : > { %v1480_v21 = vsel %vm7113_vm13, %v1478_v37, %v1479_v5  ;;  %v1484_v50 = vsel %vm7113_vm13, %v5329_v58, %v1483_v52  ;;  %v1487_v6 = vsel %vm7113_vm13, %v1485_v34, %v1486_v33  ;;  %v7200_v9 = vcombine.low %v1456_v0, %v1459_v2 }
  0x96   : > { %v7202_v11 = vcombine.low %v1463_v45, %v1466_v15  ;;  %v5330_v13 = vrot.slane %v7181_v55, 9  ;;  %v1497_v19 = vrot.slane %v7092_v20, 5  ;;  %v7210_v53 = vcombine.low %v1470_v16, %v1473_v44 }
  0x97   : > { %v1493_v58 = vrot.slane %v7187_v48, 5  ;;  %v5331_v52 = vrot.slane %v7190_v1, 9  ;;  %vm1097_vm14 = vsmask.f32 3328  ;;  %v7215_v33 = vcombine.low %v1477_v25, %v1480_v21 }
  0x98   : > { %v7217_v34 = vcombine.low %v1484_v50, %v1487_v6  ;;  %v7221_v0 = vrot.slane %v1490_v60, 4  ;;  %vm1098_vm15 = vsmask.f32 7440  ;;  %v1500_v46 = vrot.slane %v7205_v29, 5 }
  0x99   : > { %vm7224_vm0 = vmor %vm1097_vm14, %vm1098_vm15  ;;  %v8437_v26 = vor.u32 %v7026_v23, %v7024_v22  ;;  %v8438_v5 = vshrl.u32 %v6987_v56, 16  ;;  %v7236_v2 = vrot.slane %v1497_v19, 4  ;;  %v1144_v45 = vshll.u32 %v7094_v27, 16 }
  0x9a   : > { %5888 = vmatmul.mubr.msk.bf16.gmra.mrb[16].mxu0 %vm1556_vm10, %v7132_v7  ;;  %v1161_v15 = vsel %vm7224_vm0, %v7051_v43, %v7011_v14  ;;  %v1171_v22 = vsel %vm7224_vm0, %v7055_v47, %v1170_v12  ;;  %v1182_v25 = vshll.u32 %v7008_v8, 16  ;;  %v8440_v27 = vshrl.u32 %v7008_v8, 16 }
  0x9b   : > { %5893 = vmatprep.mubr.msk.bf16.mxu0 %vm1556_vm10, %v5377_v17  ;;  %v1132_v54 = vrot.slane %v8437_v26, 4  ;;  %v1134_v17 = vshll.u32 %v6987_v56, 16  ;;  %v1140_v37 = vrot.slane %v8438_v5, 4  ;;  %v7246_v16 = vcombine.low %v1161_v15, %v1171_v22 }
  0x9c   : > { %v8439_v56 = vor.u32 %v7040_v35, %v7038_v32  ;;  %v1146_v21 = vrot.slane %v1144_v45, 5  ;;  %v1188_v50 = vrot.slane %v8440_v27, 4  ;;  %v1192_v6 = vshll.u32 %v7126_v39, 16  ;;  %v7261_v32 = vld [vmem:[%s8375_s3 + $0x8] sm:$0x3] }
  0x9d   : > { %v1136_v23 = vrot.slane %v1134_v17, 5  ;;  %v1204_v14 = vrot.slane %v1203_v41, 4  ;;  %v1184_v12 = vrot.slane %v1182_v25, 5  ;;  %v1206_v26 = vshll.u32 %v7015_v18, 16 }
  0x9e   : > { %v1180_v44 = vrot.slane %v8439_v56, 4  ;;  %v1194_v35 = vrot.slane %v1192_v6, 5  ;;  %v8441_v17 = vshrl.u32 %v7015_v18, 16  ;;  %v1216_v5 = vshll.u32 %v7137_v24, 16 }
  0x9f   : > { %v1137_v43 = vsel %vm7224_vm0, %v1132_v54, %v1136_v23  ;;  %v1141_v47 = vor.u32 %v1140_v37, %v1136_v23  ;;  %v1227_v39 = vor.u32 %v7062_v51, %v7059_v49  ;;  %v1189_v37 = vor.u32 %v1188_v50, %v1184_v12 }
  0xa0   : > { %v1212_v8 = vrot.slane %v8441_v17, 4  ;;  %v1185_v54 = vsel %vm7224_vm0, %v1180_v44, %v1184_v12  ;;  %v1208_v45 = vrot.slane %v1206_v26, 5  ;;  %v1218_v18 = vrot.slane %v1216_v5, 5 }
  0xa1   : > { %v1142_v41 = vrot.slane %v1141_v47, 4  ;;  %v1228_v15 = vrot.slane %v1227_v39, 4  ;;  %v1230_v24 = vshll.u32 %v7044_v36, 16  ;;  %v8442_v22 = vshrl.u32 %v7044_v36, 16 }
  0xa2   : > { %5894 = vmatmul.mubr.msk.bf16.vlgmr.msra.gmra.mrb[0].mxu0 %vm1556_vm10, %v7167_v28  ;;  %v1190_v23 = vrot.slane %v1189_v37, 4  ;;  %v1213_v56 = vor.u32 %v1212_v8, %v1208_v45  ;;  %v1240_v27 = vshll.u32 %v7144_v61, 16  ;;  %v1251_v36 = vor.u32 %v7076_v3, %v7073_v59 }
  0xa3   : > { %5914 = vmatpush3.bf16.msra.mxu0 %v2098_v57  ;;  %5897 = vmatprep.mubr.msk.bf16.mxu0 %vm1556_vm10, %v7200_v9  ;;  %v1236_v49 = vrot.slane %v8442_v22, 4  ;;  %v1147_v51 = vsel %vm7224_vm0, %v1142_v41, %v1146_v21  ;;  %v1209_v57 = vsel %vm7224_vm0, %v1204_v14, %v1208_v45  ;;  %v1232_v25 = vrot.slane %v1230_v24, 5 }
  0xa4   : > { %6499 = vmatprep.subr.msk.bf16.mxu0 %vm1587_vm9, %v7261_v32  ;;  %v7283_v44 = vcombine.low %v1137_v43, %v1147_v51  ;;  %v1195_v50 = vsel %vm7224_vm0, %v1190_v23, %v1194_v35  ;;  %v1214_v6 = vrot.slane %v1213_v56, 4  ;;  %v1254_v47 = vshll.u32 %v7049_v40, 16 }
  0xa5   : > { %v8443_v21 = vshrl.u32 %v7049_v40, 16  ;;  %v7293_v26 = vcombine.low %v1185_v54, %v1195_v50  ;;  %v1233_v14 = vsel %vm7224_vm0, %v1228_v15, %v1232_v25  ;;  %v1237_v43 = vor.u32 %v1236_v49, %v1232_v25 }
  0xa6   : > { %v1242_v17 = vrot.slane %v1240_v27, 5  ;;  %v1219_v61 = vsel %vm7224_vm0, %v1214_v6, %v1218_v18  ;;  %v1252_v59 = vrot.slane %v1251_v36, 4  ;;  %v1256_v3 = vrot.slane %v1254_v47, 5 }
  0xa7   : > { %v1260_v12 = vrot.slane %v8443_v21, 4  ;;  %v1264_v35 = vshll.u32 %v7156_v63, 16  ;;  %v7300_v8 = vcombine.low %v1209_v57, %v1219_v61  ;;  %v1238_v5 = vrot.slane %v1237_v43, 4  ;;  %v8448_v43 = vld [vmem:[#allocation15_spill] sm:$0xff]  ;;  %v1094_v61 = vld [vmem:[#allocation2 + $0x74] sm:$0x1] }
  0xa8   : > { %v1275_v40 = vor.u32 %v7100_v30, %v7078_v4  ;;  %v1278_v39 = vshll.u32 %v7071_v10, 16  ;;  %v1257_v41 = vsel %vm7224_vm0, %v1252_v59, %v1256_v3  ;;  %v8444_v45 = vshrl.u32 %v7071_v10, 16 }
  0xa9   : > { %v1261_v54 = vor.u32 %v1260_v12, %v1256_v3  ;;  %v1266_v37 = vrot.slane %v1264_v35, 5  ;;  %v1243_v63 = vsel %vm7224_vm0, %v1238_v5, %v1242_v17  ;;  %v1288_v15 = vshll.u32 %v7187_v48, 16  ;;  %v8447_v12 = vld [vmem:[#allocation17_spill] sm:$0xff] }
  0xaa   : > { %5898 = vmatmul.mubr.msk.bf16.gmra.mrb[4].mxu0 %vm1556_vm10, %v7202_v11  ;;  %v1284_v18 = vrot.slane %v8444_v45, 4  ;;  %v1276_v4 = vrot.slane %v1275_v40, 4  ;;  %v1280_v30 = vrot.slane %v1278_v39, 5  ;;  %v7316_v24 = vcombine.low %v1233_v14, %v1243_v63 }
  0xab   : > { %5901 = vmatprep.mubr.msk.bf16.mxu0 %vm1556_vm10, %v7210_v53  ;;  %v1262_v22 = vrot.slane %v1261_v54, 4  ;;  %v1299_v49 = vor.u32 %v7108_v38, %v7102_v31  ;;  %v1302_v51 = vshll.u32 %v7092_v20, 16  ;;  %v1290_v56 = vrot.slane %v1288_v15, 5  ;;  %v8446_v38 = vld [vmem:[#allocation16_spill] sm:$0xff] }
  0xac   : > { %v1281_v23 = vsel %vm7224_vm0, %v1276_v4, %v1280_v30  ;;  %v1285_v57 = vor.u32 %v1284_v18, %v1280_v30  ;;  %v8445_v25 = vshrl.u32 %v7092_v20, 16  ;;  %v1312_v47 = vshll.u32 %v7205_v29, 16  ;;  %v1397_v30 = vld [vmem:[#allocation2 + $0x6c] sm:$0xe] }
  0xad   : > { %v1267_v36 = vsel %vm7224_vm0, %v1262_v22, %v1266_v37  ;;  %v1300_v50 = vrot.slane %v1299_v49, 4  ;;  %v1304_v6 = vrot.slane %v1302_v51, 5  ;;  %v1323_v14 = vor.u32 %v8447_v12, %v8446_v38  ;;  %v1081_v38 = vld [vmem:[#allocation2 + $0x78] sm:$0xf]  ;;  %v7418_v12 = vld [vmem:[#allocation2 + $0x7c] sm:$0xf] }
  0xae   : > { %v1308_v27 = vrot.slane %v8445_v25, 4  ;;  %v7328_v21 = vcombine.low %v1257_v41, %v1267_v36  ;;  %v1286_v31 = vrot.slane %v1285_v57, 4  ;;  %v1326_v17 = vshll.u32 %v8448_v43, 16  ;;  %v8450_v57 = vld [vmem:[#allocation7_spill] sm:$0xff]  ;;  %v5421_v25 = vld [vmem:[%s8375_s3 + $0xa] sm:$0x3] }
  0xaf   : > { %v1305_v59 = vsel %vm7224_vm0, %v1300_v50, %v1304_v6  ;;  %v1314_v35 = vrot.slane %v1312_v47, 5  ;;  %v8449_v5 = vshrl.u32 %v8448_v43, 16  ;;  %v1324_v41 = vrot.slane %v1323_v14, 4  ;;  %v8452_v36 = vld [vmem:[#allocation9_spill] sm:$0xff]  ;;  %v8453_v50 = vld [vmem:[#allocation10_spill] sm:$0xff] }
  0xb0   : > { %v1309_v3 = vor.u32 %v1308_v27, %v1304_v6  ;;  %v1291_v39 = vsel %vm7224_vm0, %v1286_v31, %v1290_v56  ;;  %v1328_v54 = vrot.slane %v1326_v17, 5  ;;  %v1336_v37 = vshll.u32 %v1094_v61, 16  ;;  %v8451_v27 = vld [vmem:[#allocation8_spill] sm:$0xff]  ;;  %v8454_v6 = vld [vmem:[#allocation11_spill] sm:$0xff]  ;;  %v8456_v47 = vld [vmem:[#allocation14_spill] sm:$0xff] }
  0xb1   : > { %v1332_v40 = vrot.slane %v8449_v5, 4  ;;  %v1491_v45 = vsel %vm7113_vm13, %v5330_v13, %v1490_v60  ;;  %v1494_v18 = vsel %vm7113_vm13, %v7221_v0, %v1493_v58  ;;  %v7352_v63 = vcombine.low %v1281_v23, %v1291_v39  ;;  %v8457_v31 = vld [vmem:[#allocation18_spill] sm:$0xff]  ;;  %v5433_v17 = vld [vmem:[%s8375_s3 + $0xc] sm:$0x3]  ;;  %v8458_v5 = vld [vmem:[#allocation5_spill] sm:$0xff] }
  0xb2   : > { %5902 = vmatmul.mubr.msk.bf16.gmra.mrb[8].mxu0 %vm1556_vm10, %v7215_v33  ;;  %v1310_v4 = vrot.slane %v1309_v3, 4  ;;  %v1504_v10 = vrot.slane %v8448_v43, 5  ;;  %v1329_v55 = vsel %vm7224_vm0, %v1324_v41, %v1328_v54  ;;  %v1338_v60 = vrot.slane %v1336_v37, 5 }
  0xb3   : > { %5905 = vmatprep.mubr.msk.bf16.mxu0 %vm1556_vm10, %v7217_v34  ;;  %v1333_v15 = vor.u32 %v1332_v40, %v1328_v54  ;;  %v1498_v48 = vsel %vm7113_vm13, %v5331_v52, %v1497_v19  ;;  %v1501_v13 = vsel %vm7113_vm13, %v7236_v2, %v1500_v46  ;;  %v7374_v49 = vcombine.low %v1491_v45, %v1494_v18  ;;  %v7444_v18 = vld [vmem:[#allocation2 + $0x80] sm:$0x1] }
  0xb4   : > { %v1315_v58 = vsel %vm7224_vm0, %v1310_v4, %v1314_v35  ;;  %v5332_v20 = vrot.slane %v1397_v30, 9  ;;  %v7376_v51 = vcombine.low %v1498_v48, %v1501_v13  ;;  %v1506_v1 = vrot.slane %v1504_v10, 4  ;;  %v8459_v30 = vld [vmem:[#allocation6_spill] sm:$0xff] }
  0xb5   : > { %v7372_v0 = vcombine.low %v1305_v59, %v1315_v58  ;;  %v1334_v22 = vrot.slane %v1333_v15, 4  ;;  %v1507_v23 = vrot.slane %v1094_v61, 5  ;;  %v2242_v56 = vsel %vm1587_vm9, %v7261_v32, 0  ;;  %v8455_v32 = vld [vmem:[#allocation12_spill] sm:$0xff] }
  0xb6   : > { %v1505_v52 = vsel %vm7113_vm13, %v5332_v20, %v1504_v10  ;;  %v7421_v14 = vcombine.low %v1081_v38, %v7418_v12  ;;  %v2386_v43 = vsel %vm1587_vm9, %v5421_v25, 0  ;;  %v1341_v61 = vshrl.u32 %v1081_v38, 16 }
  0xb7   : > { %v1339_v29 = vsel %vm7224_vm0, %v1334_v22, %v1338_v60  ;;  %v1508_v46 = vsel %vm7113_vm13, %v1506_v1, %v1507_v23  ;;  %v1344_v59 = vshll.u32 %v1081_v38, 16  ;;  %v1354_v3 = vshrl.u32 %v7418_v12, 16  ;;  %v5335_v38 = vld [vmem:[%s8375_s3 + $0x2] sm:$0x3] }
  0xb8   : > { %v7380_v19 = vcombine.low %v1329_v55, %v1339_v29  ;;  %v7390_v2 = vcombine.low %v1505_v52, %v1508_v46  ;;  %v1350_v35 = vshll.u32 %v7418_v12, 16  ;;  %v1101_v40 = vshrl.u32 %v8458_v5, 16  ;;  %v8460_v52 = vld [vmem:[#allocation13_spill] sm:$0xff]  ;;  %6495 = vmatprep.subr.msk.bf16.mxu1 %vm1587_vm9, %v5335_v38 }
  0xb9   : > { %v1343_v39 = vrot.slane %v1341_v61, 4  ;;  %v1346_v41 = vrot.slane %v1344_v59, 5  ;;  %v1104_v54 = vshll.u32 %v8458_v5, 16  ;;  %v1356_v45 = vrot.slane %v1354_v3, 4 }
  0xba   : > { %5906 = vmatmul.mubr.msk.bf16.gmra.mrb[12].mxu0 %vm1556_vm10, %v7374_v49  ;;  %v1352_v37 = vrot.slane %v1350_v35, 5  ;;  %v1103_v4 = vrot.slane %v1101_v40, 4  ;;  %v1114_v10 = vshrl.u32 %v8459_v30, 16  ;;  %v1360_v48 = vshll.u32 %v7444_v18, 16 }
  0xbb   : > { %5909 = vmatprep.mubr.msk.bf16.mxu0 %vm1556_vm10, %v7376_v51  ;;  %v1347_v55 = vor.u32 %v1346_v41, %v1343_v39  ;;  %v1106_v15 = vrot.slane %v1104_v54, 5  ;;  %v1110_v13 = vshll.u32 %v8459_v30, 16  ;;  %v1120_v46 = vshll.u32 %v8460_v52, 16  ;;  %v5445_v54 = vld [vmem:[%s8375_s3 + $0xe] sm:$0x3] }
  0xbc   : > { %v1357_v60 = vor.u32 %v1356_v45, %v1352_v37  ;;  %v1116_v20 = vrot.slane %v1114_v10, 4  ;;  %v1362_v23 = vrot.slane %v1360_v48, 5  ;;  %v1589_v3 = vsel %vm1587_vm9, %v5335_v38, 0  ;;  %v5457_v10 = vld [vmem:[%s8375_s3 + $0x10] sm:$0x3] }
  0xbd   : > { %v1112_v58 = vrot.slane %v1110_v13, 5  ;;  %v1348_v22 = vrot.slane %v1347_v55, 4  ;;  %v1107_v29 = vor.u32 %v1106_v15, %v1103_v4  ;;  %5848 = vmatpush3.bf16.msra.mxu1 %v1589_v3  ;;  %v2531_v41 = vsel %vm1587_vm9, %v5433_v17, 0  ;;  %v3033_v52 = vld [vmem:[#allocation3 + $0xc] sm:$0x1] }
  0xbe   : > { %v1358_v1 = vrot.slane %v1357_v60, 4  ;;  %v1514_v45 = vrot.slane %v7444_v18, 5  ;;  %v2675_v18 = vsel %vm1587_vm9, %v5445_v54, 0  ;;  %v1096_v60 = vld [vmem:[#allocation2 + $0x8c] sm:$0x1]  ;;  %vm3028_vm2 = vcmask 57344  }
  0xbf   : > { %v1353_v61 = vsel %vm7224_vm0, %v1348_v22, %v1352_v37  ;;  %vm7605_vm4 = vmand %vm3028_vm2, %vm513_vm1  ;;  %vm3351_vm1 = vcmask 60416  }
  0xc0   : > { %v1363_v59 = vsel %vm7224_vm0, %v1358_v1, %v1362_v23  ;;  %vm7618_vm5 = vmand %vm3028_vm2, %vm551_vm3 }
  0xc1   : > { %v7471_v39 = vcombine.low %v1353_v61, %v1363_v59  ;;  %v3064_v61 = vld [vmem:[#allocation3 + $0x14] sm:$0x1]  ;;  %vm7713_vm6 = vmand %vm3351_vm1, %vm551_vm3 }
  0xc2   : > { %5910 = vmatmul.mubr.msk.bf16.gmra.mrb[16].mxu0 %vm1556_vm10, %v7390_v2  ;;  %v3065_v3 = vsel %vm7618_vm5, 0, %v3064_v61  ;;  %v7693_v61 = vld [vmem:[%s8377_s5] ss:$0 sm:$0xff] }
  0xc3   : > { %5915 = vmatprep.mubr.msk.bf16.mxu0 %vm1556_vm10, %v8450_v57  ;;  %v1117_v57 = vor.u32 %v1116_v20, %v1112_v58  ;;  %3066 = vst [vmem:[#allocation3 + $0x14] sm:$0x1] %v3065_v3 }
  0xca   : > { %5916 = vmatmul.mubr.msk.bf16.vlgmr.msra.gmra.mrb[0].mxu0 %vm1556_vm10, %v8451_v27 }
  0xcb   : > { %5936 = vmatpush3.bf16.msra.mxu0 %v2242_v56  ;;  %5919 = vmatprep.mubr.msk.bf16.mxu0 %vm1556_vm10, %v8452_v36  ;;  %v1108_v56 = vrot.slane %v1107_v29, 4 }
  0xcc   : > { %6500 = vmatprep.subr.msk.bf16.mxu0 %vm1587_vm9, %v5421_v25  ;;  %v1122_v25 = vrot.slane %v1120_v46, 5 }
  0xcd   : > { %v1113_v35 = vsel %vm7224_vm0, %v1108_v56, %v1112_v58  ;;  %v3030_v56 = vld [vmem:[#allocation3] sm:$0x1] }
  0xce   : > { %v3031_v38 = vsel %vm7605_vm4, 0, %v3030_v56 }
  0xcf   : > { %3032 = vst [vmem:[#allocation3] sm:$0x1] %v3031_v38 }
  0xd2   : > { %5920 = vmatmul.mubr.msk.bf16.gmra.mrb[4].mxu0 %vm1556_vm10, %v8453_v50 }
  0xd3   : > { %5923 = vmatprep.mubr.msk.bf16.mxu0 %vm1556_vm10, %v8454_v6 }
  0xda   : > { %5924 = vmatmul.mubr.msk.bf16.gmra.mrb[8].mxu0 %vm1556_vm10, %v8455_v32 }
  0xdb   : > { %5927 = vmatprep.mubr.msk.bf16.mxu0 %vm1556_vm10, %v8456_v47 }
  0xe2   : > { %5928 = vmatmul.mubr.msk.bf16.gmra.mrb[12].mxu0 %vm1556_vm10, %v8457_v31 }
  0xe3   : > { %5931 = vmatprep.mubr.msk.bf16.mxu0 %vm1556_vm10, %v7132_v7 }
  0xea   : > { %5932 = vmatmul.mubr.msk.bf16.gmra.mrb[16].mxu0 %vm1556_vm10, %v7421_v14 }
  0xeb   : > { %5937 = vmatprep.mubr.msk.bf16.mxu0 %vm1556_vm10, %v7283_v44 }
  0xf2   : > { %5938 = vmatmul.mubr.msk.bf16.vlgmr.msra.gmra.mrb[0].mxu0 %vm1556_vm10, %v7246_v16 }
  0xf3   : > { %5958 = vmatpush3.bf16.msra.mxu0 %v2386_v43  ;;  %5941 = vmatprep.mubr.msk.bf16.mxu0 %vm1556_vm10, %v7293_v26  ;;  %v1118_v43 = vrot.slane %v1117_v57, 4  ;;  %v3034_v57 = vsel %vm7605_vm4, 0, %v3033_v52 }
  0xf4   : > { %6501 = vmatprep.subr.msk.bf16.mxu0 %vm1587_vm9, %v5433_v17  ;;  %3035 = vst [vmem:[#allocation3 + $0xc] sm:$0x1] %v3034_v57  ;;  %v7687_v57 = vld [vmem:[%s8376_s4] ss:$0 sm:$0xff] }
  0xf5   : > { %v1123_v5 = vsel %vm7224_vm0, %v1118_v43, %v1122_v25 }
  0xf6   : > { %v5336_v40 = vcombine.low %v1113_v35, %v1123_v5  ;;  %v3061_v35 = vld [vmem:[#allocation3 + $0x8] sm:$0x1] }
  0xf7   : > { %v3062_v5 = vsel %vm7618_vm5, 0, %v3061_v35 }
  0xf8   : > { %5849 = vmatprep.mubr.msk.bf16.mxu1 %vm1556_vm10, %v5336_v40  ;;  %3063 = vst [vmem:[#allocation3 + $0x8] sm:$0x1] %v3062_v5  ;;  %v3039_v40 = vld [vmem:[#allocation3 + $0x24] sm:$0x1] }
  0xf9   : > { %5850 = vmatmul.mubr.msk.bf16.vlgmr.msra.gmra.mrb[0].mxu1 %vm1556_vm10, %v7283_v44  ;;  %v1398_v44 = vld [vmem:[#allocation2 + $0x78] sm:$0xe] }
  0xfa   : > { %5942 = vmatmul.mubr.msk.bf16.gmra.mrb[4].mxu0 %vm1556_vm10, %v7300_v8  ;;  %5853 = vmatprep.mubr.msk.bf16.mxu1 %vm1556_vm10, %v7246_v16  ;;  %v5333_v17 = vrot.slane %v1398_v44, 9 }
  0xfb   : > { %5945 = vmatprep.mubr.msk.bf16.mxu0 %vm1556_vm10, %v7316_v24 }
 0x101   : > { %5854 = vmatmul.mubr.msk.bf16.gmra.mrb[4].mxu1 %vm1556_vm10, %v7293_v26 }
 0x102   : > { %5946 = vmatmul.mubr.msk.bf16.gmra.mrb[8].mxu0 %vm1556_vm10, %v7328_v21  ;;  %5857 = vmatprep.mubr.msk.bf16.mxu1 %vm1556_vm10, %v7300_v8 }
 0x103   : > { %5949 = vmatprep.mubr.msk.bf16.mxu0 %vm1556_vm10, %v7352_v63 }
 0x109   : > { %5858 = vmatmul.mubr.msk.bf16.gmra.mrb[8].mxu1 %vm1556_vm10, %v7316_v24 }
 0x10a   : > { %5950 = vmatmul.mubr.msk.bf16.gmra.mrb[12].mxu0 %vm1556_vm10, %v7372_v0  ;;  %5861 = vmatprep.mubr.msk.bf16.mxu1 %vm1556_vm10, %v7328_v21 }
 0x10b   : > { %5953 = vmatprep.mubr.msk.bf16.mxu0 %vm1556_vm10, %v7380_v19 }
 0x111   : > { %5862 = vmatmul.mubr.msk.bf16.gmra.mrb[12].mxu1 %vm1556_vm10, %v7352_v63 }
 0x112   : > { %5954 = vmatmul.mubr.msk.bf16.gmra.mrb[16].mxu0 %vm1556_vm10, %v7471_v39  ;;  %5865 = vmatprep.mubr.msk.bf16.mxu1 %vm1556_vm10, %v7372_v0 }
 0x113   : > { %5959 = vmatprep.mubr.msk.bf16.mxu0 %vm1556_vm10, %v7167_v28  ;;  %v1511_v28 = vrot.slane %v7418_v12, 5 }
 0x115   : > { %v1513_v37 = vrot.slane %v1511_v28, 4  ;;  %v1512_v4 = vsel %vm7113_vm13, %v5333_v17, %v1511_v28 }
 0x117   : > { %v1515_v12 = vsel %vm7113_vm13, %v1513_v37, %v1514_v45  ;;  %v3070_v45 = vld [vmem:[#allocation3 + $0x2c] sm:$0x1] }
 0x118   : > { %v5422_v30 = vcombine.low %v1512_v4, %v1515_v12  ;;  %v3071_v4 = vsel %vm7618_vm5, 0, %v3070_v45  ;;  %v3067_v12 = vld [vmem:[#allocation3 + $0x20] sm:$0x1] }
 0x119   : > { %5866 = vmatmul.mubr.msk.bf16.gmra.mrb[16].mxu1 %vm1556_vm10, %v7380_v19  ;;  %3072 = vst [vmem:[#allocation3 + $0x2c] sm:$0x1] %v3071_v4 }
 0x11a   : > { %5960 = vmatmul.mubr.msk.bf16.vlgmr.msra.gmra.mrb[0].mxu0 %vm1556_vm10, %v7200_v9 }
 0x11b   : > { %5980 = vmatpush3.bf16.msra.mxu0 %v2531_v41  ;;  %5963 = vmatprep.mubr.msk.bf16.mxu0 %vm1556_vm10, %v7202_v11  ;;  %v3036_v41 = vld [vmem:[#allocation3 + $0x18] sm:$0x1] }
 0x11c   : > { %6502 = vmatprep.subr.msk.bf16.mxu0 %vm1587_vm9, %v5445_v54  ;;  %v3037_v54 = vsel %vm7605_vm4, 0, %v3036_v41 }
 0x11d   : > { %3038 = vst [vmem:[#allocation3 + $0x18] sm:$0x1] %v3037_v54 }
 0x122   : > { %5964 = vmatmul.mubr.msk.bf16.gmra.mrb[4].mxu0 %vm1556_vm10, %v7210_v53 }
 0x123   : > { %5967 = vmatprep.mubr.msk.bf16.mxu0 %vm1556_vm10, %v7215_v33 }
 0x12a   : > { %5968 = vmatmul.mubr.msk.bf16.gmra.mrb[8].mxu0 %vm1556_vm10, %v7217_v34 }
 0x12b   : > { %5971 = vmatprep.mubr.msk.bf16.mxu0 %vm1556_vm10, %v7374_v49 }
 0x132   : > { %5972 = vmatmul.mubr.msk.bf16.gmra.mrb[12].mxu0 %vm1556_vm10, %v7376_v51 }
 0x133   : > { %5975 = vmatprep.mubr.msk.bf16.mxu0 %vm1556_vm10, %v7390_v2 }
 0x13a   : > { %5976 = vmatmul.mubr.msk.bf16.gmra.mrb[16].mxu0 %vm1556_vm10, %v5422_v30 }
 0x13b   : > { %5981 = vmatprep.mubr.msk.bf16.mxu0 %vm1556_vm10, %v8451_v27  ;;  %v1083_v27 = vld [vmem:[#allocation2 + $0x84] sm:$0xf] }
 0x142   : > { %5982 = vmatmul.mubr.msk.bf16.vlgmr.msra.gmra.mrb[0].mxu0 %vm1556_vm10, %v8452_v36  ;;  %v1084_v36 = vld [vmem:[#allocation2 + $0x88] sm:$0xf] }
 0x143   : > { %6002 = vmatpush3.bf16.msra.mxu0 %v2675_v18  ;;  %5985 = vmatprep.mubr.msk.bf16.mxu0 %vm1556_vm10, %v8453_v50  ;;  %v5434_v50 = vcombine.low %v1083_v27, %v1084_v36 }
 0x144   : > { %6503 = vmatprep.subr.msk.bf16.mxu0 %vm1587_vm9, %v5457_v10 }
 0x14a   : > { %5986 = vmatmul.mubr.msk.bf16.gmra.mrb[4].mxu0 %vm1556_vm10, %v8454_v6  ;;  %v2819_v6 = vsel %vm1587_vm9, %v5457_v10, 0 }
 0x14b   : > { %5989 = vmatprep.mubr.msk.bf16.mxu0 %vm1556_vm10, %v8455_v32  ;;  %v1368_v32 = vshll.u32 %v1083_v27, 16 }
 0x152   : > { %5990 = vmatmul.mubr.msk.bf16.gmra.mrb[8].mxu0 %vm1556_vm10, %v8456_v47  ;;  %v1378_v47 = vshrl.u32 %v1084_v36, 16 }
 0x153   : > { %5993 = vmatprep.mubr.msk.bf16.mxu0 %vm1556_vm10, %v8457_v31  ;;  %v1374_v31 = vshll.u32 %v1084_v36, 16 }
 0x154   : > { %v1380_v15 = vrot.slane %v1378_v47, 4  ;;  %v3076_v47 = vld [vmem:[#allocation3 + $0x44] sm:$0x1] }
 0x155   : > { %v1376_v55 = vrot.slane %v1374_v31, 5  ;;  %v3077_v31 = vsel %vm7618_vm5, 0, %v3076_v47 }
 0x156   : > { %3078 = vst [vmem:[#allocation3 + $0x44] sm:$0x1] %v3077_v31 }
 0x15a   : > { %5994 = vmatmul.mubr.msk.bf16.gmra.mrb[12].mxu0 %vm1556_vm10, %v7132_v7  ;;  %v1365_v7 = vshrl.u32 %v1083_v27, 16  ;;  %v3045_v27 = vld [vmem:[#allocation3 + $0x3c] sm:$0x1] }
 0x15b   : > { %5997 = vmatprep.mubr.msk.bf16.mxu0 %vm1556_vm10, %v7421_v14  ;;  %v1370_v14 = vrot.slane %v1368_v32, 5 }
 0x162   : > { %5998 = vmatmul.mubr.msk.bf16.gmra.mrb[16].mxu0 %vm1556_vm10, %v5434_v50  ;;  %v3046_v50 = vsel %vm7605_vm4, 0, %v3045_v27 }
 0x163   : > { %6003 = vmatprep.mubr.msk.bf16.mxu0 %vm1556_vm10, %v7246_v16  ;;  %v1367_v16 = vrot.slane %v1365_v7, 4  ;;  %3047 = vst [vmem:[#allocation3 + $0x3c] sm:$0x1] %v3046_v50 }
 0x16a   : > { %6004 = vmatmul.mubr.msk.bf16.vlgmr.msra.gmra.mrb[0].mxu0 %vm1556_vm10, %v7293_v26  ;;  %v1371_v26 = vor.u32 %v1370_v14, %v1367_v16  ;;  %v3073_v16 = vld [vmem:[#allocation3 + $0x38] sm:$0x1] }
 0x16b   : > { %6024 = vmatpush3.bf16.msra.mxu0 %v2819_v6  ;;  %6007 = vmatprep.mubr.msk.bf16.mxu0 %vm1556_vm10, %v7300_v8  ;;  %v1381_v8 = vor.u32 %v1380_v15, %v1376_v55  ;;  %v3042_v6 = vld [vmem:[#allocation3 + $0x30] sm:$0x1]  ;;  %v3074_v14 = vsel %vm7618_vm5, 0, %v3073_v16 }
 0x16c   : > { %v1372_v48 = vrot.slane %v1371_v26, 4  ;;  %v3043_v32 = vsel %vm7605_vm4, 0, %v3042_v6  ;;  %3075 = vst [vmem:[#allocation3 + $0x38] sm:$0x1] %v3074_v14 }
 0x16d   : > { %v1382_v13 = vrot.slane %v1381_v8, 4  ;;  %3044 = vst [vmem:[#allocation3 + $0x30] sm:$0x1] %v3043_v32 }
 0x172   : > { %6008 = vmatmul.mubr.msk.bf16.gmra.mrb[4].mxu0 %vm1556_vm10, %v7316_v24  ;;  %v1384_v24 = vshll.u32 %v1096_v60, 16 }
 0x173   : > { %6011 = vmatprep.mubr.msk.bf16.mxu0 %vm1556_vm10, %v7328_v21  ;;  %v1377_v21 = vsel %vm7224_vm0, %v1372_v48, %v1376_v55  ;;  %v3051_v55 = vld [vmem:[#allocation3 + $0x54] sm:$0x1] }
 0x174   : > { %v1386_v58 = vrot.slane %v1384_v24, 5  ;;  %v3052_v15 = vsel %vm7605_vm4, 0, %v3051_v55 }
 0x175   : > { %3053 = vst [vmem:[#allocation3 + $0x54] sm:$0x1] %v3052_v15 }
 0x17a   : > { %6012 = vmatmul.mubr.msk.bf16.gmra.mrb[8].mxu0 %vm1556_vm10, %v7352_v63  ;;  %v1387_v63 = vsel %vm7224_vm0, %v1382_v13, %v1386_v58  ;;  %v3082_v58 = vld [vmem:[#allocation3 + $0x5c] sm:$0x1] }
 0x17b   : > { %6015 = vmatprep.mubr.msk.bf16.mxu0 %vm1556_vm10, %v7372_v0  ;;  %v5446_v22 = vcombine.low %v1377_v21, %v1387_v63  ;;  %v1518_v0 = vrot.slane %v1084_v36, 5  ;;  %v3083_v21 = vsel %vm7618_vm5, 0, %v3082_v58  ;;  %v3079_v63 = vld [vmem:[#allocation3 + $0x50] sm:$0x1] }
 0x17c   : > { %3084 = vst [vmem:[#allocation3 + $0x5c] sm:$0x1] %v3083_v21 }
 0x17d   : > { %v1520_v20 = vrot.slane %v1518_v0, 4 }
 0x182   : > { %6016 = vmatmul.mubr.msk.bf16.gmra.mrb[12].mxu0 %vm1556_vm10, %v7380_v19 }
 0x183   : > { %6019 = vmatprep.mubr.msk.bf16.mxu0 %vm1556_vm10, %v7471_v39  ;;  %v3040_v39 = vsel %vm7605_vm4, 0, %v3039_v40 }
 0x184   : > { %3041 = vst [vmem:[#allocation3 + $0x24] sm:$0x1] %v3040_v39 }
 0x18a   : > { %6020 = vmatmul.mubr.msk.bf16.gmra.mrb[16].mxu0 %vm1556_vm10, %v5446_v22  ;;  %v3080_v22 = vsel %vm7618_vm5, 0, %v3079_v63 }
 0x18b   : > { %6025 = vmatprep.mubr.msk.bf16.mxu0 %vm1556_vm10, %v7200_v9  ;;  %v1399_v9 = vld [vmem:[#allocation2 + $0x84] sm:$0xe]  ;;  %3081 = vst [vmem:[#allocation3 + $0x50] sm:$0x1] %v3080_v22 }
 0x18c   : > { %v5334_v19 = vrot.slane %v1399_v9, 9 }
 0x192   : > { %6026 = vmatmul.mubr.msk.bf16.vlgmr.msra.gmra.mrb[0].mxu0 %vm1556_vm10, %v7202_v11  ;;  %v1521_v11 = vrot.slane %v1096_v60, 5  ;;  %v3048_v60 = vld [vmem:[#allocation3 + $0x48] sm:$0x1] }
 0x193   : > { %6029 = vmatprep.mubr.msk.bf16.mxu0 %vm1556_vm10, %v7210_v53  ;;  %v1519_v53 = vsel %vm7113_vm13, %v5334_v19, %v1518_v0  ;;  %v3049_v26 = vsel %vm7605_vm4, 0, %v3048_v60  ;;  %v3057_v0 = vld [vmem:[#allocation3 + $0x6c] sm:$0x1]  ;;  %v3054_v19 = vld [vmem:[#allocation3 + $0x60] sm:$0x1] }
 0x194   : > { %3050 = vst [vmem:[#allocation3 + $0x48] sm:$0x1] %v3049_v26  ;;  %v3058_v9 = vsel %vm7605_vm4, 0, %v3057_v0 }
 0x195   : > { %3059 = vst [vmem:[#allocation3 + $0x6c] sm:$0x1] %v3058_v9 }
 0x19a   : > { %6030 = vmatmul.mubr.msk.bf16.gmra.mrb[4].mxu0 %vm1556_vm10, %v7215_v33  ;;  %v1522_v33 = vsel %vm7113_vm13, %v1520_v20, %v1521_v11  ;;  %v3055_v20 = vsel %vm7605_vm4, 0, %v3054_v19  ;;  %v3088_v11 = vld [vmem:[#allocation3 + $0x74] sm:$0x1] }
 0x19b   : > { %6033 = vmatprep.mubr.msk.bf16.mxu0 %vm1556_vm10, %v7217_v34  ;;  %v5458_v34 = vcombine.low %v1519_v53, %v1522_v33  ;;  %3056 = vst [vmem:[#allocation3 + $0x60] sm:$0x1] %v3055_v20  ;;  %v3089_v53 = vsel %vm7618_vm5, 0, %v3088_v11  ;;  %v3085_v33 = vld [vmem:[#allocation3 + $0x68] sm:$0x1] }
 0x19c   : > { %3090 = vst [vmem:[#allocation3 + $0x74] sm:$0x1] %v3089_v53  ;;  %v3361_v11 = vld [vmem:[#allocation3 + $0xc] sm:$0xf] }
 0x1a2   : > { %6034 = vmatmul.mubr.msk.bf16.gmra.mrb[8].mxu0 %vm1556_vm10, %v7374_v49 }
 0x1a3   : > { %6037 = vmatprep.mubr.msk.bf16.mxu0 %vm1556_vm10, %v7376_v51 }
 0x1aa   : > { %6038 = vmatmul.mubr.msk.bf16.gmra.mrb[12].mxu0 %vm1556_vm10, %v7390_v2 }
 0x1ab   : > { %6041 = vmatprep.mubr.msk.bf16.mxu0 %vm1556_vm10, %v5422_v30  ;;  %v3068_v30 = vsel %vm7618_vm5, 0, %v3067_v12 }
 0x1ac   : > { %3069 = vst [vmem:[#allocation3 + $0x20] sm:$0x1] %v3068_v30 }
 0x1b2   : > { %6042 = vmatmul.mubr.msk.bf16.gmra.mrb[16].mxu0 %vm1556_vm10, %v5458_v34  ;;  %v3086_v34 = vsel %vm7618_vm5, 0, %v3085_v33 }
 0x1b3   : > { %3087 = vst [vmem:[#allocation3 + $0x68] sm:$0x1] %v3086_v34 }
 0x1cc   : > { %v7594_v49 = vpop.f32.mrb[0].mxu1 }
 0x1cd   : > { %v7596_v51 = vpop.f32.mrb[1].mxu1 }
 0x1ce   : > { %v7598_v1 = vpop.f32.mrb[2].mxu1 }
 0x1cf   : > { %v7600_v23 = vpop.f32.mrb[3].mxu1 }
 0x1d4   : > { %v7602_v2 = vpop.f32.mrb[4].mxu1 }
 0x1d5   : > { %v7609_v46 = vpop.f32.mrb[5].mxu1 }
 0x1d6   : > { %v7613_v25 = vpop.f32.mrb[6].mxu1 }
 0x1d7   : > { %v7622_v59 = vpop.f32.mrb[7].mxu1 }
 0x1dc   : > { %v7632_v28 = vpop.f32.mrb[8].mxu1 }
 0x1dd   : > { %v7634_v44 = vpop.f32.mrb[9].mxu1 }
 0x1de   : > { %v7636_v17 = vpop.f32.mrb[10].mxu1 }
 0x1df   : > { %v7638_v37 = vpop.f32.mrb[11].mxu1 }
 0x1e4   : > { %v7644_v18 = vpop.f32.mrb[12].mxu1 }
 0x1e5   : > { %v7646_v10 = vpop.f32.mrb[13].mxu1 }
 0x1e6   : > { %v7648_v36 = vpop.f32.mrb[14].mxu1 }
 0x1e7   : > { %v7652_v7 = vpop.f32.mrb[15].mxu1 }
 0x1ec   : > { %v7664_v8 = vpop.f32.mrb[16].mxu1 }
 0x1ed   : > { %v7666_v24 = vpop.f32.mrb[17].mxu1 }
 0x1ee   : > { %v7668_v48 = vpop.f32.mrb[18].mxu1 }
 0x1ef   : > { %v7670_v13 = vpop.f32.mrb[19].mxu1 }
 0x265   : > { %v6027_v52 = vpop.f32.mrb[0].mxu0 }
 0x266   : > { %v6207_v56 = vadd.f32 %v6027_v52, %v7594_v49  ;;  %v2855_v38 = vpop.f32.mrb[1].mxu0 }
 0x267   : > { %v6208_v3 = vadd.f32 %v2855_v38, %v7596_v51  ;;  %v6028_v35 = vpop.f32.mrb[2].mxu0 }
 0x268   : > { %v2963_v43 = vmul.f32 %v6207_v56, %v7687_v57  ;;  %v6209_v5 = vadd.f32 %v6028_v35, %v7598_v1  ;;  %v2858_v40 = vpop.f32.mrb[3].mxu0 }
 0x269   : > { %v2961_v39 = vmul.f32 %v6208_v3, %v7687_v57  ;;  %v6210_v41 = vadd.f32 %v2858_v40, %v7600_v23  ;;  %v3353_v3 = vld [vmem:[#allocation3] sm:$0xf] }
 0x26a   : > { %v2990_v49 = vadd.f32 %v7693_v61, %v2963_v43  ;;  %v2964_v54 = vmul.f32 %v6209_v5, %v7687_v57 }
 0x26b   : > { %v2988_v45 = vadd.f32 %v7693_v61, %v2961_v39  ;;  %v2962_v4 = vmul.f32 %v6210_v41, %v7687_v57  ;;  %v3365_v39 = vld [vmem:[#allocation3 + $0x14] sm:$0x1] }
 0x26c   : > { %v3010_v12 = vmax.f32 %v2990_v49, 0.0  ;;  %v2991_v51 = vadd.f32 %v7693_v61, %v2964_v54 }
 0x26d   : > { %v3008_v30 = vmax.f32 %v2988_v45, 0.0  ;;  %v2989_v27 = vadd.f32 %v7693_v61, %v2962_v4  ;;  %v6031_v1 = vpop.f32.mrb[4].mxu0 }
 0x26e   : > { %v5649_v50 = vpack.c.bf16 %v3010_v12, %v3010_v12  ;;  %v3011_v6 = vmax.f32 %v2991_v51, 0.0  ;;  %v6211_v32 = vadd.f32 %v6031_v1, %v7602_v2  ;;  %v2871_v23 = vpop.f32.mrb[5].mxu0  ;;  %v3358_v51 = vld [vmem:[#allocation3 + $0x8] sm:$0x1] }
 0x26f   : > { %v5647_v47 = vpack.c.bf16 %v3008_v30, %v3008_v30  ;;  %v3009_v31 = vmax.f32 %v2989_v27, 0.0  ;;  %v6212_v16 = vadd.f32 %v2871_v23, %v7609_v46  ;;  %v6032_v14 = vpop.f32.mrb[6].mxu0 }
 0x270   : > { %v3169_v55 = vshrl.u32 %v5649_v50, 16  ;;  %v3172_v15 = vshll.u32 %v5649_v50, 16  ;;  %v5650_v60 = vpack.c.bf16 %v3011_v6, %v3011_v6  ;;  %v2967_v26 = vmul.f32 %v6211_v32, %v7687_v57  ;;  %v2874_v58 = vpop.f32.mrb[7].mxu0 }
 0x271   : > { %v3152_v21 = vshrl.u32 %v5647_v47, 16  ;;  %v3155_v63 = vshll.u32 %v5647_v47, 16  ;;  %v5648_v22 = vpack.c.bf16 %v3009_v31, %v3009_v31  ;;  %v2965_v0 = vmul.f32 %v6212_v16, %v7687_v57 }
 0x272   : > { %v3171_v9 = vrot.slane %v3169_v55, 7  ;;  %v3177_v2 = vshrl.u32 %v5650_v60, 16  ;;  %v3180_v19 = vshll.u32 %v5650_v60, 16  ;;  %v2994_v20 = vadd.f32 %v7693_v61, %v2967_v26 }
 0x273   : > { %v3154_v53 = vrot.slane %v3152_v21, 7  ;;  %v3160_v33 = vshrl.u32 %v5648_v22, 16  ;;  %v3163_v34 = vshll.u32 %v5648_v22, 16  ;;  %v2992_v52 = vadd.f32 %v7693_v61, %v2965_v0 }
 0x274   : > { %v3174_v56 = vor.u32 %v3172_v15, %v3171_v9  ;;  %v3175_v38 = vrot.slane %v3171_v9, 4  ;;  %v3179_v35 = vrot.slane %v3177_v2, 7  ;;  %v3014_v43 = vmax.f32 %v2994_v20, 0.0  ;;  %v3375_v20 = vld [vmem:[#allocation3 + $0x24] sm:$0xf] }
 0x275   : > { %v3157_v5 = vor.u32 %v3155_v63, %v3154_v53  ;;  %v3158_v40 = vrot.slane %v3154_v53, 4  ;;  %v3162_v41 = vrot.slane %v3160_v33, 7  ;;  %v3012_v49 = vmax.f32 %v2992_v52, 0.0  ;;  %v6035_v54 = vpop.f32.mrb[8].mxu0 }
 0x276   : > { %v3362_v45 = vsel %vm7713_vm6, %v3174_v56, %v3361_v11  ;;  %v3182_v4 = vor.u32 %v3180_v19, %v3179_v35  ;;  %v3184_v12 = vrot.slane %v3179_v35, 4  ;;  %v5653_v30 = vpack.c.bf16 %v3014_v43, %v3014_v43  ;;  %v2887_v27 = vpop.f32.mrb[9].mxu0 }
 0x277   : > { %3363 = vst [vmem:[#allocation3 + $0xc] sm:$0xf] %v3362_v45  ;;  %v3354_v1 = vsel %vm7713_vm6, %v3157_v5, %v3353_v3  ;;  %v3165_v50 = vor.u32 %v3163_v34, %v3162_v41  ;;  %v3167_v6 = vrot.slane %v3162_v41, 4  ;;  %v5651_v32 = vpack.c.bf16 %v3012_v49, %v3012_v49  ;;  %v6036_v23 = vpop.f32.mrb[10].mxu0 }
 0x278   : > { %3355 = vst [vmem:[#allocation3] sm:$0xf] %v3354_v1  ;;  %v3183_v31 = vsel %vm6828_vm8, %v3175_v38, %v3182_v4  ;;  %v3366_v16 = vsel %vm7605_vm4, %v3184_v12, %v3365_v39  ;;  %v3203_v55 = vshrl.u32 %v5653_v30, 16  ;;  %v3206_v15 = vshll.u32 %v5653_v30, 16  ;;  %v2890_v60 = vpop.f32.mrb[11].mxu0 }
 0x279   : > { %3364 = vst.msk [vmem:[#allocation3 + $0x10] sm:$0xf] %vm3351_vm1, %v3183_v31  ;;  %3367 = vst [vmem:[#allocation3 + $0x14] sm:$0x1] %v3366_v16  ;;  %v3166_v26 = vsel %vm6828_vm8, %v3158_v40, %v3165_v50  ;;  %v3359_v21 = vsel %vm7605_vm4, %v3167_v6, %v3358_v51  ;;  %v3186_v63 = vshrl.u32 %v5651_v32, 16  ;;  %v3189_v22 = vshll.u32 %v5651_v32, 16 }
 0x27a   : > { %3357 = vst.msk [vmem:[#allocation3 + $0x4] sm:$0xf] %vm3351_vm1, %v3166_v26  ;;  %3360 = vst [vmem:[#allocation3 + $0x8] sm:$0x1] %v3359_v21  ;;  %v7732_v0 = vrot.slane %v3203_v55, 7  ;;  %v6213_v9 = vadd.f32 %v6032_v14, %v7613_v25  ;;  %v6214_v2 = vadd.f32 %v2874_v58, %v7622_v59  ;;  %v6215_v19 = vadd.f32 %v6035_v54, %v7632_v28 }
 0x27b   : > { %v7737_v11 = vrot.slane %v3186_v63, 7  ;;  %v6216_v53 = vadd.f32 %v2887_v27, %v7634_v44  ;;  %v6217_v33 = vadd.f32 %v6036_v23, %v7636_v17  ;;  %v6218_v34 = vadd.f32 %v2890_v60, %v7638_v37  ;;  %v3368_v38 = vld [vmem:[#allocation3 + $0x18] sm:$0xf] }
 0x27c   : > { %v3208_v52 = vor.u32 %v3206_v15, %v7732_v0  ;;  %v3209_v56 = vrot.slane %v7732_v0, 4  ;;  %v2968_v25 = vmul.f32 %v6213_v9, %v7687_v57  ;;  %v2966_v59 = vmul.f32 %v6214_v2, %v7687_v57  ;;  %v3379_v9 = vld [vmem:[#allocation3 + $0x2c] sm:$0x1] }
 0x27d   : > { %v3191_v28 = vor.u32 %v3189_v22, %v7737_v11  ;;  %v3192_v14 = vrot.slane %v7737_v11, 4  ;;  %v2971_v58 = vmul.f32 %v6215_v19, %v7687_v57  ;;  %v2969_v44 = vmul.f32 %v6216_v53, %v7687_v57  ;;  %v6039_v17 = vpop.f32.mrb[12].mxu0 }
 0x27e   : > { %v3376_v37 = vsel %vm7713_vm6, %v3208_v52, %v3375_v20  ;;  %v2995_v3 = vadd.f32 %v7693_v61, %v2968_v25  ;;  %v2993_v35 = vadd.f32 %v7693_v61, %v2966_v59  ;;  %v2972_v43 = vmul.f32 %v6217_v33, %v7687_v57  ;;  %v2903_v5 = vpop.f32.mrb[13].mxu0  ;;  %v3372_v52 = vld [vmem:[#allocation3 + $0x20] sm:$0x1] }
 0x27f   : > { %3377 = vst [vmem:[#allocation3 + $0x24] sm:$0xf] %v3376_v37  ;;  %v3369_v40 = vsel %vm7713_vm6, %v3191_v28, %v3368_v38  ;;  %v2998_v39 = vadd.f32 %v7693_v61, %v2971_v58  ;;  %v2996_v41 = vadd.f32 %v7693_v61, %v2969_v44  ;;  %v2970_v49 = vmul.f32 %v6218_v34, %v7687_v57  ;;  %v7760_v54 = vpop.f32.mrb[14].mxu0  ;;  %v3389_v58 = vld [vmem:[#allocation3 + $0x3c] sm:$0xf] }
 0x280   : > { %3370 = vst [vmem:[#allocation3 + $0x18] sm:$0xf] %v3369_v40  ;;  %v3015_v45 = vmax.f32 %v2995_v3, 0.0  ;;  %v3013_v4 = vmax.f32 %v2993_v35, 0.0  ;;  %v2999_v12 = vadd.f32 %v7693_v61, %v2972_v43  ;;  %v6219_v51 = vadd.f32 %v6039_v17, %v7644_v18  ;;  %v7764_v30 = vpop.f32.mrb[15].mxu0 }
 0x281   : > { %v3018_v27 = vmax.f32 %v2998_v39, 0.0  ;;  %v3016_v1 = vmax.f32 %v2996_v41, 0.0  ;;  %v2997_v50 = vadd.f32 %v7693_v61, %v2970_v49  ;;  %v6220_v6 = vadd.f32 %v2903_v5, %v7646_v10  ;;  %v3382_v39 = vld [vmem:[#allocation3 + $0x30] sm:$0xf] }
 0x282   : > { %v5654_v32 = vpack.c.bf16 %v3015_v45, %v3015_v45  ;;  %v5652_v23 = vpack.c.bf16 %v3013_v4, %v3013_v4  ;;  %v3019_v31 = vmax.f32 %v2999_v12, 0.0  ;;  %v2975_v16 = vmul.f32 %v6219_v51, %v7687_v57 }
 0x283   : > { %v5657_v55 = vpack.c.bf16 %v3018_v27, %v3018_v27  ;;  %v5655_v15 = vpack.c.bf16 %v3016_v1, %v3016_v1  ;;  %v3017_v60 = vmax.f32 %v2997_v50, 0.0  ;;  %v2973_v26 = vmul.f32 %v6220_v6, %v7687_v57 }
 0x284   : > { %v3211_v21 = vshrl.u32 %v5654_v32, 16  ;;  %v3214_v18 = vshll.u32 %v5654_v32, 16  ;;  %v3194_v63 = vshrl.u32 %v5652_v23, 16  ;;  %v3197_v22 = vshll.u32 %v5652_v23, 16 }
 0x285   : > { %v3237_v2 = vshrl.u32 %v5657_v55, 16  ;;  %v3240_v19 = vshll.u32 %v5657_v55, 16  ;;  %v3220_v20 = vshrl.u32 %v5655_v15, 16  ;;  %v3223_v53 = vshll.u32 %v5655_v15, 16  ;;  %v6043_v10 = vpop.f32.mrb[16].mxu0 }
 0x286   : > { %v3213_v33 = vrot.slane %v3211_v21, 7  ;;  %v3196_v34 = vrot.slane %v3194_v63, 7  ;;  %v5658_v38 = vpack.c.bf16 %v3019_v31, %v3019_v31  ;;  %v5656_v25 = vpack.c.bf16 %v3017_v60, %v3017_v60  ;;  %v2919_v59 = vpop.f32.mrb[17].mxu0 }
 0x287   : > { %v3239_v28 = vrot.slane %v3237_v2, 7  ;;  %v3222_v44 = vrot.slane %v3220_v20, 7  ;;  %v3002_v17 = vadd.f32 %v7693_v61, %v2975_v16  ;;  %v3000_v37 = vadd.f32 %v7693_v61, %v2973_v26  ;;  %v7772_v3 = vpop.f32.mrb[18].mxu0  ;;  %v3393_v26 = vld [vmem:[#allocation3 + $0x44] sm:$0x1] }
 0x288   : > { %v3216_v35 = vor.u32 %v3214_v18, %v3213_v33  ;;  %v3218_v43 = vrot.slane %v3213_v33, 4  ;;  %v3199_v5 = vor.u32 %v3197_v22, %v3196_v34  ;;  %v3201_v40 = vrot.slane %v3196_v34, 4  ;;  %v7774_v41 = vpop.f32.mrb[19].mxu0 }
 0x289   : > { %v3242_v49 = vor.u32 %v3240_v19, %v3239_v28  ;;  %v3243_v45 = vrot.slane %v3239_v28, 4  ;;  %v3225_v4 = vor.u32 %v3223_v53, %v3222_v44  ;;  %v3226_v12 = vrot.slane %v3222_v44, 4  ;;  %v3386_v19 = vld [vmem:[#allocation3 + $0x38] sm:$0x1] }
 0x28a   : > { %v3217_v51 = vsel %vm6828_vm8, %v3209_v56, %v3216_v35  ;;  %v3380_v27 = vsel %vm7605_vm4, %v3218_v43, %v3379_v9  ;;  %v3200_v1 = vsel %vm6828_vm8, %v3192_v14, %v3199_v5  ;;  %v3373_v50 = vsel %vm7605_vm4, %v3201_v40, %v3372_v52  ;;  %v3396_v35 = vld [vmem:[#allocation3 + $0x48] sm:$0xf] }
 0x28b   : > { %3378 = vst.msk [vmem:[#allocation3 + $0x28] sm:$0xf] %vm3351_vm1, %v3217_v51  ;;  %3381 = vst [vmem:[#allocation3 + $0x2c] sm:$0x1] %v3380_v27  ;;  %v3390_v0 = vsel %vm7713_vm6, %v3242_v49, %v3389_v58  ;;  %v3383_v56 = vsel %vm7713_vm6, %v3225_v4, %v3382_v39  ;;  %v3245_v6 = vshrl.u32 %v5658_v38, 16  ;;  %v3248_v11 = vshll.u32 %v5658_v38, 16 }
 0x28c   : > { %3371 = vst.msk [vmem:[#allocation3 + $0x1c] sm:$0xf] %vm3351_vm1, %v3200_v1  ;;  %3374 = vst [vmem:[#allocation3 + $0x20] sm:$0x1] %v3373_v50  ;;  %v3228_v14 = vshrl.u32 %v5656_v25, 16  ;;  %v3231_v32 = vshll.u32 %v5656_v25, 16  ;;  %v6221_v55 = vadd.f32 %v7760_v54, %v7648_v36  ;;  %v6222_v15 = vadd.f32 %v7764_v30, %v7652_v7 }
 0x28d   : > { %3391 = vst [vmem:[#allocation3 + $0x3c] sm:$0xf] %v3390_v0  ;;  %3384 = vst [vmem:[#allocation3 + $0x30] sm:$0xf] %v3383_v56  ;;  %v3022_v23 = vmax.f32 %v3002_v17, 0.0  ;;  %v3020_v31 = vmax.f32 %v3000_v37, 0.0  ;;  %v6223_v60 = vadd.f32 %v6043_v10, %v7664_v8  ;;  %v6224_v22 = vadd.f32 %v2919_v59, %v7666_v24 }
 0x28e   : > { %v3247_v16 = vrot.slane %v3245_v6, 7  ;;  %v3230_v21 = vrot.slane %v3228_v14, 7  ;;  %v2976_v20 = vmul.f32 %v6221_v55, %v7687_v57  ;;  %v2974_v53 = vmul.f32 %v6222_v15, %v7687_v57  ;;  %v3403_v59 = vld [vmem:[#allocation3 + $0x54] sm:$0xf] }
 0x28f   : > { %v5661_v18 = vpack.c.bf16 %v3022_v23, %v3022_v23  ;;  %v5659_v63 = vpack.c.bf16 %v3020_v31, %v3020_v31  ;;  %v2979_v44 = vmul.f32 %v6223_v60, %v7687_v57  ;;  %v2977_v17 = vmul.f32 %v6224_v22, %v7687_v57 }
 0x290   : > { %v3250_v9 = vor.u32 %v3248_v11, %v3247_v16  ;;  %v3252_v2 = vrot.slane %v3247_v16, 4  ;;  %v3233_v33 = vor.u32 %v3231_v32, %v3230_v21  ;;  %v3235_v36 = vrot.slane %v3230_v21, 4 }
 0x291   : > { %v3271_v54 = vshrl.u32 %v5661_v18, 16  ;;  %v3274_v34 = vshll.u32 %v5661_v18, 16  ;;  %v3254_v30 = vshrl.u32 %v5659_v63, 16  ;;  %v3257_v10 = vshll.u32 %v5659_v63, 16 }
 0x292   : > { %v3251_v7 = vsel %vm6828_vm8, %v3243_v45, %v3250_v9  ;;  %v3394_v8 = vsel %vm7605_vm4, %v3252_v2, %v3393_v26  ;;  %v3234_v24 = vsel %vm6828_vm8, %v3226_v12, %v3233_v33  ;;  %v3387_v52 = vsel %vm7605_vm4, %v3235_v36, %v3386_v19  ;;  %v3407_v26 = vld [vmem:[#allocation3 + $0x5c] sm:$0x1]  ;;  %v3400_v9 = vld [vmem:[#allocation3 + $0x50] sm:$0x1] }
 0x293   : > { %3392 = vst.msk [vmem:[#allocation3 + $0x40] sm:$0xf] %vm3351_vm1, %v3251_v7  ;;  %3395 = vst [vmem:[#allocation3 + $0x44] sm:$0x1] %v3394_v8  ;;  %v3273_v38 = vrot.slane %v3271_v54, 7  ;;  %v3003_v25 = vadd.f32 %v7693_v61, %v2976_v20  ;;  %v3256_v28 = vrot.slane %v3254_v30, 7  ;;  %v3001_v58 = vadd.f32 %v7693_v61, %v2974_v53 }
 0x294   : > { %3385 = vst.msk [vmem:[#allocation3 + $0x34] sm:$0xf] %vm3351_vm1, %v3234_v24  ;;  %3388 = vst [vmem:[#allocation3 + $0x38] sm:$0x1] %v3387_v52  ;;  %v6225_v5 = vadd.f32 %v7772_v3, %v7668_v48  ;;  %v3006_v45 = vadd.f32 %v7693_v61, %v2979_v44  ;;  %v3004_v51 = vadd.f32 %v7693_v61, %v2977_v17  ;;  %v3410_v24 = vld [vmem:[#allocation3 + $0x60] sm:$0xf] }
 0x295   : > { %v3276_v37 = vor.u32 %v3274_v34, %v3273_v38  ;;  %v3023_v43 = vmax.f32 %v3003_v25, 0.0  ;;  %v3277_v40 = vrot.slane %v3273_v38, 4  ;;  %v3259_v39 = vor.u32 %v3257_v10, %v3256_v28  ;;  %v3417_v34 = vld [vmem:[#allocation3 + $0x6c] sm:$0xf]  ;;  %v3421_v17 = vld [vmem:[#allocation3 + $0x74] sm:$0x1] }
 0x296   : > { %v3021_v49 = vmax.f32 %v3001_v58, 0.0  ;;  %v2980_v27 = vmul.f32 %v6225_v5, %v7687_v57  ;;  %v3026_v0 = vmax.f32 %v3006_v45, 0.0  ;;  %v6226_v48 = vadd.f32 %v7774_v41, %v7670_v13 }
 0x297   : > { %v3404_v4 = vsel %vm7713_vm6, %v3276_v37, %v3403_v59  ;;  %v5662_v12 = vpack.c.bf16 %v3023_v43, %v3023_v43  ;;  %v3397_v1 = vsel %vm7713_vm6, %v3259_v39, %v3396_v35  ;;  %v3260_v3 = vrot.slane %v3256_v28, 4 }
 0x298   : > { %3405 = vst [vmem:[#allocation3 + $0x54] sm:$0xf] %v3404_v4  ;;  %v5660_v50 = vpack.c.bf16 %v3021_v49, %v3021_v49  ;;  %3398 = vst [vmem:[#allocation3 + $0x48] sm:$0xf] %v3397_v1  ;;  %v3024_v6 = vmax.f32 %v3004_v51, 0.0  ;;  %v3007_v11 = vadd.f32 %v7693_v61, %v2980_v27  ;;  %v5665_v23 = vpack.c.bf16 %v3026_v0, %v3026_v0 }
 0x299   : > { %v3279_v56 = vshrl.u32 %v5662_v12, 16  ;;  %v3282_v14 = vshll.u32 %v5662_v12, 16  ;;  %v2978_v31 = vmul.f32 %v6226_v48, %v7687_v57  ;;  %v3414_v4 = vld [vmem:[#allocation3 + $0x68] sm:$0x1]  ;;  %v3427_v0 = vld [vmem:[#allocation3] sm:$0xf] (!%p5316_p12) }
 0x29a   : > { %v3262_v32 = vshrl.u32 %v5660_v50, 16  ;;  %v3265_v55 = vshll.u32 %v5660_v50, 16  ;;  %v5663_v15 = vpack.c.bf16 %v3024_v6, %v3024_v6  ;;  %v3027_v60 = vmax.f32 %v3007_v11, 0.0  ;;  %v3431_v48 = vld [vmem:[#allocation3 + $0x8] sm:$0x1] (!%p5316_p12) }
 0x29b   : > { %v3281_v16 = vrot.slane %v3279_v56, 7  ;;  %v3305_v18 = vshrl.u32 %v5665_v23, 16  ;;  %v3308_v63 = vshll.u32 %v5665_v23, 16  ;;  %v3005_v13 = vadd.f32 %v7693_v61, %v2978_v31 }
 0x29c   : > { %v3264_v21 = vrot.slane %v3262_v32, 7  ;;  %v3288_v2 = vshrl.u32 %v5663_v15, 16  ;;  %v3291_v19 = vshll.u32 %v5663_v15, 16  ;;  %v5666_v36 = vpack.c.bf16 %v3027_v60, %v3027_v60 }
 0x29d   : > { %v3284_v41 = vor.u32 %v3282_v14, %v3281_v16  ;;  %v3286_v22 = vrot.slane %v3281_v16, 4  ;;  %v3307_v33 = vrot.slane %v3305_v18, 7  ;;  %v3025_v8 = vmax.f32 %v3005_v13, 0.0 }
 0x29e   : > { %v3267_v20 = vor.u32 %v3265_v55, %v3264_v21  ;;  %v3269_v53 = vrot.slane %v3264_v21, 4  ;;  %v3290_v7 = vrot.slane %v3288_v2, 7  ;;  %v3313_v38 = vshrl.u32 %v5666_v36, 16 }
 0x29f   : > { %v3285_v57 = vsel %vm6828_vm8, %v3277_v40, %v3284_v41  ;;  %v3408_v54 = vsel %vm7605_vm4, %v3286_v22, %v3407_v26  ;;  %v3310_v10 = vor.u32 %v3308_v63, %v3307_v33  ;;  %v5664_v59 = vpack.c.bf16 %v3025_v8, %v3025_v8 }
 0x2a0   : > { %3406 = vst.msk [vmem:[#allocation3 + $0x58] sm:$0xf] %vm3351_vm1, %v3285_v57  ;;  %3409 = vst [vmem:[#allocation3 + $0x5c] sm:$0x1] %v3408_v54  ;;  %v3268_v61 = vsel %vm6828_vm8, %v3260_v3, %v3267_v20  ;;  %v3401_v30 = vsel %vm7605_vm4, %v3269_v53, %v3400_v9  ;;  %v3293_v52 = vor.u32 %v3291_v19, %v3290_v7  ;;  %v3315_v58 = vrot.slane %v3313_v38, 7 }
 0x2a1   : > { %3399 = vst.msk [vmem:[#allocation3 + $0x4c] sm:$0xf] %vm3351_vm1, %v3268_v61  ;;  %3402 = vst [vmem:[#allocation3 + $0x50] sm:$0x1] %v3401_v30  ;;  %v3418_v25 = vsel %vm7713_vm6, %v3310_v10, %v3417_v34  ;;  %v3316_v44 = vshll.u32 %v5666_v36, 16  ;;  %v3296_v37 = vshrl.u32 %v5664_v59, 16 }
 0x2a2   : > { %3419 = vst [vmem:[#allocation3 + $0x6c] sm:$0xf] %v3418_v25  ;;  %v3411_v28 = vsel %vm7713_vm6, %v3293_v52, %v3410_v24  ;;  %v3311_v35 = vrot.slane %v3307_v33, 4  ;;  %v3320_v5 = vrot.slane %v3315_v58, 4  ;;  %v3299_v39 = vshll.u32 %v5664_v59, 16  ;;  %3426 = sbr.rel (%p5316_p12) target bundleno = 681 (0x2a9), region = 76 }
 0x2a3   : > { %3412 = vst [vmem:[#allocation3 + $0x60] sm:$0xf] %v3411_v28  ;;  %v3318_v43 = vor.u32 %v3316_v44, %v3315_v58  ;;  %v3298_v40 = vrot.slane %v3296_v37, 7  ;;  %v3294_v12 = vrot.slane %v3290_v7, 4  ;;  %v3428_v3 = vsel (!%p5316_p12), %vm7713_vm6, 0, %v3427_v0 }
 0x2a4   : > { %v3422_v45 = vsel %vm7605_vm4, %v3320_v5, %v3421_v17  ;;  %v6621_v56 = vmov (!%p5316_p12), 0   ;;  %v3432_v47 = vsel (!%p5316_p12), %vm7605_vm4, 0, %v3431_v48  ;;  %3429 = vst [vmem:[#allocation3] sm:$0xf] (!%p5316_p12), %v3428_v3 }
 0x2a5   : > { %v3319_v49 = vsel %vm6828_vm8, %v3311_v35, %v3318_v43  ;;  %3423 = vst [vmem:[#allocation3 + $0x74] sm:$0x1] %v3422_v45  ;;  %v3301_v51 = vor.u32 %v3299_v39, %v3298_v40  ;;  %v3303_v27 = vrot.slane %v3298_v40, 4  ;;  %3430 = vst.msk [vmem:[#allocation3 + $0x4] sm:$0xf] (!%p5316_p12), %vm3351_vm1, %v6621_v56 }
 0x2a6   : > { %3420 = vst.msk [vmem:[#allocation3 + $0x70] sm:$0xf] %vm3351_vm1, %v3319_v49  ;;  %3433 = vst [vmem:[#allocation3 + $0x8] sm:$0x1] (!%p5316_p12), %v3432_v47 }
 0x2a7   : > { %v3302_v1 = vsel %vm6828_vm8, %v3294_v12, %v3301_v51  ;;  %v3415_v50 = vsel %vm7605_vm4, %v3303_v27, %v3414_v4 }
 0x2a8   : > { %3413 = vst.msk [vmem:[#allocation3 + $0x64] sm:$0xf] %vm3351_vm1, %v3302_v1  ;;  %3416 = vst [vmem:[#allocation3 + $0x68] sm:$0x1] %v3415_v50 }
 0x2a9 PF: > { %3436 = sbr.rel (%p5322_p0) target bundleno = 688 (0x2b0), region = 80  ;;  %v3438_v6 = vld [vmem:[#allocation3 + $0x6c] sm:$0xf] (!%p5322_p0)  ;;  %v6622_v32 = vmov (!%p5322_p0), 0  }
 0x2aa   : > { %v3439_v14 = vsel (!%p5322_p0), %vm7713_vm6, 0, %v3438_v6  ;;  %3441 = vst.msk [vmem:[#allocation3 + $0x70] sm:$0xf] (!%p5322_p0), %vm3351_vm1, %v6622_v32 }
 0x2ab   : > { %3440 = vst [vmem:[#allocation3 + $0x6c] sm:$0xf] (!%p5322_p0), %v3439_v14 }
 0x2ac   : > { %v3442_v11 = vld [vmem:[#allocation3 + $0x74] sm:$0x1] (!%p5322_p0) }
 0x2ad   : > { %v3443_v23 = vsel (!%p5322_p0), %vm7605_vm4, 0, %v3442_v11 }
 0x2ae   : > { %3444 = vst [vmem:[#allocation3 + $0x74] sm:$0x1] (!%p5322_p0), %v3443_v23 }
 0x2b0 PF: > { %v5503_v31 = vld [vmem:[%s8378_s6 + $0x4] sm:$0xf]  ;;  %vm3877_vm3 = vcmask 1043456   ;;  %v7871_v16 = vld [vmem:[#allocation3] sm:$0xf]  ;;  %vm3852_vm7 = vcmask 64512  }
 0x2b1   : > { %6504 = vmatprep.subr.msk.bf16.mxu1 %vm3877_vm3, %v5503_v31  ;;  %v3879_v46 = vsel %vm3877_vm3, %v5503_v31, 0  ;;  %v7875_v55 = vld [vmem:[#allocation3 + $0x4] sm:$0xf]  ;;  %v7877_v15 = vld [vmem:[#allocation3 + $0x8] sm:$0x1]  ;;  %v3476_v29 = vshrl.u32 %v7871_v16, 16 }
 0x2b2   : > { %6046 = vmatpush3.bf16.msra.mxu1 %v3879_v46  ;;  %v3479_v60 = vshll.u32 %v7871_v16, 16  ;;  %v3485_v26 = vshll.u32 %v7875_v55, 16  ;;  %v3489_v21 = vshrl.u32 %v7875_v55, 16  ;;  %v3495_v18 = vshll.u32 %v7877_v15, 16  ;;  %v3825_v63 = vld [vmem:[%s8378_s6] sm:$0xf] }
 0x2b3   : > { %v3478_v13 = vrot.slane %v3476_v29, 4  ;;  %6505 = vmatprep.subr.msk.bf16.mxu1 %vm3877_vm3, %v3825_v63  ;;  %v7888_v41 = vld [vmem:[#allocation3 + $0xc] sm:$0xf]  ;;  %v7890_v22 = vld [vmem:[#allocation3 + $0x10] sm:$0xf]  ;;  %v4035_v43 = vsel %vm3877_vm3, %v3825_v63, 0 }
 0x2b4   : > { %v3481_v9 = vrot.slane %v3479_v60, 5  ;;  %v3487_v2 = vrot.slane %v3485_v26, 5  ;;  %v3491_v19 = vrot.slane %v3489_v21, 4  ;;  %v3497_v20 = vrot.slane %v3495_v18, 5  ;;  %v3466_v53 = vld [vmem:[#allocation3 + $0x14] sm:$0x1] }
 0x2b5   : > { %v3500_v33 = vshrl.u32 %v7888_v41, 16  ;;  %v3503_v36 = vshll.u32 %v7888_v41, 16  ;;  %v3509_v57 = vshll.u32 %v7890_v22, 16  ;;  %v3513_v54 = vshrl.u32 %v7890_v22, 16  ;;  %v3716_v34 = vld [vmem:[#allocation3 + $0xc] sm:$0xe] }
 0x2b6   : > { %v3482_v7 = vor.u32 %v3481_v9, %v3478_v13  ;;  %v3492_v8 = vor.u32 %v3491_v19, %v3487_v2  ;;  %v3519_v61 = vshll.u32 %v3466_v53, 16  ;;  %v5494_v30 = vrot.slane %v3716_v34, 9  ;;  %v7897_v44 = vld [vmem:[#allocation3 + $0x18] sm:$0xf]  ;;  %v7900_v5 = vld [vmem:[#allocation3 + $0x1c] sm:$0xf] }
 0x2b7   : > { %v3502_v10 = vrot.slane %v3500_v33, 4  ;;  %v3505_v24 = vrot.slane %v3503_v36, 5  ;;  %v3511_v52 = vrot.slane %v3509_v57, 5  ;;  %v3515_v38 = vrot.slane %v3513_v54, 4  ;;  %v7908_v4 = vld [vmem:[#allocation3 + $0x20] sm:$0x1] }
 0x2b8   : > { %v3483_v25 = vrot.slane %v3482_v7, 4  ;;  %v3493_v59 = vrot.slane %v3492_v8, 4  ;;  %v3521_v28 = vrot.slane %v3519_v61, 5  ;;  %v3764_v58 = vrot.slane %v7890_v22, 5  ;;  %v7911_v50 = vld [vmem:[#allocation3 + $0x24] sm:$0xf] }
 0x2b9   : > { %v3506_v17 = vor.u32 %v3505_v24, %v3502_v10  ;;  %v3516_v37 = vor.u32 %v3515_v38, %v3511_v52  ;;  %v3767_v35 = vrot.slane %v3466_v53, 5  ;;  %v3524_v1 = vshrl.u32 %v7897_v44, 16  ;;  %v7918_v47 = vld [vmem:[#allocation3 + $0x28] sm:$0xf]  ;;  %v7927_v23 = vld [vmem:[#allocation3 + $0x2c] sm:$0x1] }
 0x2ba   : > { %v3488_v40 = vsel %vm7224_vm0, %v3483_v25, %v3487_v2  ;;  %v3498_v39 = vsel %vm7224_vm0, %v3493_v59, %v3497_v20  ;;  %v3765_v49 = vsel %vm7113_vm13, %v5494_v30, %v3764_v58  ;;  %v3766_v45 = vrot.slane %v3764_v58, 4  ;;  %v7939_v20 = vld [vmem:[#allocation3 + $0x30] sm:$0xf]  ;;  %v7941_v53 = vld [vmem:[#allocation3 + $0x34] sm:$0xf] }
 0x2bb   : > { %v5504_v12 = vcombine.low %v3488_v40, %v3498_v39  ;;  %v3507_v51 = vrot.slane %v3506_v17, 4  ;;  %v3517_v27 = vrot.slane %v3516_v37, 4  ;;  %v3527_v48 = vshll.u32 %v7897_v44, 16  ;;  %v7943_v30 = vld [vmem:[#allocation3 + $0x38] sm:$0x1] }
 0x2bc   : > { %v3768_v0 = vsel %vm7113_vm13, %v3766_v45, %v3767_v35  ;;  %v3533_v3 = vshll.u32 %v7900_v5, 16  ;;  %v3537_v56 = vshrl.u32 %v7900_v5, 16  ;;  %v3526_v32 = vrot.slane %v3524_v1, 4  ;;  %v7951_v25 = vld [vmem:[%s8378_s6 + $0x8] sm:$0xf] }
 0x2bd   : > { %6047 = vmatprep.mubr.msk.bf16.mxu1 %vm3852_vm7, %v5504_v12  ;;  %v3512_v6 = vsel %vm7224_vm0, %v3507_v51, %v3511_v52  ;;  %v3522_v11 = vsel %vm7224_vm0, %v3517_v27, %v3521_v28  ;;  %v7925_v14 = vcombine.low %v3765_v49, %v3768_v0  ;;  %v3529_v46 = vrot.slane %v3527_v48, 5  ;;  %v7958_v37 = vld [vmem:[#allocation3 + $0x3c] sm:$0xf]  ;;  %v7964_v49 = vld [vmem:[#allocation3 + $0x40] sm:$0xf] }
 0x2be   : > { %v7929_v31 = vcombine.low %v3512_v6, %v3522_v11  ;;  %v3535_v29 = vrot.slane %v3533_v3, 5  ;;  %v3539_v60 = vrot.slane %v3537_v56, 4  ;;  %v3543_v26 = vshll.u32 %v7908_v4, 16  ;;  %v7971_v48 = vld [vmem:[#allocation3 + $0x44] sm:$0x1] }
 0x2bf   : > { %v3548_v21 = vshrl.u32 %v7911_v50, 16  ;;  %v3551_v18 = vshll.u32 %v7911_v50, 16  ;;  %v3557_v63 = vshll.u32 %v7918_v47, 16  ;;  %v3530_v13 = vor.u32 %v3529_v46, %v3526_v32 }
 0x2c0   : > { %6048 = vmatmul.mubr.msk.bf16.vlgmr.msra.gmra.mrb[20].mxu1 %vm3852_vm7, %v7929_v31  ;;  %v3540_v9 = vor.u32 %v3539_v60, %v3535_v29  ;;  %v3561_v2 = vshrl.u32 %v7918_v47, 16  ;;  %v3567_v19 = vshll.u32 %v7927_v23, 16  ;;  %v3545_v33 = vrot.slane %v3543_v26, 5 }
 0x2c1   : > { %6064 = vmatpush3.bf16.msra.mxu1 %v4035_v43  ;;  %v3550_v36 = vrot.slane %v3548_v21, 4  ;;  %v3553_v57 = vrot.slane %v3551_v18, 5  ;;  %v3559_v54 = vrot.slane %v3557_v63, 5  ;;  %v3531_v34 = vrot.slane %v3530_v13, 4  ;;  %v7982_v63 = vld [vmem:[#allocation3 + $0x4c] sm:$0xf] }
 0x2c2   : > { %v3541_v7 = vrot.slane %v3540_v9, 4  ;;  %v3563_v8 = vrot.slane %v3561_v2, 4  ;;  %v3569_v61 = vrot.slane %v3567_v19, 5  ;;  %v3572_v24 = vshrl.u32 %v7939_v20, 16  ;;  %6506 = vmatprep.subr.msk.bf16.mxu1 %vm3877_vm3, %v7951_v25 }
 0x2c3   : > { %v3554_v10 = vor.u32 %v3553_v57, %v3550_v36  ;;  %v3575_v52 = vshll.u32 %v7939_v20, 16  ;;  %v3581_v38 = vshll.u32 %v7941_v53, 16  ;;  %v3536_v59 = vsel %vm7224_vm0, %v3531_v34, %v3535_v29  ;;  %v7978_v29 = vld [vmem:[#allocation3 + $0x48] sm:$0xf]  ;;  %v7990_v57 = vld [vmem:[#allocation3 + $0x50] sm:$0x1] }
 0x2c4   : > { %v3546_v28 = vsel %vm7224_vm0, %v3541_v7, %v3545_v33  ;;  %v3564_v58 = vor.u32 %v3563_v8, %v3559_v54  ;;  %v3585_v17 = vshrl.u32 %v7941_v53, 16  ;;  %v3574_v40 = vrot.slane %v3572_v24, 4  ;;  %v7997_v24 = vld [vmem:[#allocation3 + $0x54] sm:$0xf] }
 0x2c5   : > { %v7962_v35 = vcombine.low %v3536_v59, %v3546_v28  ;;  %v3555_v43 = vrot.slane %v3554_v10, 4  ;;  %v3577_v39 = vrot.slane %v3575_v52, 5  ;;  %v3583_v12 = vrot.slane %v3581_v38, 5 }
 0x2c6   : > { %v3565_v45 = vrot.slane %v3564_v58, 4  ;;  %v3587_v51 = vrot.slane %v3585_v17, 4  ;;  %v3591_v27 = vshll.u32 %v7943_v30, 16  ;;  %v3596_v3 = vshrl.u32 %v7958_v37, 16  ;;  %v8001_v58 = vld [vmem:[#allocation3 + $0x58] sm:$0xf] }
 0x2c7   : > { %6051 = vmatprep.mubr.msk.bf16.mxu1 %vm3852_vm7, %v7962_v35  ;;  %v3560_v1 = vsel %vm7224_vm0, %v3555_v43, %v3559_v54  ;;  %v3578_v0 = vor.u32 %v3577_v39, %v3574_v40  ;;  %v3599_v56 = vshll.u32 %v7958_v37, 16  ;;  %v3605_v46 = vshll.u32 %v7964_v49, 16 }
 0x2c8   : > { %v3570_v6 = vsel %vm7224_vm0, %v3565_v45, %v3569_v61  ;;  %v3588_v11 = vor.u32 %v3587_v51, %v3583_v12  ;;  %v3593_v32 = vrot.slane %v3591_v27, 5  ;;  %v3598_v21 = vrot.slane %v3596_v3, 4  ;;  %v8009_v51 = vld [vmem:[#allocation3 + $0x5c] sm:$0x1] }
 0x2c9   : > { %v7980_v60 = vcombine.low %v3560_v1, %v3570_v6  ;;  %v3579_v26 = vrot.slane %v3578_v0, 4  ;;  %v3601_v18 = vrot.slane %v3599_v56, 5  ;;  %v3607_v9 = vrot.slane %v3605_v46, 5 }
 0x2ca   : > { %v3589_v13 = vrot.slane %v3588_v11, 4  ;;  %v3609_v2 = vshrl.u32 %v7964_v49, 16  ;;  %v3615_v19 = vshll.u32 %v7971_v48, 16  ;;  %v3620_v54 = vshrl.u32 %v7978_v29, 16 }
 0x2cb   : > { %6052 = vmatmul.mubr.msk.bf16.gmra.mrb[24].mxu1 %vm3852_vm7, %v7980_v60  ;;  %v3584_v33 = vsel %vm7224_vm0, %v3579_v26, %v3583_v12  ;;  %v3602_v36 = vor.u32 %v3601_v18, %v3598_v21  ;;  %v3623_v34 = vshll.u32 %v7978_v29, 16  ;;  %v3629_v10 = vshll.u32 %v7982_v63, 16 }
 0x2cc   : > { %v3594_v7 = vsel %vm7224_vm0, %v3589_v13, %v3593_v32  ;;  %v3611_v8 = vrot.slane %v3609_v2, 4  ;;  %v3617_v61 = vrot.slane %v3615_v19, 5  ;;  %v3622_v59 = vrot.slane %v3620_v54, 4 }
 0x2cd   : > { %v7999_v52 = vcombine.low %v3584_v33, %v3594_v7  ;;  %v3603_v38 = vrot.slane %v3602_v36, 4  ;;  %v3625_v28 = vrot.slane %v3623_v34, 5  ;;  %v3631_v43 = vrot.slane %v3629_v10, 5  ;;  %v3715_v10 = vld [vmem:[#allocation3] sm:$0xe] }
 0x2ce   : > { %v3612_v17 = vor.u32 %v3611_v8, %v3607_v9  ;;  %v3633_v40 = vshrl.u32 %v7982_v63, 16  ;;  %v3639_v39 = vshll.u32 %v7990_v57, 16  ;;  %v3644_v27 = vshrl.u32 %v7997_v24, 16 }
 0x2cf   : > { %6055 = vmatprep.mubr.msk.bf16.mxu1 %vm3852_vm7, %v7999_v52  ;;  %v3608_v45 = vsel %vm7224_vm0, %v3603_v38, %v3607_v9  ;;  %v3626_v12 = vor.u32 %v3625_v28, %v3622_v59  ;;  %v3647_v1 = vshll.u32 %v7997_v24, 16  ;;  %v3653_v6 = vshll.u32 %v8001_v58, 16  ;;  %v3718_v59 = vld [vmem:[#allocation3 + $0x24] sm:$0xe] }
 0x2d0   : > { %v3613_v0 = vrot.slane %v3612_v17, 4  ;;  %v3635_v3 = vrot.slane %v3633_v40, 4  ;;  %v3641_v56 = vrot.slane %v3639_v39, 5  ;;  %v3646_v32 = vrot.slane %v3644_v27, 4 }
 0x2d1   : > { %v3627_v11 = vrot.slane %v3626_v12, 4  ;;  %v3649_v46 = vrot.slane %v3647_v1, 5  ;;  %v3657_v26 = vshrl.u32 %v8001_v58, 16  ;;  %v3655_v13 = vrot.slane %v3653_v6, 5  ;;  %v3719_v1 = vld [vmem:[#allocation3 + $0x30] sm:$0xe] }
 0x2d2   : > { %v3618_v21 = vsel %vm7224_vm0, %v3613_v0, %v3617_v61  ;;  %v3636_v18 = vor.u32 %v3635_v3, %v3631_v43  ;;  %v3663_v9 = vshll.u32 %v8009_v51, 16  ;;  %v3717_v61 = vld [vmem:[#allocation3 + $0x18] sm:$0xe]  ;;  %v3760_v28 = vrot.slane %v7877_v15, 5 }
 0x2d3   : > { %v8018_v2 = vcombine.low %v3608_v45, %v3618_v21  ;;  %v3650_v19 = vor.u32 %v3649_v46, %v3646_v32  ;;  %v3659_v33 = vrot.slane %v3657_v26, 4  ;;  %v3632_v36 = vsel %vm7224_vm0, %v3627_v11, %v3631_v43  ;;  %v3720_v32 = vld [vmem:[#allocation3 + $0x3c] sm:$0xe] }
 0x2d4   : > { %v3637_v54 = vrot.slane %v3636_v18, 4  ;;  %v3665_v8 = vrot.slane %v3663_v9, 5  ;;  %v5520_v39 = vcombine.low %v7871_v16, %v7875_v55  ;;  %v5493_v45 = vrot.slane %v3715_v10, 9 }
 0x2d5   : > { %6056 = vmatmul.mubr.msk.bf16.gmra.mrb[28].mxu1 %vm3852_vm7, %v8018_v2  ;;  %v3651_v34 = vrot.slane %v3650_v19, 4  ;;  %v3660_v7 = vor.u32 %v3659_v33, %v3655_v13  ;;  %v3757_v12 = vrot.slane %v7875_v55, 5  ;;  %v5495_v27 = vrot.slane %v3717_v61, 9 }
 0x2d6   : > { %v3642_v38 = vsel %vm7224_vm0, %v3637_v54, %v3641_v56  ;;  %v3771_v0 = vrot.slane %v7900_v5, 5  ;;  %v3774_v3 = vrot.slane %v7908_v4, 5  ;;  %v5496_v56 = vrot.slane %v3718_v59, 9 }
 0x2d7   : > { %v8027_v17 = vcombine.low %v3632_v36, %v3642_v38  ;;  %v3656_v43 = vsel %vm7224_vm0, %v3651_v34, %v3655_v13  ;;  %v3661_v40 = vrot.slane %v3660_v7, 4  ;;  %v3758_v16 = vsel %vm7113_vm13, %v5493_v45, %v3757_v12  ;;  %v3722_v34 = vld [vmem:[#allocation3 + $0x54] sm:$0xe] }
 0x2d8   : > { %v3759_v11 = vrot.slane %v3757_v12, 4  ;;  %v3778_v55 = vrot.slane %v7918_v47, 5  ;;  %v3772_v46 = vsel %vm7113_vm13, %v5495_v27, %v3771_v0  ;;  %v3773_v26 = vrot.slane %v3771_v0, 4 }
 0x2d9   : > { %6059 = vmatprep.mubr.msk.bf16.mxu1 %vm3852_vm7, %v8027_v17  ;;  %v3666_v15 = vsel %vm7224_vm0, %v3661_v40, %v3665_v8  ;;  %v3781_v21 = vrot.slane %v7927_v23, 5  ;;  %v5497_v18 = vrot.slane %v3719_v1, 9  ;;  %v3785_v19 = vrot.slane %v7941_v53, 5 }
 0x2da   : > { %v8040_v6 = vcombine.low %v3656_v43, %v3666_v15  ;;  %v3761_v4 = vsel %vm7113_vm13, %v3759_v11, %v3760_v28  ;;  %v3779_v13 = vsel %vm7113_vm13, %v5496_v56, %v3778_v55  ;;  %v3780_v9 = vrot.slane %v3778_v55, 4 }
 0x2db   : > { %v5537_v33 = vcombine.low %v3758_v16, %v3761_v4  ;;  %v3775_v36 = vsel %vm7113_vm13, %v3773_v26, %v3774_v3  ;;  %v3788_v54 = vrot.slane %v7943_v30, 5  ;;  %v5498_v23 = vrot.slane %v3720_v32, 9  ;;  %v5553_v3 = vld [vmem:[%s8378_s6 + $0xc] sm:$0xf]  ;;  %v5573_v32 = vld [vmem:[%s8378_s6 + $0x14] sm:$0xf] }
 0x2dc   : > { %v8059_v7 = vcombine.low %v3772_v46, %v3775_v36  ;;  %v3782_v8 = vsel %vm7113_vm13, %v3780_v9, %v3781_v21  ;;  %v3786_v10 = vsel %vm7113_vm13, %v5497_v18, %v3785_v19  ;;  %v3787_v61 = vrot.slane %v3785_v19, 4  ;;  %v3461_v46 = vld [vmem:[#allocation3 + $0x60] sm:$0xf]  ;;  %v3462_v26 = vld [vmem:[#allocation3 + $0x64] sm:$0xf] }
 0x2dd   : > { %6060 = vmatmul.mubr.msk.bf16.gmra.mrb[32].mxu1 %vm3852_vm7, %v8040_v6  ;;  %v8065_v38 = vcombine.low %v3779_v13, %v3782_v8  ;;  %v3792_v59 = vrot.slane %v7964_v49, 5  ;;  %v3795_v28 = vrot.slane %v7971_v48, 5  ;;  %v5521_v30 = vcombine.low %v7888_v41, %v7890_v22  ;;  %v5583_v4 = vld [vmem:[%s8378_s6 + $0x18] sm:$0xf] }
 0x2de   : > { %6065 = vmatprep.mubr.msk.bf16.mxu1 %vm3852_vm7, %v5520_v39  ;;  %v3789_v43 = vsel %vm7113_vm13, %v3787_v61, %v3788_v54  ;;  %v5500_v40 = vrot.slane %v3722_v34, 9  ;;  %v3806_v27 = vrot.slane %v8001_v58, 5  ;;  %v8080_v1 = vcombine.low %v7897_v44, %v7900_v5  ;;  %v3473_v34 = vld [vmem:[#allocation3 + $0x68] sm:$0x1] }
 0x2df   : > { %v8073_v39 = vcombine.low %v3786_v10, %v3789_v43  ;;  %v3793_v45 = vsel %vm7113_vm13, %v5498_v23, %v3792_v59  ;;  %v3794_v12 = vrot.slane %v3792_v59, 4  ;;  %v3809_v48 = vrot.slane %v8009_v51, 5 }
 0x2e0   : > { %v4185_v41 = vsel %vm3877_vm3, %v7951_v25, 0  ;;  %v3807_v15 = vsel %vm7113_vm13, %v5500_v40, %v3806_v27  ;;  %v3808_v0 = vrot.slane %v3806_v27, 4  ;;  %v8104_v25 = vcombine.low %v7911_v50, %v7918_v47  ;;  %v5593_v27 = vld [vmem:[%s8378_s6 + $0x1c] sm:$0xf] }
 0x2e1   : > { %v3796_v22 = vsel %vm7113_vm13, %v3794_v12, %v3795_v28  ;;  %v8108_v51 = vcombine.low %v7939_v20, %v7941_v53  ;;  %v8116_v16 = vcombine.low %v7958_v37, %v7964_v49  ;;  %v8120_v11 = vcombine.low %v7978_v29, %v7982_v63  ;;  %v5563_v20 = vld [vmem:[%s8378_s6 + $0x10] sm:$0xf]  ;;  %v3721_v37 = vld [vmem:[#allocation3 + $0x48] sm:$0xe] }
 0x2e2   : > { %v8092_v56 = vcombine.low %v3793_v45, %v3796_v22  ;;  %v3810_v44 = vsel %vm7113_vm13, %v3808_v0, %v3809_v48  ;;  %v8128_v50 = vcombine.low %v7997_v24, %v8001_v58  ;;  %v4310_v47 = vsel %vm3877_vm3, %v5553_v3, 0  ;;  %v3723_v48 = vld [vmem:[#allocation3 + $0x60] sm:$0xe] }
 0x2e3   : > { %v8099_v5 = vcombine.low %v3807_v15, %v3810_v44  ;;  %v3799_v53 = vrot.slane %v7982_v63, 5  ;;  %v5499_v49 = vrot.slane %v3721_v37, 9  ;;  %v3802_v24 = vrot.slane %v7990_v57, 5 }
 0x2e4   : > { %v4434_v57 = vsel %vm3877_vm3, %v5563_v20, 0  ;;  %v5554_v21 = vcombine.low %v3461_v46, %v3462_v26  ;;  %v4558_v18 = vsel %vm3877_vm3, %v5573_v32, 0  ;;  %v3668_v13 = vshrl.u32 %v3461_v46, 16 }
 0x2e5   : > { %6066 = vmatmul.mubr.msk.bf16.vlgmr.msra.gmra.mrb[20].mxu1 %vm3852_vm7, %v5521_v30  ;;  %v3801_v29 = vrot.slane %v3799_v53, 4  ;;  %v3800_v58 = vsel %vm7113_vm13, %v5499_v49, %v3799_v53  ;;  %v3671_v9 = vshll.u32 %v3461_v46, 16  ;;  %v3677_v19 = vshll.u32 %v3462_v26, 16  ;;  %v3464_v53 = vld [vmem:[#allocation3 + $0x70] sm:$0xf] }
 0x2e6   : > { %6082 = vmatpush3.bf16.msra.mxu1 %v4185_v41  ;;  %6069 = vmatprep.mubr.msk.bf16.mxu1 %vm3852_vm7, %v8080_v1  ;;  %v3687_v61 = vshll.u32 %v3473_v34, 16  ;;  %v4683_v12 = vsel %vm3877_vm3, %v5583_v4, 0  ;;  %v5501_v41 = vrot.slane %v3723_v48, 9  ;;  %v3816_v15 = vrot.slane %v3473_v34, 5 }
 0x2e7   : > { %6507 = vmatprep.subr.msk.bf16.mxu1 %vm3877_vm3, %v5553_v3  ;;  %v3803_v55 = vsel %vm7113_vm13, %v3801_v29, %v3802_v24  ;;  %v3673_v36 = vrot.slane %v3671_v9, 5  ;;  %v3679_v54 = vrot.slane %v3677_v19, 5  ;;  %v3705_v37 = vshrl.u32 %v3464_v53, 16 }
 0x2e8   : > { %v8152_v63 = vcombine.low %v3800_v58, %v3803_v55  ;;  %v3474_v55 = vld [vmem:[#allocation3 + $0x74] sm:$0x1]  ;;  %v3820_v62 = vrot.slane %v3464_v53, 5 }
 0x2e9   : > { %v3707_v58 = vrot.slane %v3705_v37, 4 }
 0x2ed   : > { %6070 = vmatmul.mubr.msk.bf16.gmra.mrb[24].mxu1 %vm3852_vm7, %v8104_v25 }
 0x2ee   : > { %6073 = vmatprep.mubr.msk.bf16.mxu1 %vm3852_vm7, %v8108_v51 }
 0x2f5   : > { %6074 = vmatmul.mubr.msk.bf16.gmra.mrb[28].mxu1 %vm3852_vm7, %v8116_v16 }
 0x2f6   : > { %6077 = vmatprep.mubr.msk.bf16.mxu1 %vm3852_vm7, %v8120_v11 }
 0x2fd   : > { %6078 = vmatmul.mubr.msk.bf16.gmra.mrb[32].mxu1 %vm3852_vm7, %v8128_v50 }
 0x2fe   : > { %6083 = vmatprep.mubr.msk.bf16.mxu1 %vm3852_vm7, %v5537_v33  ;;  %v3681_v33 = vshrl.u32 %v3462_v26, 16 }
 0x300   : > { %v3683_v23 = vrot.slane %v3681_v33, 4 }
 0x302   : > { %v3684_v10 = vor.u32 %v3683_v23, %v3679_v54 }
 0x304   : > { %v3685_v28 = vrot.slane %v3684_v10, 4 }
 0x305   : > { %6084 = vmatmul.mubr.msk.bf16.vlgmr.msra.gmra.mrb[20].mxu1 %vm3852_vm7, %v7925_v14 }
 0x306   : > { %6100 = vmatpush3.bf16.msra.mxu1 %v4310_v47  ;;  %6087 = vmatprep.mubr.msk.bf16.mxu1 %vm3852_vm7, %v8059_v7  ;;  %v4807_v47 = vsel %vm3877_vm3, %v5593_v27, 0 }
 0x307   : > { %6508 = vmatprep.subr.msk.bf16.mxu1 %vm3877_vm3, %v5563_v20  ;;  %v5603_v20 = vld [vmem:[%s8378_s6 + $0x20] sm:$0xf] }
 0x30d   : > { %6088 = vmatmul.mubr.msk.bf16.gmra.mrb[24].mxu1 %vm3852_vm7, %v8065_v38 }
 0x30e   : > { %6091 = vmatprep.mubr.msk.bf16.mxu1 %vm3852_vm7, %v8073_v39 }
 0x315   : > { %6092 = vmatmul.mubr.msk.bf16.gmra.mrb[28].mxu1 %vm3852_vm7, %v8092_v56 }
 0x316   : > { %6095 = vmatprep.mubr.msk.bf16.mxu1 %vm3852_vm7, %v8152_v63 }
 0x31d   : > { %6096 = vmatmul.mubr.msk.bf16.gmra.mrb[32].mxu1 %vm3852_vm7, %v8099_v5 }
 0x31e   : > { %6101 = vmatprep.mubr.msk.bf16.mxu1 %vm3852_vm7, %v5521_v30  ;;  %v3689_v30 = vrot.slane %v3687_v61, 5 }
 0x320   : > { %v3690_v40 = vsel %vm7224_vm0, %v3685_v28, %v3689_v30 }
 0x325   : > { %6102 = vmatmul.mubr.msk.bf16.vlgmr.msra.gmra.mrb[20].mxu1 %vm3852_vm7, %v8080_v1 }
 0x326   : > { %6118 = vmatpush3.bf16.msra.mxu1 %v4434_v57  ;;  %6105 = vmatprep.mubr.msk.bf16.mxu1 %vm3852_vm7, %v8104_v25  ;;  %v3711_v57 = vshll.u32 %v3474_v55, 16 }
 0x327   : > { %6509 = vmatprep.subr.msk.bf16.mxu1 %vm3877_vm3, %v5573_v32 }
 0x32d   : > { %6106 = vmatmul.mubr.msk.bf16.gmra.mrb[24].mxu1 %vm3852_vm7, %v8108_v51 }
 0x32e   : > { %6109 = vmatprep.mubr.msk.bf16.mxu1 %vm3852_vm7, %v8116_v16 }
 0x335   : > { %6110 = vmatmul.mubr.msk.bf16.gmra.mrb[28].mxu1 %vm3852_vm7, %v8120_v11 }
 0x336   : > { %6113 = vmatprep.mubr.msk.bf16.mxu1 %vm3852_vm7, %v8128_v50 }
 0x33d   : > { %6114 = vmatmul.mubr.msk.bf16.gmra.mrb[32].mxu1 %vm3852_vm7, %v5554_v21 }
 0x33e   : > { %6119 = vmatprep.mubr.msk.bf16.mxu1 %vm3852_vm7, %v7929_v31  ;;  %v3670_v31 = vrot.slane %v3668_v13, 4 }
 0x340   : > { %v3674_v8 = vor.u32 %v3673_v36, %v3670_v31 }
 0x342   : > { %v3675_v59 = vrot.slane %v3674_v8, 4 }
 0x344   : > { %v3680_v43 = vsel %vm7224_vm0, %v3675_v59, %v3679_v54 }
 0x345   : > { %6120 = vmatmul.mubr.msk.bf16.vlgmr.msra.gmra.mrb[20].mxu1 %vm3852_vm7, %v7962_v35  ;;  %v5564_v45 = vcombine.low %v3680_v43, %v3690_v40 }
 0x346   : > { %6136 = vmatpush3.bf16.msra.mxu1 %v4558_v18  ;;  %6123 = vmatprep.mubr.msk.bf16.mxu1 %vm3852_vm7, %v7980_v60  ;;  %v3822_v18 = vrot.slane %v3820_v62, 4 }
 0x347   : > { %6510 = vmatprep.subr.msk.bf16.mxu1 %vm3877_vm3, %v5583_v4  ;;  %v3823_v4 = vrot.slane %v3474_v55, 5 }
 0x34d   : > { %6124 = vmatmul.mubr.msk.bf16.gmra.mrb[24].mxu1 %vm3852_vm7, %v7999_v52 }
 0x34e   : > { %6127 = vmatprep.mubr.msk.bf16.mxu1 %vm3852_vm7, %v8018_v2 }
 0x355   : > { %6128 = vmatmul.mubr.msk.bf16.gmra.mrb[28].mxu1 %vm3852_vm7, %v8027_v17 }
 0x356   : > { %6131 = vmatprep.mubr.msk.bf16.mxu1 %vm3852_vm7, %v8040_v6 }
 0x35d   : > { %6132 = vmatmul.mubr.msk.bf16.gmra.mrb[32].mxu1 %vm3852_vm7, %v5564_v45 }
 0x35e   : > { %6137 = vmatprep.mubr.msk.bf16.mxu1 %vm3852_vm7, %v7925_v14  ;;  %v3813_v14 = vrot.slane %v3462_v26, 5  ;;  %v3713_v26 = vrot.slane %v3711_v57, 5 }
 0x360   : > { %v3815_v22 = vrot.slane %v3813_v14, 4  ;;  %v3814_v0 = vsel %vm7113_vm13, %v5501_v41, %v3813_v14 }
 0x362   : > { %v3817_v3 = vsel %vm7113_vm13, %v3815_v22, %v3816_v15 }
 0x363   : > { %v5574_v44 = vcombine.low %v3814_v0, %v3817_v3 }
 0x365   : > { %6138 = vmatmul.mubr.msk.bf16.vlgmr.msra.gmra.mrb[20].mxu1 %vm3852_vm7, %v8059_v7 }
 0x366   : > { %6154 = vmatpush3.bf16.msra.mxu1 %v4683_v12  ;;  %6141 = vmatprep.mubr.msk.bf16.mxu1 %vm3852_vm7, %v8065_v38 }
 0x367   : > { %6511 = vmatprep.subr.msk.bf16.mxu1 %vm3877_vm3, %v5593_v27 }
 0x36d   : > { %6142 = vmatmul.mubr.msk.bf16.gmra.mrb[24].mxu1 %vm3852_vm7, %v8073_v39 }
 0x36e   : > { %6145 = vmatprep.mubr.msk.bf16.mxu1 %vm3852_vm7, %v8092_v56 }
 0x375   : > { %6146 = vmatmul.mubr.msk.bf16.gmra.mrb[28].mxu1 %vm3852_vm7, %v8152_v63 }
 0x376   : > { %6149 = vmatprep.mubr.msk.bf16.mxu1 %vm3852_vm7, %v8099_v5 }
 0x37d   : > { %6150 = vmatmul.mubr.msk.bf16.gmra.mrb[32].mxu1 %vm3852_vm7, %v5574_v44 }
 0x37e   : > { %6155 = vmatprep.mubr.msk.bf16.mxu1 %vm3852_vm7, %v8080_v1  ;;  %v3463_v1 = vld [vmem:[#allocation3 + $0x6c] sm:$0xf] }
 0x385   : > { %6156 = vmatmul.mubr.msk.bf16.vlgmr.msra.gmra.mrb[20].mxu1 %vm3852_vm7, %v8104_v25  ;;  %v5584_v25 = vcombine.low %v3463_v1, %v3464_v53 }
 0x386   : > { %6172 = vmatpush3.bf16.msra.mxu1 %v4807_v47  ;;  %6159 = vmatprep.mubr.msk.bf16.mxu1 %vm3852_vm7, %v8108_v51  ;;  %v4931_v51 = vsel %vm3877_vm3, %v5603_v20, 0 }
 0x387   : > { %6512 = vmatprep.subr.msk.bf16.mxu1 %vm3877_vm3, %v5603_v20 }
 0x38d   : > { %6160 = vmatmul.mubr.msk.bf16.gmra.mrb[24].mxu1 %vm3852_vm7, %v8116_v16  ;;  %v3692_v16 = vshrl.u32 %v3463_v1, 16 }
 0x38e   : > { %6163 = vmatprep.mubr.msk.bf16.mxu1 %vm3852_vm7, %v8120_v11  ;;  %v3695_v11 = vshll.u32 %v3463_v1, 16 }
 0x38f   : > { %v3694_v49 = vrot.slane %v3692_v16, 4 }
 0x390   : > { %v3697_v29 = vrot.slane %v3695_v11, 5 }
 0x395   : > { %6164 = vmatmul.mubr.msk.bf16.gmra.mrb[28].mxu1 %vm3852_vm7, %v8128_v50  ;;  %v3701_v50 = vshll.u32 %v3464_v53, 16 }
 0x396   : > { %6167 = vmatprep.mubr.msk.bf16.mxu1 %vm3852_vm7, %v5554_v21 }
 0x397   : > { %v3703_v24 = vrot.slane %v3701_v50, 5 }
 0x39d   : > { %6168 = vmatmul.mubr.msk.bf16.gmra.mrb[32].mxu1 %vm3852_vm7, %v5584_v25 }
 0x39e   : > { %6173 = vmatprep.mubr.msk.bf16.mxu1 %vm3852_vm7, %v7962_v35  ;;  %v3698_v35 = vor.u32 %v3697_v29, %v3694_v49 }
 0x3a0   : > { %v3699_v32 = vrot.slane %v3698_v35, 4 }
 0x3a5   : > { %6174 = vmatmul.mubr.msk.bf16.vlgmr.msra.gmra.mrb[20].mxu1 %vm3852_vm7, %v7980_v60  ;;  %v3708_v60 = vor.u32 %v3707_v58, %v3703_v24 }
 0x3a6   : > { %6190 = vmatpush3.bf16.msra.mxu1 %v4931_v51  ;;  %6177 = vmatprep.mubr.msk.bf16.mxu1 %vm3852_vm7, %v7999_v52  ;;  %v3704_v52 = vsel %vm7224_vm0, %v3699_v32, %v3703_v24 }
 0x3a7   : > { %v3709_v46 = vrot.slane %v3708_v60, 4 }
 0x3ad   : > { %6178 = vmatmul.mubr.msk.bf16.gmra.mrb[24].mxu1 %vm3852_vm7, %v8018_v2  ;;  %v3714_v2 = vsel %vm7224_vm0, %v3709_v46, %v3713_v26 }
 0x3ae   : > { %6181 = vmatprep.mubr.msk.bf16.mxu1 %vm3852_vm7, %v8027_v17  ;;  %v5594_v21 = vcombine.low %v3704_v52, %v3714_v2  ;;  %v3724_v17 = vld [vmem:[#allocation3 + $0x6c] sm:$0xe] }
 0x3b5   : > { %6182 = vmatmul.mubr.msk.bf16.gmra.mrb[28].mxu1 %vm3852_vm7, %v8040_v6  ;;  %v5502_v6 = vrot.slane %v3724_v17, 9 }
 0x3b6   : > { %6185 = vmatprep.mubr.msk.bf16.mxu1 %vm3852_vm7, %v5564_v45 }
 0x3bd   : > { %6186 = vmatmul.mubr.msk.bf16.gmra.mrb[32].mxu1 %vm3852_vm7, %v5594_v21 }
 0x3be   : > { %6191 = vmatprep.mubr.msk.bf16.mxu1 %vm3852_vm7, %v8059_v7  ;;  %v3821_v7 = vsel %vm7113_vm13, %v5502_v6, %v3820_v62 }
 0x3c5   : > { %6192 = vmatmul.mubr.msk.bf16.vlgmr.msra.gmra.mrb[20].mxu1 %vm3852_vm7, %v8065_v38  ;;  %v3824_v38 = vsel %vm7113_vm13, %v3822_v18, %v3823_v4 }
 0x3c6   : > { %6195 = vmatprep.mubr.msk.bf16.mxu1 %vm3852_vm7, %v8073_v39  ;;  %v5604_v39 = vcombine.low %v3821_v7, %v3824_v38 }
 0x3cd   : > { %6196 = vmatmul.mubr.msk.bf16.gmra.mrb[24].mxu1 %vm3852_vm7, %v8092_v56  ;;  %v8286_v56 = vld [vmem:[%s8379_s7] ss:$0 sm:$0xff] }
 0x3ce   : > { %6199 = vmatprep.mubr.msk.bf16.mxu1 %vm3852_vm7, %v8152_v63 }
 0x3d5   : > { %6200 = vmatmul.mubr.msk.bf16.gmra.mrb[28].mxu1 %vm3852_vm7, %v8099_v5  ;;  %v8291_v5 = vld [vmem:[%s8380_s8] ss:$0 sm:$0xff] }
 0x3d6   : > { %6203 = vmatprep.mubr.msk.bf16.mxu1 %vm3852_vm7, %v5574_v44 }
 0x3dd   : > { %6204 = vmatmul.mubr.msk.bf16.gmra.mrb[32].mxu1 %vm3852_vm7, %v5604_v39 }
 0x498   : > { %v6193_v63 = vpop.f32.mrb[20].mxu1 }
 0x499   : > { %v5055_v13 = vmul.f32 %v6193_v63, %v8286_v56  ;;  %v4967_v42 = vpop.f32.mrb[21].mxu1 }
 0x49a   : > { %v5053_v9 = vmul.f32 %v8286_v56, %v4967_v42  ;;  %v6194_v19 = vpop.f32.mrb[22].mxu1 }
 0x49b   : > { %v5078_v33 = vadd.f32 %v8291_v5, %v5055_v13  ;;  %v5056_v31 = vmul.f32 %v6194_v19, %v8286_v56  ;;  %v4970_v36 = vpop.f32.mrb[23].mxu1 }
 0x49c   : > { %v5076_v54 = vadd.f32 %v8291_v5, %v5053_v9  ;;  %v5054_v23 = vmul.f32 %v8286_v56, %v4970_v36 }
 0x49d   : > { %v5094_v34 = vmax.f32 %v5078_v33, 0.0  ;;  %v5079_v8 = vadd.f32 %v8291_v5, %v5056_v31 }
 0x49e   : > { %v5092_v10 = vmax.f32 %v5076_v54, 0.0  ;;  %v5077_v61 = vadd.f32 %v8291_v5, %v5054_v23 }
 0x49f   : > { %5110 = vst.msk [vmem:[%s6805_s16 + $0x10] sm:$0xff] %vm3852_vm7, %v5094_v34  ;;  %v5095_v59 = vmax.f32 %v5079_v8, 0.0 }
 0x4a0   : > { %5108 = vst.msk [vmem:[%s6805_s16] sm:$0xff] %vm3852_vm7, %v5092_v10  ;;  %v5093_v28 = vmax.f32 %v5077_v61, 0.0  ;;  %v6197_v30 = vpop.f32.mrb[24].mxu1 }
 0x4a1   : > { %5111 = vst.msk [vmem:[%s6805_s16 + $0x18] sm:$0xff] %vm3852_vm7, %v5095_v59  ;;  %v5059_v43 = vmul.f32 %v6197_v30, %v8286_v56  ;;  %v4983_v40 = vpop.f32.mrb[25].mxu1 }
 0x4a2   : > { %5109 = vst.msk [vmem:[%s6805_s16 + $0x8] sm:$0xff] %vm3852_vm7, %v5093_v28  ;;  %v5057_v45 = vmul.f32 %v8286_v56, %v4983_v40  ;;  %v6198_v12 = vpop.f32.mrb[26].mxu1 }
 0x4a3   : > { %v5082_v27 = vadd.f32 %v8291_v5, %v5059_v43  ;;  %v5060_v14 = vmul.f32 %v6198_v12, %v8286_v56  ;;  %v4986_v48 = vpop.f32.mrb[27].mxu1 }
 0x4a4   : > { %v5080_v41 = vadd.f32 %v8291_v5, %v5057_v45  ;;  %v5058_v22 = vmul.f32 %v8286_v56, %v4986_v48 }
 0x4a5   : > { %v5098_v15 = vmax.f32 %v5082_v27, 0.0  ;;  %v5083_v0 = vadd.f32 %v8291_v5, %v5060_v14 }
 0x4a6   : > { %v5096_v3 = vmax.f32 %v5080_v41, 0.0  ;;  %v5081_v44 = vadd.f32 %v8291_v5, %v5058_v22 }
 0x4a7   : > { %5114 = vst.msk [vmem:[%s6805_s16 + $0x30] sm:$0xff] %vm3852_vm7, %v5098_v15  ;;  %v5099_v47 = vmax.f32 %v5083_v0, 0.0 }
 0x4a8   : > { %5112 = vst.msk [vmem:[%s6805_s16 + $0x20] sm:$0xff] %vm3852_vm7, %v5096_v3  ;;  %v5097_v20 = vmax.f32 %v5081_v44, 0.0  ;;  %v6201_v1 = vpop.f32.mrb[28].mxu1 }
 0x4a9   : > { %5115 = vst.msk [vmem:[%s6805_s16 + $0x38] sm:$0xff] %vm3852_vm7, %v5099_v47  ;;  %v5063_v53 = vmul.f32 %v6201_v1, %v8286_v56  ;;  %v4999_v25 = vpop.f32.mrb[29].mxu1 }
 0x4aa   : > { %5113 = vst.msk [vmem:[%s6805_s16 + $0x28] sm:$0xff] %vm3852_vm7, %v5097_v20  ;;  %v5061_v51 = vmul.f32 %v8286_v56, %v4999_v25  ;;  %v6202_v16 = vpop.f32.mrb[30].mxu1 }
 0x4ab   : > { %v5086_v11 = vadd.f32 %v8291_v5, %v5063_v53  ;;  %v5064_v50 = vmul.f32 %v6202_v16, %v8286_v56  ;;  %v5002_v37 = vpop.f32.mrb[31].mxu1 }
 0x4ac   : > { %v5084_v49 = vadd.f32 %v8291_v5, %v5061_v51  ;;  %v5062_v29 = vmul.f32 %v8286_v56, %v5002_v37 }
 0x4ad   : > { %v5102_v24 = vmax.f32 %v5086_v11, 0.0  ;;  %v5087_v58 = vadd.f32 %v8291_v5, %v5064_v50 }
 0x4ae   : > { %v5100_v55 = vmax.f32 %v5084_v49, 0.0  ;;  %v5085_v35 = vadd.f32 %v8291_v5, %v5062_v29 }
 0x4af   : > { %5118 = vst.msk [vmem:[%s6805_s16 + $0x50] sm:$0xff] %vm3852_vm7, %v5102_v24  ;;  %v5103_v60 = vmax.f32 %v5087_v58, 0.0 }
 0x4b0   : > { %5116 = vst.msk [vmem:[%s6805_s16 + $0x40] sm:$0xff] %vm3852_vm7, %v5100_v55  ;;  %v5101_v57 = vmax.f32 %v5085_v35, 0.0  ;;  %v6205_v32 = vpop.f32.mrb[32].mxu1 }
 0x4b1   : > { %5119 = vst.msk [vmem:[%s6805_s16 + $0x58] sm:$0xff] %vm3852_vm7, %v5103_v60  ;;  %v5067_v46 = vmul.f32 %v6205_v32, %v8286_v56  ;;  %v5015_v26 = vpop.f32.mrb[33].mxu1 }
 0x4b2   : > { %5117 = vst.msk [vmem:[%s6805_s16 + $0x48] sm:$0xff] %vm3852_vm7, %v5101_v57  ;;  %v5065_v52 = vmul.f32 %v8286_v56, %v5015_v26  ;;  %v6206_v2 = vpop.f32.mrb[34].mxu1 }
 0x4b3   : > { %v5090_v21 = vadd.f32 %v8291_v5, %v5067_v46  ;;  %v5068_v62 = vmul.f32 %v6206_v2, %v8286_v56  ;;  %v5018_v17 = vpop.f32.mrb[35].mxu1 }
 0x4b4   : > { %v5088_v6 = vadd.f32 %v8291_v5, %v5065_v52  ;;  %v5066_v18 = vmul.f32 %v8286_v56, %v5018_v17 }
 0x4b5   : > { %v5106_v4 = vmax.f32 %v5090_v21, 0.0  ;;  %v5091_v7 = vadd.f32 %v8291_v5, %v5068_v62 }
 0x4b6   : > { %v5104_v38 = vmax.f32 %v5088_v6, 0.0  ;;  %v5089_v39 = vadd.f32 %v8291_v5, %v5066_v18 }
 0x4b7   : > { %5122 = vst.msk [vmem:[%s6805_s16 + $0x70] sm:$0xff] %vm3852_vm7, %v5106_v4  ;;  %v5107_v63 = vmax.f32 %v5091_v7, 0.0 }
 0x4b8   : > { %5120 = vst.msk [vmem:[%s6805_s16 + $0x60] sm:$0xff] %vm3852_vm7, %v5104_v38  ;;  %v5105_v13 = vmax.f32 %v5089_v39, 0.0 }
 0x4b9   : > { %5123 = vst.msk [vmem:[%s6805_s16 + $0x78] sm:$0xff] %vm3852_vm7, %v5107_v63 }
 0x4ba   : > { %5121 = vst.msk [vmem:[%s6805_s16 + $0x68] sm:$0xff] %vm3852_vm7, %v5105_v13 }
 0x4bb PF: > { %s19_s13 = sadd.s32 1, %s6617_s13   ;;  %s8468_s30 = smov %s6609_s11 }
 0x4bc   : > { %p16_p1 = scmp.ge.s32.totalorder %s19_s13, 6   ;;  %s8469_s10 = smov %s6613_s12 }
 0x4bd   : > { %s8470_s11 = smov %s8473_s14  ;;  %s8471_s12 = smov %s8477_s15 }
 0x4be   :  { %18 = sbr.rel (!%p16_p1) target bundleno = 3 (0x3), region = 136 }

</bundles_post_ra>
